<compile_context>
chip_gen: v6e
topology: v6e:2x2x1
jax: 0.10.0
libtpu: 0.0.40
codegen_flags: <defaults>
</compile_context>

<pallas_src>
import math

import jax
import jax.numpy as jnp
from jax.experimental import pallas as pl
from jax.experimental.pallas import tpu as pltpu


# -----------------------------------------------------------------------------
# Packed GRU cell
# -----------------------------------------------------------------------------
def _packed_gru_cell(gi, gh, h, D):
    """GRU cell on a direction-packed hidden state.

    gi, gh: (B, 3D) with column layout [r_f|r_b | z_f|z_b | n_f|n_b] (D = 2H)
    h:      (B, D)  packed [h_f | h_b]
    """
    r = jax.nn.sigmoid(gi[:, :D] + gh[:, :D])
    z = jax.nn.sigmoid(gi[:, D:2 * D] + gh[:, D:2 * D])
    n = jnp.tanh(gi[:, 2 * D:] + r * gh[:, 2 * D:])
    return (1.0 - z) * n + z * h


# -----------------------------------------------------------------------------
# Fused kernel: word bi-GRU + word attention (per utterance), and on the last
# grid step the context bi-GRU + context attention + classifier.
# -----------------------------------------------------------------------------
def han_kernel(gi_ref, wwhh_ref, wbhh_ref, wattf_ref, wattb_ref,
               wihcf_ref, wihcb_ref, cbih_ref, cwhh_ref, cbhh_ref,
               wctxf_ref, wctxb_ref, cw1_ref, cb1_ref, cw2_ref, cb2_ref,
               probs_ref, actx_ref, cpooled_ref,
               hcar_ref, yf_ref, yb_ref, pooled_ref, ycf_ref, ycb_ref):
    u = pl.program_id(0)
    T, B, Hw = yf_ref.shape
    Uc, _, Hc = ycf_ref.shape
    Dw = 2 * Hw
    Dc = 2 * Hc

    # Word-GRU hidden state carries across utterances (sequential grid axis),
    # exactly as in the PyTorch module.
    @pl.when(u == 0)
    def _():
        hcar_ref[...] = jnp.zeros_like(hcar_ref)

    whh = wwhh_ref[...]        # (2Hw, 6Hw) block-diag per direction per gate
    bhh = wbhh_ref[...]        # (1, 6Hw)

    def wstep(t, h):
        # One MXU push per step; gate projections for both directions were
        # precomputed outside the kernel (gi_ref[t] is a clean tile load, with
        # the backward direction's time index already reversed).
        gh = jnp.dot(h, whh, preferred_element_type=jnp.float32) + bhh
        gi = gi_ref[t]                                    # (B, 6Hw)
        h_new = _packed_gru_cell(gi, gh, h, Dw)
        yf_ref[t] = h_new[:, :Hw]
        yb_ref[T - 1 - t] = h_new[:, Hw:]
        return h_new

    h_last = jax.lax.fori_loop(0, T, wstep, hcar_ref[...], unroll=min(T, 8))
    hcar_ref[...] = h_last

    # Word attention pooling: a = softmax_T(relu(y . w_att)); pooled = sum_T y*a.
    # fwd/bwd halves kept separate -> no (T, B, 2H) concat is materialized.
    yf = yf_ref[...]
    yb = yb_ref[...]
    s = jnp.maximum(jnp.sum(yf * wattf_ref[...], axis=-1, keepdims=True)
                    + jnp.sum(yb * wattb_ref[...], axis=-1, keepdims=True), 0.0)
    m = jnp.max(s, axis=0, keepdims=True)
    e = jnp.exp(s - m)
    a = e / jnp.sum(e, axis=0, keepdims=True)             # (T, B, 1)
    pooled_ref[u] = jnp.concatenate(
        [jnp.sum(yf * a, axis=0), jnp.sum(yb * a, axis=0)], axis=-1)   # (B, 2Hw)

    # ------------------------------------------------------------------
    # Fused document tail on the last utterance.
    # ------------------------------------------------------------------
    @pl.when(u == Uc - 1)
    def _():
        cwhh = cwhh_ref[...]
        cbhh = cbhh_ref[...]
        cbih = cbih_ref[...]
        wihcf = wihcf_ref[...]   # fwd gate columns only (bwd cols zero)
        wihcb = wihcb_ref[...]   # bwd gate columns only (fwd cols zero)

        def cstep(t, h):
            rt = Uc - 1 - t
            gi = (jnp.dot(pooled_ref[t], wihcf, preferred_element_type=jnp.float32)
                  + jnp.dot(pooled_ref[rt], wihcb, preferred_element_type=jnp.float32)
                  + cbih)
            gh = jnp.dot(h, cwhh, preferred_element_type=jnp.float32) + cbhh
            h_new = _packed_gru_cell(gi, gh, h, Dc)
            ycf_ref[t] = h_new[:, :Hc]
            ycb_ref[rt] = h_new[:, Hc:]
            return h_new

        jax.lax.fori_loop(0, Uc, cstep, jnp.zeros((B, Dc), jnp.float32),
                          unroll=min(Uc, 8))

        # Context attention (single linear, no first projection), relu, softmax over U.
        ycf = ycf_ref[...]
        ycb = ycb_ref[...]
        sc = jnp.maximum(jnp.sum(ycf * wctxf_ref[...], axis=-1, keepdims=True)
                         + jnp.sum(ycb * wctxb_ref[...], axis=-1, keepdims=True),
                         0.0)
        mc = jnp.max(sc, axis=0, keepdims=True)
        ec = jnp.exp(sc - mc)
        ac = ec / jnp.sum(ec, axis=0, keepdims=True)       # (U, B, 1)
        actx_ref[...] = ac

        pooled_c = jnp.concatenate([jnp.sum(ycf * ac, axis=0),
                                    jnp.sum(ycb * ac, axis=0)], axis=-1)  # (B, 2Hc)
        cpooled_ref[...] = pooled_c

        # Classifier: Linear -> LeakyReLU(0.01) -> Linear -> Softmax.
        h1 = (jnp.dot(pooled_c, cw1_ref[...], preferred_element_type=jnp.float32)
              + cb1_ref[...])
        h1 = jnp.where(h1 > 0, h1, 0.01 * h1)
        logits = (jnp.dot(h1, cw2_ref[...], preferred_element_type=jnp.float32)
                  + cb2_ref[...])
        lm = jnp.max(logits, axis=-1, keepdims=True)
        le = jnp.exp(logits - lm)
        probs_ref[...] = le / jnp.sum(le, axis=-1, keepdims=True)


# -----------------------------------------------------------------------------
# Weight packing (JAX glue, done once per forward)
# -----------------------------------------------------------------------------
def pack_bigru(p_fwd, p_bwd):
    """Pack a bidirectional GRU into interleaved-gate MXU slabs.

    Column layout of all 6H slabs is [r_f|r_b | z_f|z_b | n_f|n_b] so a packed
    hidden state [h_f|h_b] flows through a single GRU cell per step.

    Returns:
      wih (Din, 6H)   input-to-hidden weights (both directions)
      bih (1, 6H)
      whh (2H, 6H)    block-diagonal per direction inside each gate block
      bhh (1, 6H)
    """
    wih_f, whh_f, bih_f, bhh_f = p_fwd   # (3, Din, H), (3, H, H), (3, 1, H), (3, 1, H)
    wih_b, whh_b, bih_b, bhh_b = p_bwd
    H = whh_f.shape[-1]
    Din = wih_f.shape[1]

    wih = jnp.stack([jnp.transpose(wih_f, (1, 0, 2)),
                     jnp.transpose(wih_b, (1, 0, 2))], axis=2)      # (Din, 3, 2, H)
    wih = wih.reshape(Din, 6 * H)
    bih = jnp.stack([bih_f.reshape(3, H), bih_b.reshape(3, H)],
                    axis=1).reshape(1, 6 * H)
    bhh = jnp.stack([bhh_f.reshape(3, H), bhh_b.reshape(3, H)],
                    axis=1).reshape(1, 6 * H)

    whh = jnp.zeros((2 * H, 6 * H), jnp.float32)
    for g in range(3):
        whh = whh.at[:H, 2 * H * g: 2 * H * g + H].set(whh_f[g])
        whh = whh.at[H:, 2 * H * g + H: 2 * H * (g + 1)].set(whh_b[g])
    return wih, bih, whh, bhh


def _direction_mask(H):
    """(6H,) mask that is 1 on forward-direction columns, 0 on backward."""
    return jnp.tile(jnp.concatenate([jnp.ones((H,), jnp.float32),
                                     jnp.zeros((H,), jnp.float32)]), 3)


# -----------------------------------------------------------------------------
# Full forward pass (Pallas path)
# -----------------------------------------------------------------------------
def han_forward(params, input_list):
    U = len(input_list)
    T, B = input_list[0].shape
    Hw = params['word_fwd'][1].shape[-1]
    Hc = params['ctx_fwd'][1].shape[-1]

    # --- glue: embedding gather + batched hoisted input projection -----------
    ids = jnp.stack(input_list, axis=0)                      # (U, T, B)
    emb = jnp.take(params['embedding'], ids, axis=0)         # (U, T, B, E)

    w_wih, w_bih, w_whh, w_bhh = pack_bigru(params['word_fwd'],
                                            params['word_bwd'])
    # One (U*T*B, E) @ (E, 6Hw) matmul covering every utterance, both
    # directions and all gates.
    gi = jnp.einsum('utbe,eg->utbg', emb, w_wih) + w_bih      # (U, T, B, 6Hw)
    # Time-reverse the backward-direction columns within each utterance so the
    # kernel's single loop index serves both directions.
    gi = gi.reshape(U, T, B, 3, 2, Hw)
    gi = gi.at[:, :, :, :, 1, :].set(gi[:, ::-1, :, :, 1, :])
    gi = gi.reshape(U * T, B, 6 * Hw)

    # Word attention: both linears are bias-free and relu comes after both, so
    # fold into a single vector and split into direction halves.
    watt = (params['word_att_w1'] @ params['word_att_w2'].T).reshape(1, 2 * Hw)
    wattf, wattb = watt[:, :Hw], watt[:, Hw:]

    c_wih, c_bih, c_whh, c_bhh = pack_bigru(params['ctx_fwd'],
                                            params['ctx_bwd'])
    dmask = _direction_mask(Hc)
    wih_cf = c_wih * dmask                                    # fwd columns only
    wih_cb = c_wih * (1.0 - dmask)                            # bwd columns only

    wctx = params['ctx_att_w2'].reshape(1, 2 * Hc)
    wctxf, wctxb = wctx[:, :Hc], wctx[:, Hc:]

    cw1, cb1, cw2, cb2 = params['clf']
    M = cw1.shape[-1]
    L = cw2.shape[-1]

    const2d = lambda u: (0, 0)
    probs, a_ctx, ctx_pooled = pl.pallas_call(
        han_kernel,
        out_shape=(jax.ShapeDtypeStruct((B, L), jnp.float32),
                   jax.ShapeDtypeStruct((U, B, 1), jnp.float32),
                   jax.ShapeDtypeStruct((B, 2 * Hc), jnp.float32)),
        grid=(U,),
        in_specs=[
            pl.BlockSpec((T, B, 6 * Hw), lambda u: (u, 0, 0)),   # gi (per utterance)
            pl.BlockSpec((2 * Hw, 6 * Hw), const2d),             # word whh
            pl.BlockSpec((1, 6 * Hw), const2d),                  # word bhh
            pl.BlockSpec((1, Hw), const2d),                      # word att fwd half
            pl.BlockSpec((1, Hw), const2d),                      # word att bwd half
            pl.BlockSpec((2 * Hw, 6 * Hc), const2d),             # ctx wih (fwd cols)
            pl.BlockSpec((2 * Hw, 6 * Hc), const2d),             # ctx wih (bwd cols)
            pl.BlockSpec((1, 6 * Hc), const2d),                  # ctx bih
            pl.BlockSpec((2 * Hc, 6 * Hc), const2d),             # ctx whh
            pl.BlockSpec((1, 6 * Hc), const2d),                  # ctx bhh
            pl.BlockSpec((1, Hc), const2d),                      # ctx att fwd half
            pl.BlockSpec((1, Hc), const2d),                      # ctx att bwd half
            pl.BlockSpec((2 * Hc, M), const2d),                  # clf w1
            pl.BlockSpec((1, M), const2d),                       # clf b1
            pl.BlockSpec((M, L), const2d),                       # clf w2
            pl.BlockSpec((1, L), const2d),                       # clf b2
        ],
        out_specs=(pl.BlockSpec((B, L), const2d),
                   pl.BlockSpec((U, B, 1), lambda u: (0, 0, 0)),
                   pl.BlockSpec((B, 2 * Hc), const2d)),
        scratch_shapes=[
            pltpu.VMEM((B, 2 * Hw), jnp.float32),      # packed word hidden carry
            pltpu.VMEM((T, B, Hw), jnp.float32),       # word fwd outputs
            pltpu.VMEM((T, B, Hw), jnp.float32),       # word bwd outputs
            pltpu.VMEM((U, B, 2 * Hw), jnp.float32),   # per-utterance pooled
            pltpu.VMEM((U, B, Hc), jnp.float32),       # ctx fwd outputs
            pltpu.VMEM((U, B, Hc), jnp.float32),       # ctx bwd outputs
        ],
        compiler_params=pltpu.CompilerParams(
            dimension_semantics=("arbitrary",)),       # hidden carry -> sequential
    )(gi, w_whh, w_bhh, wattf, wattb, wih_cf, wih_cb, c_bih, c_whh, c_bhh,
      wctxf, wctxb, cw1, cb1, cw2, cb2)

    att = jnp.transpose(a_ctx[:, :, 0], (1, 0))               # (B, U)
    return probs, att, ctx_pooled


# -----------------------------------------------------------------------------
# Pure-JAX reference (mirrors the PyTorch math, unpacked params)
# -----------------------------------------------------------------------------
def gru_seq_ref(x, h0, wih, whh, bih, bhh):
    def step(h, x_t):
        gi_r = x_t @ wih[0] + bih[0]
        gi_z = x_t @ wih[1] + bih[1]
        gi_n = x_t @ wih[2] + bih[2]
        gh_r = h @ whh[0] + bhh[0]
        gh_z = h @ whh[1] + bhh[1]
        gh_n = h @ whh[2] + bhh[2]
        r = jax.nn.sigmoid(gi_r + gh_r)
        z = jax.nn.sigmoid(gi_z + gh_z)
        n = jnp.tanh(gi_n + r * gh_n)
        h_new = (1.0 - z) * n + z * h
        return h_new, h_new
    h_last, ys = jax.lax.scan(step, h0, x)
    return ys, h_last


def gru_bi_ref(x, h0f, h0b, pf, pb):
    yf, hf = gru_seq_ref(x, h0f, *pf)
    yb_rev, hb = gru_seq_ref(jnp.flip(x, 0), h0b, *pb)
    return jnp.concatenate([yf, jnp.flip(yb_rev, 0)], axis=-1), hf, hb


def attn_pool_ref(y, w1, w2):
    proj = y if w1 is None else y @ w1
    s = jnp.maximum(jnp.sum(proj * w2, axis=-1, keepdims=True), 0.0)
    a = jax.nn.softmax(s, axis=0)
    return a, jnp.sum(y * a, axis=0)


def han_forward_ref(params, input_list):
    B = input_list[0].shape[1]
    Hw = params['word_fwd'][1].shape[-1]
    Hc = params['ctx_fwd'][1].shape[-1]
    h_f = jnp.zeros((B, Hw), jnp.float32)
    h_b = jnp.zeros((B, Hw), jnp.float32)
    outs = []
    for ids in input_list:
        emb = jnp.take(params['embedding'], ids, axis=0)
        y, h_f, h_b = gru_bi_ref(emb, h_f, h_b,
                                 params['word_fwd'], params['word_bwd'])
        _, pooled = attn_pool_ref(y, params['word_att_w1'],
                                  params['word_att_w2'])
        outs.append(pooled)
    ctx_in = jnp.stack(outs, 0)
    yc, _, _ = gru_bi_ref(ctx_in, jnp.zeros((B, Hc)), jnp.zeros((B, Hc)),
                          params['ctx_fwd'], params['ctx_bwd'])
    a_ctx, ctx_pooled = attn_pool_ref(yc, None, params['ctx_att_w2'])
    w1, b1, w2, b2 = params['clf']
    h = ctx_pooled @ w1 + b1
    h = jnp.where(h > 0, h, 0.01 * h)
    probs = jax.nn.softmax(h @ w2 + b2, axis=-1)
    return probs, jnp.transpose(a_ctx[:, :, 0], (1, 0)), ctx_pooled


# -----------------------------------------------------------------------------
# Deterministic parameter construction
# -----------------------------------------------------------------------------
def make_params(key, num_word, emb_size, Hw, Hc, mlp_size, num_label):
    ks = iter(jax.random.split(key, 32))

    def u(shape, fan):
        s = 1.0 / math.sqrt(fan)
        return jax.random.uniform(next(ks), shape, jnp.float32, -s, s)

    Dw = 2 * Hw   # word rnn output size (bidirectional)
    Dc = 2 * Hc   # context rnn output size (bidirectional)

    def gru_params(din, h):
        return (u((3, din, h), h), u((3, h, h), h),
                u((3, 1, h), h), u((3, 1, h), h))

    params = {
        'embedding': u((num_word, emb_size), emb_size),
        'word_fwd': gru_params(emb_size, Hw),
        'word_bwd': gru_params(emb_size, Hw),
        'word_att_w1': u((Dw, Dw), Dw),
        'word_att_w2': u((1, Dw), Dw),
        'ctx_fwd': gru_params(Dw, Hc),
        'ctx_bwd': gru_params(Dw, Hc),
        'ctx_att_w2': u((1, Dc), Dc),
        'clf': (u((Dc, mlp_size), Dc), u((1, mlp_size), Dc),
                u((mlp_size, num_label), mlp_size), u((1, num_label), mlp_size)),
    }
    return params


# -----------------------------------------------------------------------------
if __name__ == "__main__":
    # Small config consistent with the module's __init__:
    num_word, emb_size = 50, 32
    word_rnn_size, context_rnn_size = 16, 16        # bidirectional -> output 32
    mlp_size, num_label = 32, 2
    num_utterance, seq_len, batch_size = 3, 8, 2

    key = jax.random.PRNGKey(0)
    kp, kd = jax.random.split(key)
    params = make_params(kp, num_word, emb_size, word_rnn_size,
                         context_rnn_size, mlp_size, num_label)

    id_keys = jax.random.split(kd, num_utterance)
    input_list = [jax.random.randint(k, (seq_len, batch_size), 0, num_word,
                                     jnp.int32) for k in id_keys]

    probs, att, clf_in = han_forward(params, input_list)
    probs = jax.block_until_ready(probs)
    att = jax.block_until_ready(att)
    clf_in = jax.block_until_ready(clf_in)

    # cross-check against a pure-JAX reference of the same math
    probs_ref, att_ref, clf_in_ref = han_forward_ref(params, input_list)
    assert probs.shape == (batch_size, num_label)
    assert att.shape == (batch_size, num_utterance)
    assert clf_in.shape == (batch_size, 2 * context_rnn_size)
    assert jnp.allclose(probs, probs_ref, atol=1e-4, rtol=1e-4)
    assert jnp.allclose(att, att_ref, atol=1e-4, rtol=1e-4)
    assert jnp.allclose(clf_in, clf_in_ref, atol=1e-4, rtol=1e-4)

    print("KERNEL_OK")
</pallas_src>

<mosaic_0001>
module attributes {stable_mosaic.version = 11 : i64} {
  func.func @han_kernel(%arg0: i32, %arg1: memref<8x2x96xf32, #tpu.memory_space<vmem>>, %arg2: memref<32x96xf32, #tpu.memory_space<vmem>>, %arg3: memref<1x96xf32, #tpu.memory_space<vmem>>, %arg4: memref<1x16xf32, #tpu.memory_space<vmem>>, %arg5: memref<1x16xf32, #tpu.memory_space<vmem>>, %arg6: memref<32x96xf32, #tpu.memory_space<vmem>>, %arg7: memref<32x96xf32, #tpu.memory_space<vmem>>, %arg8: memref<1x96xf32, #tpu.memory_space<vmem>>, %arg9: memref<32x96xf32, #tpu.memory_space<vmem>>, %arg10: memref<1x96xf32, #tpu.memory_space<vmem>>, %arg11: memref<1x16xf32, #tpu.memory_space<vmem>>, %arg12: memref<1x16xf32, #tpu.memory_space<vmem>>, %arg13: memref<32x32xf32, #tpu.memory_space<vmem>>, %arg14: memref<1x32xf32, #tpu.memory_space<vmem>>, %arg15: memref<32x2xf32, #tpu.memory_space<vmem>>, %arg16: memref<1x2xf32, #tpu.memory_space<vmem>>, %arg17: memref<2x2xf32, #tpu.memory_space<vmem>>, %arg18: memref<3x2x1xf32, #tpu.memory_space<vmem>>, %arg19: memref<2x32xf32, #tpu.memory_space<vmem>>, %arg20: memref<2x32xf32, #tpu.memory_space<vmem>>, %arg21: memref<8x2x16xf32, #tpu.memory_space<vmem>>, %arg22: memref<8x2x16xf32, #tpu.memory_space<vmem>>, %arg23: memref<3x2x32xf32, #tpu.memory_space<vmem>>, %arg24: memref<3x2x16xf32, #tpu.memory_space<vmem>>, %arg25: memref<3x2x16xf32, #tpu.memory_space<vmem>>) attributes {dimension_semantics = [#tpu.dimension_semantics<arbitrary>], iteration_bounds = array<i64: 3>, scalar_prefetch = 0 : i64, scratch_operands = 6 : i64, tpu.core_type = #tpu.core_type<tc>, window_params = [{transform_indices = @transform_0, window_bounds = array<i64: 8, 2, 96>}, {pipeline_mode = #tpu.pipeline_mode<synchronous>, transform_indices = @transform_1, window_bounds = array<i64: 32, 96>}, {pipeline_mode = #tpu.pipeline_mode<synchronous>, transform_indices = @transform_2, window_bounds = array<i64: 1, 96>}, {pipeline_mode = #tpu.pipeline_mode<synchronous>, transform_indices = @transform_3, window_bounds = array<i64: 1, 16>}, {pipeline_mode = #tpu.pipeline_mode<synchronous>, transform_indices = @transform_4, window_bounds = array<i64: 1, 16>}, {pipeline_mode = #tpu.pipeline_mode<synchronous>, transform_indices = @transform_5, window_bounds = array<i64: 32, 96>}, {pipeline_mode = #tpu.pipeline_mode<synchronous>, transform_indices = @transform_6, window_bounds = array<i64: 32, 96>}, {pipeline_mode = #tpu.pipeline_mode<synchronous>, transform_indices = @transform_7, window_bounds = array<i64: 1, 96>}, {pipeline_mode = #tpu.pipeline_mode<synchronous>, transform_indices = @transform_8, window_bounds = array<i64: 32, 96>}, {pipeline_mode = #tpu.pipeline_mode<synchronous>, transform_indices = @transform_9, window_bounds = array<i64: 1, 96>}, {pipeline_mode = #tpu.pipeline_mode<synchronous>, transform_indices = @transform_10, window_bounds = array<i64: 1, 16>}, {pipeline_mode = #tpu.pipeline_mode<synchronous>, transform_indices = @transform_11, window_bounds = array<i64: 1, 16>}, {pipeline_mode = #tpu.pipeline_mode<synchronous>, transform_indices = @transform_12, window_bounds = array<i64: 32, 32>}, {pipeline_mode = #tpu.pipeline_mode<synchronous>, transform_indices = @transform_13, window_bounds = array<i64: 1, 32>}, {pipeline_mode = #tpu.pipeline_mode<synchronous>, transform_indices = @transform_14, window_bounds = array<i64: 32, 2>}, {pipeline_mode = #tpu.pipeline_mode<synchronous>, transform_indices = @transform_15, window_bounds = array<i64: 1, 2>}, {pipeline_mode = #tpu.pipeline_mode<synchronous>, transform_indices = @transform_16, window_bounds = array<i64: 2, 2>}, {pipeline_mode = #tpu.pipeline_mode<synchronous>, transform_indices = @transform_17, window_bounds = array<i64: 3, 2, 1>}, {pipeline_mode = #tpu.pipeline_mode<synchronous>, transform_indices = @transform_18, window_bounds = array<i64: 2, 32>}]} {
    %c0_i32 = arith.constant 0 : i32
    %0 = arith.cmpi eq, %arg0, %c0_i32 : i32
    %1 = arith.extui %0 : i1 to i32
    %c0_i32_0 = arith.constant 0 : i32
    %2 = arith.cmpi ne, %1, %c0_i32_0 : i32
    scf.if %2 {
      %cst_117 = arith.constant 0.000000e+00 : f32
      %391 = vector.broadcast %cst_117 : f32 to vector<2x32xf32>
      %c0_118 = arith.constant 0 : index
      %c0_119 = arith.constant 0 : index
      %392 = vector.load %arg20[%c0_118, %c0_119] : memref<2x32xf32, #tpu.memory_space<vmem>>, vector<2x32xf32>
      tpu.vector_store %arg20[%c0_118, %c0_119], %391 {strides = array<i32>} : memref<2x32xf32, #tpu.memory_space<vmem>>, vector<2x32xf32>,
    } else {
    }
    %c0 = arith.constant 0 : index
    %c0_1 = arith.constant 0 : index
    %3 = vector.load %arg2[%c0, %c0_1] : memref<32x96xf32, #tpu.memory_space<vmem>>, vector<32x96xf32>
    %c0_2 = arith.constant 0 : index
    %c0_3 = arith.constant 0 : index
    %4 = vector.load %arg3[%c0_2, %c0_3] : memref<1x96xf32, #tpu.memory_space<vmem>>, vector<1x96xf32>
    %c0_4 = arith.constant 0 : index
    %c0_5 = arith.constant 0 : index
    %5 = vector.load %arg20[%c0_4, %c0_5] : memref<2x32xf32, #tpu.memory_space<vmem>>, vector<2x32xf32>
    %c0_i32_6 = arith.constant 0 : i32
    %cst = arith.constant dense<0.000000e+00> : vector<2x96xf32>
    %6 = tpu.matmul %5, %3, %cst {dimension_numbers = #tpu.dot_dimension_numbers<[1], [0], [0], [1], [0, 0, 1, 1], [], []>} : vector<2x32xf32>, vector<32x96xf32>, vector<2x96xf32> -> vector<2x96xf32>
    %7 = vector.broadcast %4 : vector<1x96xf32> to vector<2x96xf32>
    %8 = arith.addf %6, %7 : vector<2x96xf32>
    %9 = arith.index_cast %c0_i32_6 : i32 to index
    %c0_7 = arith.constant 0 : index
    %c0_8 = arith.constant 0 : index
    %10 = vector.load %arg1[%9, %c0_7, %c0_8] : memref<8x2x96xf32, #tpu.memory_space<vmem>>, vector<1x2x96xf32>
    %11 = vector.shape_cast %10 : vector<1x2x96xf32> to vector<2x96xf32>
    %12 = vector.extract_strided_slice %11 {offsets = [0, 0], sizes = [2, 32], strides = [1, 1]} : vector<2x96xf32> to vector<2x32xf32>
    %13 = vector.extract_strided_slice %8 {offsets = [0, 0], sizes = [2, 32], strides = [1, 1]} : vector<2x96xf32> to vector<2x32xf32>
    %14 = arith.addf %12, %13 : vector<2x32xf32>
    %15 = arith.negf %14 : vector<2x32xf32>
    %16 = math.exp %15 : vector<2x32xf32>
    %cst_9 = arith.constant 1.000000e+00 : f32
    %17 = vector.broadcast %cst_9 : f32 to vector<2x32xf32>
    %18 = arith.addf %17, %16 : vector<2x32xf32>
    %19 = arith.divf %17, %18 : vector<2x32xf32>
    %20 = vector.extract_strided_slice %11 {offsets = [0, 32], sizes = [2, 32], strides = [1, 1]} : vector<2x96xf32> to vector<2x32xf32>
    %21 = vector.extract_strided_slice %8 {offsets = [0, 32], sizes = [2, 32], strides = [1, 1]} : vector<2x96xf32> to vector<2x32xf32>
    %22 = arith.addf %20, %21 : vector<2x32xf32>
    %23 = arith.negf %22 : vector<2x32xf32>
    %24 = math.exp %23 : vector<2x32xf32>
    %cst_10 = arith.constant 1.000000e+00 : f32
    %25 = vector.broadcast %cst_10 : f32 to vector<2x32xf32>
    %26 = arith.addf %25, %24 : vector<2x32xf32>
    %27 = arith.divf %25, %26 : vector<2x32xf32>
    %28 = vector.extract_strided_slice %11 {offsets = [0, 64], sizes = [2, 32], strides = [1, 1]} : vector<2x96xf32> to vector<2x32xf32>
    %29 = vector.extract_strided_slice %8 {offsets = [0, 64], sizes = [2, 32], strides = [1, 1]} : vector<2x96xf32> to vector<2x32xf32>
    %30 = arith.mulf %19, %29 : vector<2x32xf32>
    %31 = arith.addf %28, %30 : vector<2x32xf32>
    %32 = math.tanh %31 : vector<2x32xf32>
    %cst_11 = arith.constant 1.000000e+00 : f32
    %33 = vector.broadcast %cst_11 : f32 to vector<2x32xf32>
    %34 = arith.subf %33, %27 : vector<2x32xf32>
    %35 = arith.mulf %34, %32 : vector<2x32xf32>
    %36 = arith.mulf %27, %5 : vector<2x32xf32>
    %37 = arith.addf %35, %36 : vector<2x32xf32>
    %38 = vector.extract_strided_slice %37 {offsets = [0, 0], sizes = [2, 16], strides = [1, 1]} : vector<2x32xf32> to vector<2x16xf32>
    %39 = arith.index_cast %c0_i32_6 : i32 to index
    %c0_12 = arith.constant 0 : index
    %c0_13 = arith.constant 0 : index
    %40 = vector.load %arg21[%39, %c0_12, %c0_13] : memref<8x2x16xf32, #tpu.memory_space<vmem>>, vector<1x2x16xf32>
    %41 = vector.shape_cast %40 : vector<1x2x16xf32> to vector<2x16xf32>
    %42 = vector.shape_cast %38 : vector<2x16xf32> to vector<1x2x16xf32>
    tpu.vector_store %arg21[%39, %c0_12, %c0_13], %42 {strides = array<i32>} : memref<8x2x16xf32, #tpu.memory_space<vmem>>, vector<1x2x16xf32>,
    %43 = vector.extract_strided_slice %37 {offsets = [0, 16], sizes = [2, 16], strides = [1, 1]} : vector<2x32xf32> to vector<2x16xf32>
    %c7_i32 = arith.constant 7 : i32
    %44 = arith.subi %c7_i32, %c0_i32_6 : i32
    %45 = arith.index_cast %44 : i32 to index
    %c0_14 = arith.constant 0 : index
    %c0_15 = arith.constant 0 : index
    %46 = vector.load %arg22[%45, %c0_14, %c0_15] : memref<8x2x16xf32, #tpu.memory_space<vmem>>, vector<1x2x16xf32>
    %47 = vector.shape_cast %46 : vector<1x2x16xf32> to vector<2x16xf32>
    %48 = vector.shape_cast %43 : vector<2x16xf32> to vector<1x2x16xf32>
    tpu.vector_store %arg22[%45, %c0_14, %c0_15], %48 {strides = array<i32>} : memref<8x2x16xf32, #tpu.memory_space<vmem>>, vector<1x2x16xf32>,
    %c1_i32 = arith.constant 1 : i32
    %cst_16 = arith.constant dense<0.000000e+00> : vector<2x96xf32>
    %49 = tpu.matmul %37, %3, %cst_16 {dimension_numbers = #tpu.dot_dimension_numbers<[1], [0], [0], [1], [0, 0, 1, 1], [], []>} : vector<2x32xf32>, vector<32x96xf32>, vector<2x96xf32> -> vector<2x96xf32>
    %50 = vector.broadcast %4 : vector<1x96xf32> to vector<2x96xf32>
    %51 = arith.addf %49, %50 : vector<2x96xf32>
    %52 = arith.index_cast %c1_i32 : i32 to index
    %c0_17 = arith.constant 0 : index
    %c0_18 = arith.constant 0 : index
    %53 = vector.load %arg1[%52, %c0_17, %c0_18] : memref<8x2x96xf32, #tpu.memory_space<vmem>>, vector<1x2x96xf32>
    %54 = vector.shape_cast %53 : vector<1x2x96xf32> to vector<2x96xf32>
    %55 = vector.extract_strided_slice %54 {offsets = [0, 0], sizes = [2, 32], strides = [1, 1]} : vector<2x96xf32> to vector<2x32xf32>
    %56 = vector.extract_strided_slice %51 {offsets = [0, 0], sizes = [2, 32], strides = [1, 1]} : vector<2x96xf32> to vector<2x32xf32>
    %57 = arith.addf %55, %56 : vector<2x32xf32>
    %58 = arith.negf %57 : vector<2x32xf32>
    %59 = math.exp %58 : vector<2x32xf32>
    %cst_19 = arith.constant 1.000000e+00 : f32
    %60 = vector.broadcast %cst_19 : f32 to vector<2x32xf32>
    %61 = arith.addf %60, %59 : vector<2x32xf32>
    %62 = arith.divf %60, %61 : vector<2x32xf32>
    %63 = vector.extract_strided_slice %54 {offsets = [0, 32], sizes = [2, 32], strides = [1, 1]} : vector<2x96xf32> to vector<2x32xf32>
    %64 = vector.extract_strided_slice %51 {offsets = [0, 32], sizes = [2, 32], strides = [1, 1]} : vector<2x96xf32> to vector<2x32xf32>
    %65 = arith.addf %63, %64 : vector<2x32xf32>
    %66 = arith.negf %65 : vector<2x32xf32>
    %67 = math.exp %66 : vector<2x32xf32>
    %cst_20 = arith.constant 1.000000e+00 : f32
    %68 = vector.broadcast %cst_20 : f32 to vector<2x32xf32>
    %69 = arith.addf %68, %67 : vector<2x32xf32>
    %70 = arith.divf %68, %69 : vector<2x32xf32>
    %71 = vector.extract_strided_slice %54 {offsets = [0, 64], sizes = [2, 32], strides = [1, 1]} : vector<2x96xf32> to vector<2x32xf32>
    %72 = vector.extract_strided_slice %51 {offsets = [0, 64], sizes = [2, 32], strides = [1, 1]} : vector<2x96xf32> to vector<2x32xf32>
    %73 = arith.mulf %62, %72 : vector<2x32xf32>
    %74 = arith.addf %71, %73 : vector<2x32xf32>
    %75 = math.tanh %74 : vector<2x32xf32>
    %cst_21 = arith.constant 1.000000e+00 : f32
    %76 = vector.broadcast %cst_21 : f32 to vector<2x32xf32>
    %77 = arith.subf %76, %70 : vector<2x32xf32>
    %78 = arith.mulf %77, %75 : vector<2x32xf32>
    %79 = arith.mulf %70, %37 : vector<2x32xf32>
    %80 = arith.addf %78, %79 : vector<2x32xf32>
    %81 = vector.extract_strided_slice %80 {offsets = [0, 0], sizes = [2, 16], strides = [1, 1]} : vector<2x32xf32> to vector<2x16xf32>
    %82 = arith.index_cast %c1_i32 : i32 to index
    %c0_22 = arith.constant 0 : index
    %c0_23 = arith.constant 0 : index
    %83 = vector.load %arg21[%82, %c0_22, %c0_23] : memref<8x2x16xf32, #tpu.memory_space<vmem>>, vector<1x2x16xf32>
    %84 = vector.shape_cast %83 : vector<1x2x16xf32> to vector<2x16xf32>
    %85 = vector.shape_cast %81 : vector<2x16xf32> to vector<1x2x16xf32>
    tpu.vector_store %arg21[%82, %c0_22, %c0_23], %85 {strides = array<i32>} : memref<8x2x16xf32, #tpu.memory_space<vmem>>, vector<1x2x16xf32>,
    %86 = vector.extract_strided_slice %80 {offsets = [0, 16], sizes = [2, 16], strides = [1, 1]} : vector<2x32xf32> to vector<2x16xf32>
    %c7_i32_24 = arith.constant 7 : i32
    %87 = arith.subi %c7_i32_24, %c1_i32 : i32
    %88 = arith.index_cast %87 : i32 to index
    %c0_25 = arith.constant 0 : index
    %c0_26 = arith.constant 0 : index
    %89 = vector.load %arg22[%88, %c0_25, %c0_26] : memref<8x2x16xf32, #tpu.memory_space<vmem>>, vector<1x2x16xf32>
    %90 = vector.shape_cast %89 : vector<1x2x16xf32> to vector<2x16xf32>
    %91 = vector.shape_cast %86 : vector<2x16xf32> to vector<1x2x16xf32>
    tpu.vector_store %arg22[%88, %c0_25, %c0_26], %91 {strides = array<i32>} : memref<8x2x16xf32, #tpu.memory_space<vmem>>, vector<1x2x16xf32>,
    %c2_i32 = arith.constant 2 : i32
    %cst_27 = arith.constant dense<0.000000e+00> : vector<2x96xf32>
    %92 = tpu.matmul %80, %3, %cst_27 {dimension_numbers = #tpu.dot_dimension_numbers<[1], [0], [0], [1], [0, 0, 1, 1], [], []>} : vector<2x32xf32>, vector<32x96xf32>, vector<2x96xf32> -> vector<2x96xf32>
    %93 = vector.broadcast %4 : vector<1x96xf32> to vector<2x96xf32>
    %94 = arith.addf %92, %93 : vector<2x96xf32>
    %95 = arith.index_cast %c2_i32 : i32 to index
    %c0_28 = arith.constant 0 : index
    %c0_29 = arith.constant 0 : index
    %96 = vector.load %arg1[%95, %c0_28, %c0_29] : memref<8x2x96xf32, #tpu.memory_space<vmem>>, vector<1x2x96xf32>
    %97 = vector.shape_cast %96 : vector<1x2x96xf32> to vector<2x96xf32>
    %98 = vector.extract_strided_slice %97 {offsets = [0, 0], sizes = [2, 32], strides = [1, 1]} : vector<2x96xf32> to vector<2x32xf32>
    %99 = vector.extract_strided_slice %94 {offsets = [0, 0], sizes = [2, 32], strides = [1, 1]} : vector<2x96xf32> to vector<2x32xf32>
    %100 = arith.addf %98, %99 : vector<2x32xf32>
    %101 = arith.negf %100 : vector<2x32xf32>
    %102 = math.exp %101 : vector<2x32xf32>
    %cst_30 = arith.constant 1.000000e+00 : f32
    %103 = vector.broadcast %cst_30 : f32 to vector<2x32xf32>
    %104 = arith.addf %103, %102 : vector<2x32xf32>
    %105 = arith.divf %103, %104 : vector<2x32xf32>
    %106 = vector.extract_strided_slice %97 {offsets = [0, 32], sizes = [2, 32], strides = [1, 1]} : vector<2x96xf32> to vector<2x32xf32>
    %107 = vector.extract_strided_slice %94 {offsets = [0, 32], sizes = [2, 32], strides = [1, 1]} : vector<2x96xf32> to vector<2x32xf32>
    %108 = arith.addf %106, %107 : vector<2x32xf32>
    %109 = arith.negf %108 : vector<2x32xf32>
    %110 = math.exp %109 : vector<2x32xf32>
    %cst_31 = arith.constant 1.000000e+00 : f32
    %111 = vector.broadcast %cst_31 : f32 to vector<2x32xf32>
    %112 = arith.addf %111, %110 : vector<2x32xf32>
    %113 = arith.divf %111, %112 : vector<2x32xf32>
    %114 = vector.extract_strided_slice %97 {offsets = [0, 64], sizes = [2, 32], strides = [1, 1]} : vector<2x96xf32> to vector<2x32xf32>
    %115 = vector.extract_strided_slice %94 {offsets = [0, 64], sizes = [2, 32], strides = [1, 1]} : vector<2x96xf32> to vector<2x32xf32>
    %116 = arith.mulf %105, %115 : vector<2x32xf32>
    %117 = arith.addf %114, %116 : vector<2x32xf32>
    %118 = math.tanh %117 : vector<2x32xf32>
    %cst_32 = arith.constant 1.000000e+00 : f32
    %119 = vector.broadcast %cst_32 : f32 to vector<2x32xf32>
    %120 = arith.subf %119, %113 : vector<2x32xf32>
    %121 = arith.mulf %120, %118 : vector<2x32xf32>
    %122 = arith.mulf %113, %80 : vector<2x32xf32>
    %123 = arith.addf %121, %122 : vector<2x32xf32>
    %124 = vector.extract_strided_slice %123 {offsets = [0, 0], sizes = [2, 16], strides = [1, 1]} : vector<2x32xf32> to vector<2x16xf32>
    %125 = arith.index_cast %c2_i32 : i32 to index
    %c0_33 = arith.constant 0 : index
    %c0_34 = arith.constant 0 : index
    %126 = vector.load %arg21[%125, %c0_33, %c0_34] : memref<8x2x16xf32, #tpu.memory_space<vmem>>, vector<1x2x16xf32>
    %127 = vector.shape_cast %126 : vector<1x2x16xf32> to vector<2x16xf32>
    %128 = vector.shape_cast %124 : vector<2x16xf32> to vector<1x2x16xf32>
    tpu.vector_store %arg21[%125, %c0_33, %c0_34], %128 {strides = array<i32>} : memref<8x2x16xf32, #tpu.memory_space<vmem>>, vector<1x2x16xf32>,
    %129 = vector.extract_strided_slice %123 {offsets = [0, 16], sizes = [2, 16], strides = [1, 1]} : vector<2x32xf32> to vector<2x16xf32>
    %c7_i32_35 = arith.constant 7 : i32
    %130 = arith.subi %c7_i32_35, %c2_i32 : i32
    %131 = arith.index_cast %130 : i32 to index
    %c0_36 = arith.constant 0 : index
    %c0_37 = arith.constant 0 : index
    %132 = vector.load %arg22[%131, %c0_36, %c0_37] : memref<8x2x16xf32, #tpu.memory_space<vmem>>, vector<1x2x16xf32>
    %133 = vector.shape_cast %132 : vector<1x2x16xf32> to vector<2x16xf32>
    %134 = vector.shape_cast %129 : vector<2x16xf32> to vector<1x2x16xf32>
    tpu.vector_store %arg22[%131, %c0_36, %c0_37], %134 {strides = array<i32>} : memref<8x2x16xf32, #tpu.memory_space<vmem>>, vector<1x2x16xf32>,
    %c3_i32 = arith.constant 3 : i32
    %cst_38 = arith.constant dense<0.000000e+00> : vector<2x96xf32>
    %135 = tpu.matmul %123, %3, %cst_38 {dimension_numbers = #tpu.dot_dimension_numbers<[1], [0], [0], [1], [0, 0, 1, 1], [], []>} : vector<2x32xf32>, vector<32x96xf32>, vector<2x96xf32> -> vector<2x96xf32>
    %136 = vector.broadcast %4 : vector<1x96xf32> to vector<2x96xf32>
    %137 = arith.addf %135, %136 : vector<2x96xf32>
    %138 = arith.index_cast %c3_i32 : i32 to index
    %c0_39 = arith.constant 0 : index
    %c0_40 = arith.constant 0 : index
    %139 = vector.load %arg1[%138, %c0_39, %c0_40] : memref<8x2x96xf32, #tpu.memory_space<vmem>>, vector<1x2x96xf32>
    %140 = vector.shape_cast %139 : vector<1x2x96xf32> to vector<2x96xf32>
    %141 = vector.extract_strided_slice %140 {offsets = [0, 0], sizes = [2, 32], strides = [1, 1]} : vector<2x96xf32> to vector<2x32xf32>
    %142 = vector.extract_strided_slice %137 {offsets = [0, 0], sizes = [2, 32], strides = [1, 1]} : vector<2x96xf32> to vector<2x32xf32>
    %143 = arith.addf %141, %142 : vector<2x32xf32>
    %144 = arith.negf %143 : vector<2x32xf32>
    %145 = math.exp %144 : vector<2x32xf32>
    %cst_41 = arith.constant 1.000000e+00 : f32
    %146 = vector.broadcast %cst_41 : f32 to vector<2x32xf32>
    %147 = arith.addf %146, %145 : vector<2x32xf32>
    %148 = arith.divf %146, %147 : vector<2x32xf32>
    %149 = vector.extract_strided_slice %140 {offsets = [0, 32], sizes = [2, 32], strides = [1, 1]} : vector<2x96xf32> to vector<2x32xf32>
    %150 = vector.extract_strided_slice %137 {offsets = [0, 32], sizes = [2, 32], strides = [1, 1]} : vector<2x96xf32> to vector<2x32xf32>
    %151 = arith.addf %149, %150 : vector<2x32xf32>
    %152 = arith.negf %151 : vector<2x32xf32>
    %153 = math.exp %152 : vector<2x32xf32>
    %cst_42 = arith.constant 1.000000e+00 : f32
    %154 = vector.broadcast %cst_42 : f32 to vector<2x32xf32>
    %155 = arith.addf %154, %153 : vector<2x32xf32>
    %156 = arith.divf %154, %155 : vector<2x32xf32>
    %157 = vector.extract_strided_slice %140 {offsets = [0, 64], sizes = [2, 32], strides = [1, 1]} : vector<2x96xf32> to vector<2x32xf32>
    %158 = vector.extract_strided_slice %137 {offsets = [0, 64], sizes = [2, 32], strides = [1, 1]} : vector<2x96xf32> to vector<2x32xf32>
    %159 = arith.mulf %148, %158 : vector<2x32xf32>
    %160 = arith.addf %157, %159 : vector<2x32xf32>
    %161 = math.tanh %160 : vector<2x32xf32>
    %cst_43 = arith.constant 1.000000e+00 : f32
    %162 = vector.broadcast %cst_43 : f32 to vector<2x32xf32>
    %163 = arith.subf %162, %156 : vector<2x32xf32>
    %164 = arith.mulf %163, %161 : vector<2x32xf32>
    %165 = arith.mulf %156, %123 : vector<2x32xf32>
    %166 = arith.addf %164, %165 : vector<2x32xf32>
    %167 = vector.extract_strided_slice %166 {offsets = [0, 0], sizes = [2, 16], strides = [1, 1]} : vector<2x32xf32> to vector<2x16xf32>
    %168 = arith.index_cast %c3_i32 : i32 to index
    %c0_44 = arith.constant 0 : index
    %c0_45 = arith.constant 0 : index
    %169 = vector.load %arg21[%168, %c0_44, %c0_45] : memref<8x2x16xf32, #tpu.memory_space<vmem>>, vector<1x2x16xf32>
    %170 = vector.shape_cast %169 : vector<1x2x16xf32> to vector<2x16xf32>
    %171 = vector.shape_cast %167 : vector<2x16xf32> to vector<1x2x16xf32>
    tpu.vector_store %arg21[%168, %c0_44, %c0_45], %171 {strides = array<i32>} : memref<8x2x16xf32, #tpu.memory_space<vmem>>, vector<1x2x16xf32>,
    %172 = vector.extract_strided_slice %166 {offsets = [0, 16], sizes = [2, 16], strides = [1, 1]} : vector<2x32xf32> to vector<2x16xf32>
    %c7_i32_46 = arith.constant 7 : i32
    %173 = arith.subi %c7_i32_46, %c3_i32 : i32
    %174 = arith.index_cast %173 : i32 to index
    %c0_47 = arith.constant 0 : index
    %c0_48 = arith.constant 0 : index
    %175 = vector.load %arg22[%174, %c0_47, %c0_48] : memref<8x2x16xf32, #tpu.memory_space<vmem>>, vector<1x2x16xf32>
    %176 = vector.shape_cast %175 : vector<1x2x16xf32> to vector<2x16xf32>
    %177 = vector.shape_cast %172 : vector<2x16xf32> to vector<1x2x16xf32>
    tpu.vector_store %arg22[%174, %c0_47, %c0_48], %177 {strides = array<i32>} : memref<8x2x16xf32, #tpu.memory_space<vmem>>, vector<1x2x16xf32>,
    %c4_i32 = arith.constant 4 : i32
    %cst_49 = arith.constant dense<0.000000e+00> : vector<2x96xf32>
    %178 = tpu.matmul %166, %3, %cst_49 {dimension_numbers = #tpu.dot_dimension_numbers<[1], [0], [0], [1], [0, 0, 1, 1], [], []>} : vector<2x32xf32>, vector<32x96xf32>, vector<2x96xf32> -> vector<2x96xf32>
    %179 = vector.broadcast %4 : vector<1x96xf32> to vector<2x96xf32>
    %180 = arith.addf %178, %179 : vector<2x96xf32>
    %181 = arith.index_cast %c4_i32 : i32 to index
    %c0_50 = arith.constant 0 : index
    %c0_51 = arith.constant 0 : index
    %182 = vector.load %arg1[%181, %c0_50, %c0_51] : memref<8x2x96xf32, #tpu.memory_space<vmem>>, vector<1x2x96xf32>
    %183 = vector.shape_cast %182 : vector<1x2x96xf32> to vector<2x96xf32>
    %184 = vector.extract_strided_slice %183 {offsets = [0, 0], sizes = [2, 32], strides = [1, 1]} : vector<2x96xf32> to vector<2x32xf32>
    %185 = vector.extract_strided_slice %180 {offsets = [0, 0], sizes = [2, 32], strides = [1, 1]} : vector<2x96xf32> to vector<2x32xf32>
    %186 = arith.addf %184, %185 : vector<2x32xf32>
    %187 = arith.negf %186 : vector<2x32xf32>
    %188 = math.exp %187 : vector<2x32xf32>
    %cst_52 = arith.constant 1.000000e+00 : f32
    %189 = vector.broadcast %cst_52 : f32 to vector<2x32xf32>
    %190 = arith.addf %189, %188 : vector<2x32xf32>
    %191 = arith.divf %189, %190 : vector<2x32xf32>
    %192 = vector.extract_strided_slice %183 {offsets = [0, 32], sizes = [2, 32], strides = [1, 1]} : vector<2x96xf32> to vector<2x32xf32>
    %193 = vector.extract_strided_slice %180 {offsets = [0, 32], sizes = [2, 32], strides = [1, 1]} : vector<2x96xf32> to vector<2x32xf32>
    %194 = arith.addf %192, %193 : vector<2x32xf32>
    %195 = arith.negf %194 : vector<2x32xf32>
    %196 = math.exp %195 : vector<2x32xf32>
    %cst_53 = arith.constant 1.000000e+00 : f32
    %197 = vector.broadcast %cst_53 : f32 to vector<2x32xf32>
    %198 = arith.addf %197, %196 : vector<2x32xf32>
    %199 = arith.divf %197, %198 : vector<2x32xf32>
    %200 = vector.extract_strided_slice %183 {offsets = [0, 64], sizes = [2, 32], strides = [1, 1]} : vector<2x96xf32> to vector<2x32xf32>
    %201 = vector.extract_strided_slice %180 {offsets = [0, 64], sizes = [2, 32], strides = [1, 1]} : vector<2x96xf32> to vector<2x32xf32>
    %202 = arith.mulf %191, %201 : vector<2x32xf32>
    %203 = arith.addf %200, %202 : vector<2x32xf32>
    %204 = math.tanh %203 : vector<2x32xf32>
    %cst_54 = arith.constant 1.000000e+00 : f32
    %205 = vector.broadcast %cst_54 : f32 to vector<2x32xf32>
    %206 = arith.subf %205, %199 : vector<2x32xf32>
    %207 = arith.mulf %206, %204 : vector<2x32xf32>
    %208 = arith.mulf %199, %166 : vector<2x32xf32>
    %209 = arith.addf %207, %208 : vector<2x32xf32>
    %210 = vector.extract_strided_slice %209 {offsets = [0, 0], sizes = [2, 16], strides = [1, 1]} : vector<2x32xf32> to vector<2x16xf32>
    %211 = arith.index_cast %c4_i32 : i32 to index
    %c0_55 = arith.constant 0 : index
    %c0_56 = arith.constant 0 : index
    %212 = vector.load %arg21[%211, %c0_55, %c0_56] : memref<8x2x16xf32, #tpu.memory_space<vmem>>, vector<1x2x16xf32>
    %213 = vector.shape_cast %212 : vector<1x2x16xf32> to vector<2x16xf32>
    %214 = vector.shape_cast %210 : vector<2x16xf32> to vector<1x2x16xf32>
    tpu.vector_store %arg21[%211, %c0_55, %c0_56], %214 {strides = array<i32>} : memref<8x2x16xf32, #tpu.memory_space<vmem>>, vector<1x2x16xf32>,
    %215 = vector.extract_strided_slice %209 {offsets = [0, 16], sizes = [2, 16], strides = [1, 1]} : vector<2x32xf32> to vector<2x16xf32>
    %c7_i32_57 = arith.constant 7 : i32
    %216 = arith.subi %c7_i32_57, %c4_i32 : i32
    %217 = arith.index_cast %216 : i32 to index
    %c0_58 = arith.constant 0 : index
    %c0_59 = arith.constant 0 : index
    %218 = vector.load %arg22[%217, %c0_58, %c0_59] : memref<8x2x16xf32, #tpu.memory_space<vmem>>, vector<1x2x16xf32>
    %219 = vector.shape_cast %218 : vector<1x2x16xf32> to vector<2x16xf32>
    %220 = vector.shape_cast %215 : vector<2x16xf32> to vector<1x2x16xf32>
    tpu.vector_store %arg22[%217, %c0_58, %c0_59], %220 {strides = array<i32>} : memref<8x2x16xf32, #tpu.memory_space<vmem>>, vector<1x2x16xf32>,
    %c5_i32 = arith.constant 5 : i32
    %cst_60 = arith.constant dense<0.000000e+00> : vector<2x96xf32>
    %221 = tpu.matmul %209, %3, %cst_60 {dimension_numbers = #tpu.dot_dimension_numbers<[1], [0], [0], [1], [0, 0, 1, 1], [], []>} : vector<2x32xf32>, vector<32x96xf32>, vector<2x96xf32> -> vector<2x96xf32>
    %222 = vector.broadcast %4 : vector<1x96xf32> to vector<2x96xf32>
    %223 = arith.addf %221, %222 : vector<2x96xf32>
    %224 = arith.index_cast %c5_i32 : i32 to index
    %c0_61 = arith.constant 0 : index
    %c0_62 = arith.constant 0 : index
    %225 = vector.load %arg1[%224, %c0_61, %c0_62] : memref<8x2x96xf32, #tpu.memory_space<vmem>>, vector<1x2x96xf32>
    %226 = vector.shape_cast %225 : vector<1x2x96xf32> to vector<2x96xf32>
    %227 = vector.extract_strided_slice %226 {offsets = [0, 0], sizes = [2, 32], strides = [1, 1]} : vector<2x96xf32> to vector<2x32xf32>
    %228 = vector.extract_strided_slice %223 {offsets = [0, 0], sizes = [2, 32], strides = [1, 1]} : vector<2x96xf32> to vector<2x32xf32>
    %229 = arith.addf %227, %228 : vector<2x32xf32>
    %230 = arith.negf %229 : vector<2x32xf32>
    %231 = math.exp %230 : vector<2x32xf32>
    %cst_63 = arith.constant 1.000000e+00 : f32
    %232 = vector.broadcast %cst_63 : f32 to vector<2x32xf32>
    %233 = arith.addf %232, %231 : vector<2x32xf32>
    %234 = arith.divf %232, %233 : vector<2x32xf32>
    %235 = vector.extract_strided_slice %226 {offsets = [0, 32], sizes = [2, 32], strides = [1, 1]} : vector<2x96xf32> to vector<2x32xf32>
    %236 = vector.extract_strided_slice %223 {offsets = [0, 32], sizes = [2, 32], strides = [1, 1]} : vector<2x96xf32> to vector<2x32xf32>
    %237 = arith.addf %235, %236 : vector<2x32xf32>
    %238 = arith.negf %237 : vector<2x32xf32>
    %239 = math.exp %238 : vector<2x32xf32>
    %cst_64 = arith.constant 1.000000e+00 : f32
    %240 = vector.broadcast %cst_64 : f32 to vector<2x32xf32>
    %241 = arith.addf %240, %239 : vector<2x32xf32>
    %242 = arith.divf %240, %241 : vector<2x32xf32>
    %243 = vector.extract_strided_slice %226 {offsets = [0, 64], sizes = [2, 32], strides = [1, 1]} : vector<2x96xf32> to vector<2x32xf32>
    %244 = vector.extract_strided_slice %223 {offsets = [0, 64], sizes = [2, 32], strides = [1, 1]} : vector<2x96xf32> to vector<2x32xf32>
    %245 = arith.mulf %234, %244 : vector<2x32xf32>
    %246 = arith.addf %243, %245 : vector<2x32xf32>
    %247 = math.tanh %246 : vector<2x32xf32>
    %cst_65 = arith.constant 1.000000e+00 : f32
    %248 = vector.broadcast %cst_65 : f32 to vector<2x32xf32>
    %249 = arith.subf %248, %242 : vector<2x32xf32>
    %250 = arith.mulf %249, %247 : vector<2x32xf32>
    %251 = arith.mulf %242, %209 : vector<2x32xf32>
    %252 = arith.addf %250, %251 : vector<2x32xf32>
    %253 = vector.extract_strided_slice %252 {offsets = [0, 0], sizes = [2, 16], strides = [1, 1]} : vector<2x32xf32> to vector<2x16xf32>
    %254 = arith.index_cast %c5_i32 : i32 to index
    %c0_66 = arith.constant 0 : index
    %c0_67 = arith.constant 0 : index
    %255 = vector.load %arg21[%254, %c0_66, %c0_67] : memref<8x2x16xf32, #tpu.memory_space<vmem>>, vector<1x2x16xf32>
    %256 = vector.shape_cast %255 : vector<1x2x16xf32> to vector<2x16xf32>
    %257 = vector.shape_cast %253 : vector<2x16xf32> to vector<1x2x16xf32>
    tpu.vector_store %arg21[%254, %c0_66, %c0_67], %257 {strides = array<i32>} : memref<8x2x16xf32, #tpu.memory_space<vmem>>, vector<1x2x16xf32>,
    %258 = vector.extract_strided_slice %252 {offsets = [0, 16], sizes = [2, 16], strides = [1, 1]} : vector<2x32xf32> to vector<2x16xf32>
    %c7_i32_68 = arith.constant 7 : i32
    %259 = arith.subi %c7_i32_68, %c5_i32 : i32
    %260 = arith.index_cast %259 : i32 to index
    %c0_69 = arith.constant 0 : index
    %c0_70 = arith.constant 0 : index
    %261 = vector.load %arg22[%260, %c0_69, %c0_70] : memref<8x2x16xf32, #tpu.memory_space<vmem>>, vector<1x2x16xf32>
    %262 = vector.shape_cast %261 : vector<1x2x16xf32> to vector<2x16xf32>
    %263 = vector.shape_cast %258 : vector<2x16xf32> to vector<1x2x16xf32>
    tpu.vector_store %arg22[%260, %c0_69, %c0_70], %263 {strides = array<i32>} : memref<8x2x16xf32, #tpu.memory_space<vmem>>, vector<1x2x16xf32>,
    %c6_i32 = arith.constant 6 : i32
    %cst_71 = arith.constant dense<0.000000e+00> : vector<2x96xf32>
    %264 = tpu.matmul %252, %3, %cst_71 {dimension_numbers = #tpu.dot_dimension_numbers<[1], [0], [0], [1], [0, 0, 1, 1], [], []>} : vector<2x32xf32>, vector<32x96xf32>, vector<2x96xf32> -> vector<2x96xf32>
    %265 = vector.broadcast %4 : vector<1x96xf32> to vector<2x96xf32>
    %266 = arith.addf %264, %265 : vector<2x96xf32>
    %267 = arith.index_cast %c6_i32 : i32 to index
    %c0_72 = arith.constant 0 : index
    %c0_73 = arith.constant 0 : index
    %268 = vector.load %arg1[%267, %c0_72, %c0_73] : memref<8x2x96xf32, #tpu.memory_space<vmem>>, vector<1x2x96xf32>
    %269 = vector.shape_cast %268 : vector<1x2x96xf32> to vector<2x96xf32>
    %270 = vector.extract_strided_slice %269 {offsets = [0, 0], sizes = [2, 32], strides = [1, 1]} : vector<2x96xf32> to vector<2x32xf32>
    %271 = vector.extract_strided_slice %266 {offsets = [0, 0], sizes = [2, 32], strides = [1, 1]} : vector<2x96xf32> to vector<2x32xf32>
    %272 = arith.addf %270, %271 : vector<2x32xf32>
    %273 = arith.negf %272 : vector<2x32xf32>
    %274 = math.exp %273 : vector<2x32xf32>
    %cst_74 = arith.constant 1.000000e+00 : f32
    %275 = vector.broadcast %cst_74 : f32 to vector<2x32xf32>
    %276 = arith.addf %275, %274 : vector<2x32xf32>
    %277 = arith.divf %275, %276 : vector<2x32xf32>
    %278 = vector.extract_strided_slice %269 {offsets = [0, 32], sizes = [2, 32], strides = [1, 1]} : vector<2x96xf32> to vector<2x32xf32>
    %279 = vector.extract_strided_slice %266 {offsets = [0, 32], sizes = [2, 32], strides = [1, 1]} : vector<2x96xf32> to vector<2x32xf32>
    %280 = arith.addf %278, %279 : vector<2x32xf32>
    %281 = arith.negf %280 : vector<2x32xf32>
    %282 = math.exp %281 : vector<2x32xf32>
    %cst_75 = arith.constant 1.000000e+00 : f32
    %283 = vector.broadcast %cst_75 : f32 to vector<2x32xf32>
    %284 = arith.addf %283, %282 : vector<2x32xf32>
    %285 = arith.divf %283, %284 : vector<2x32xf32>
    %286 = vector.extract_strided_slice %269 {offsets = [0, 64], sizes = [2, 32], strides = [1, 1]} : vector<2x96xf32> to vector<2x32xf32>
    %287 = vector.extract_strided_slice %266 {offsets = [0, 64], sizes = [2, 32], strides = [1, 1]} : vector<2x96xf32> to vector<2x32xf32>
    %288 = arith.mulf %277, %287 : vector<2x32xf32>
    %289 = arith.addf %286, %288 : vector<2x32xf32>
    %290 = math.tanh %289 : vector<2x32xf32>
    %cst_76 = arith.constant 1.000000e+00 : f32
    %291 = vector.broadcast %cst_76 : f32 to vector<2x32xf32>
    %292 = arith.subf %291, %285 : vector<2x32xf32>
    %293 = arith.mulf %292, %290 : vector<2x32xf32>
    %294 = arith.mulf %285, %252 : vector<2x32xf32>
    %295 = arith.addf %293, %294 : vector<2x32xf32>
    %296 = vector.extract_strided_slice %295 {offsets = [0, 0], sizes = [2, 16], strides = [1, 1]} : vector<2x32xf32> to vector<2x16xf32>
    %297 = arith.index_cast %c6_i32 : i32 to index
    %c0_77 = arith.constant 0 : index
    %c0_78 = arith.constant 0 : index
    %298 = vector.load %arg21[%297, %c0_77, %c0_78] : memref<8x2x16xf32, #tpu.memory_space<vmem>>, vector<1x2x16xf32>
    %299 = vector.shape_cast %298 : vector<1x2x16xf32> to vector<2x16xf32>
    %300 = vector.shape_cast %296 : vector<2x16xf32> to vector<1x2x16xf32>
    tpu.vector_store %arg21[%297, %c0_77, %c0_78], %300 {strides = array<i32>} : memref<8x2x16xf32, #tpu.memory_space<vmem>>, vector<1x2x16xf32>,
    %301 = vector.extract_strided_slice %295 {offsets = [0, 16], sizes = [2, 16], strides = [1, 1]} : vector<2x32xf32> to vector<2x16xf32>
    %c7_i32_79 = arith.constant 7 : i32
    %302 = arith.subi %c7_i32_79, %c6_i32 : i32
    %303 = arith.index_cast %302 : i32 to index
    %c0_80 = arith.constant 0 : index
    %c0_81 = arith.constant 0 : index
    %304 = vector.load %arg22[%303, %c0_80, %c0_81] : memref<8x2x16xf32, #tpu.memory_space<vmem>>, vector<1x2x16xf32>
    %305 = vector.shape_cast %304 : vector<1x2x16xf32> to vector<2x16xf32>
    %306 = vector.shape_cast %301 : vector<2x16xf32> to vector<1x2x16xf32>
    tpu.vector_store %arg22[%303, %c0_80, %c0_81], %306 {strides = array<i32>} : memref<8x2x16xf32, #tpu.memory_space<vmem>>, vector<1x2x16xf32>,
    %c7_i32_82 = arith.constant 7 : i32
    %cst_83 = arith.constant dense<0.000000e+00> : vector<2x96xf32>
    %307 = tpu.matmul %295, %3, %cst_83 {dimension_numbers = #tpu.dot_dimension_numbers<[1], [0], [0], [1], [0, 0, 1, 1], [], []>} : vector<2x32xf32>, vector<32x96xf32>, vector<2x96xf32> -> vector<2x96xf32>
    %308 = vector.broadcast %4 : vector<1x96xf32> to vector<2x96xf32>
    %309 = arith.addf %307, %308 : vector<2x96xf32>
    %310 = arith.index_cast %c7_i32_82 : i32 to index
    %c0_84 = arith.constant 0 : index
    %c0_85 = arith.constant 0 : index
    %311 = vector.load %arg1[%310, %c0_84, %c0_85] : memref<8x2x96xf32, #tpu.memory_space<vmem>>, vector<1x2x96xf32>
    %312 = vector.shape_cast %311 : vector<1x2x96xf32> to vector<2x96xf32>
    %313 = vector.extract_strided_slice %312 {offsets = [0, 0], sizes = [2, 32], strides = [1, 1]} : vector<2x96xf32> to vector<2x32xf32>
    %314 = vector.extract_strided_slice %309 {offsets = [0, 0], sizes = [2, 32], strides = [1, 1]} : vector<2x96xf32> to vector<2x32xf32>
    %315 = arith.addf %313, %314 : vector<2x32xf32>
    %316 = arith.negf %315 : vector<2x32xf32>
    %317 = math.exp %316 : vector<2x32xf32>
    %cst_86 = arith.constant 1.000000e+00 : f32
    %318 = vector.broadcast %cst_86 : f32 to vector<2x32xf32>
    %319 = arith.addf %318, %317 : vector<2x32xf32>
    %320 = arith.divf %318, %319 : vector<2x32xf32>
    %321 = vector.extract_strided_slice %312 {offsets = [0, 32], sizes = [2, 32], strides = [1, 1]} : vector<2x96xf32> to vector<2x32xf32>
    %322 = vector.extract_strided_slice %309 {offsets = [0, 32], sizes = [2, 32], strides = [1, 1]} : vector<2x96xf32> to vector<2x32xf32>
    %323 = arith.addf %321, %322 : vector<2x32xf32>
    %324 = arith.negf %323 : vector<2x32xf32>
    %325 = math.exp %324 : vector<2x32xf32>
    %cst_87 = arith.constant 1.000000e+00 : f32
    %326 = vector.broadcast %cst_87 : f32 to vector<2x32xf32>
    %327 = arith.addf %326, %325 : vector<2x32xf32>
    %328 = arith.divf %326, %327 : vector<2x32xf32>
    %329 = vector.extract_strided_slice %312 {offsets = [0, 64], sizes = [2, 32], strides = [1, 1]} : vector<2x96xf32> to vector<2x32xf32>
    %330 = vector.extract_strided_slice %309 {offsets = [0, 64], sizes = [2, 32], strides = [1, 1]} : vector<2x96xf32> to vector<2x32xf32>
    %331 = arith.mulf %320, %330 : vector<2x32xf32>
    %332 = arith.addf %329, %331 : vector<2x32xf32>
    %333 = math.tanh %332 : vector<2x32xf32>
    %cst_88 = arith.constant 1.000000e+00 : f32
    %334 = vector.broadcast %cst_88 : f32 to vector<2x32xf32>
    %335 = arith.subf %334, %328 : vector<2x32xf32>
    %336 = arith.mulf %335, %333 : vector<2x32xf32>
    %337 = arith.mulf %328, %295 : vector<2x32xf32>
    %338 = arith.addf %336, %337 : vector<2x32xf32>
    %339 = vector.extract_strided_slice %338 {offsets = [0, 0], sizes = [2, 16], strides = [1, 1]} : vector<2x32xf32> to vector<2x16xf32>
    %340 = arith.index_cast %c7_i32_82 : i32 to index
    %c0_89 = arith.constant 0 : index
    %c0_90 = arith.constant 0 : index
    %341 = vector.load %arg21[%340, %c0_89, %c0_90] : memref<8x2x16xf32, #tpu.memory_space<vmem>>, vector<1x2x16xf32>
    %342 = vector.shape_cast %341 : vector<1x2x16xf32> to vector<2x16xf32>
    %343 = vector.shape_cast %339 : vector<2x16xf32> to vector<1x2x16xf32>
    tpu.vector_store %arg21[%340, %c0_89, %c0_90], %343 {strides = array<i32>} : memref<8x2x16xf32, #tpu.memory_space<vmem>>, vector<1x2x16xf32>,
    %344 = vector.extract_strided_slice %338 {offsets = [0, 16], sizes = [2, 16], strides = [1, 1]} : vector<2x32xf32> to vector<2x16xf32>
    %c7_i32_91 = arith.constant 7 : i32
    %345 = arith.subi %c7_i32_91, %c7_i32_82 : i32
    %346 = arith.index_cast %345 : i32 to index
    %c0_92 = arith.constant 0 : index
    %c0_93 = arith.constant 0 : index
    %347 = vector.load %arg22[%346, %c0_92, %c0_93] : memref<8x2x16xf32, #tpu.memory_space<vmem>>, vector<1x2x16xf32>
    %348 = vector.shape_cast %347 : vector<1x2x16xf32> to vector<2x16xf32>
    %349 = vector.shape_cast %344 : vector<2x16xf32> to vector<1x2x16xf32>
    tpu.vector_store %arg22[%346, %c0_92, %c0_93], %349 {strides = array<i32>} : memref<8x2x16xf32, #tpu.memory_space<vmem>>, vector<1x2x16xf32>,
    %c8_i32 = arith.constant 8 : i32
    %c0_94 = arith.constant 0 : index
    %c0_95 = arith.constant 0 : index
    %350 = vector.load %arg20[%c0_94, %c0_95] : memref<2x32xf32, #tpu.memory_space<vmem>>, vector<2x32xf32>
    tpu.vector_store %arg20[%c0_94, %c0_95], %338 {strides = array<i32>} : memref<2x32xf32, #tpu.memory_space<vmem>>, vector<2x32xf32>,
    %c0_96 = arith.constant 0 : index
    %c0_97 = arith.constant 0 : index
    %c0_98 = arith.constant 0 : index
    %351 = vector.load %arg21[%c0_96, %c0_97, %c0_98] : memref<8x2x16xf32, #tpu.memory_space<vmem>>, vector<8x2x16xf32>
    %c0_99 = arith.constant 0 : index
    %c0_100 = arith.constant 0 : index
    %c0_101 = arith.constant 0 : index
    %352 = vector.load %arg22[%c0_99, %c0_100, %c0_101] : memref<8x2x16xf32, #tpu.memory_space<vmem>>, vector<8x2x16xf32>
    %c0_102 = arith.constant 0 : index
    %c0_103 = arith.constant 0 : index
    %353 = vector.load %arg4[%c0_102, %c0_103] : memref<1x16xf32, #tpu.memory_space<vmem>>, vector<1x16xf32>
    %354 = vector.shape_cast %353 : vector<1x16xf32> to vector<1x1x16xf32>
    %355 = vector.broadcast %354 : vector<1x1x16xf32> to vector<8x2x16xf32>
    %356 = arith.mulf %351, %355 : vector<8x2x16xf32>
    %cst_104 = arith.constant dense<0.000000e+00> : vector<8x2xf32>
    %357 = vector.multi_reduction <add>, %356, %cst_104 [2] : vector<8x2x16xf32> to vector<8x2xf32>
    %358 = vector.shape_cast %357 : vector<8x2xf32> to vector<8x2x1xf32>
    %c0_105 = arith.constant 0 : index
    %c0_106 = arith.constant 0 : index
    %359 = vector.load %arg5[%c0_105, %c0_106] : memref<1x16xf32, #tpu.memory_space<vmem>>, vector<1x16xf32>
    %360 = vector.shape_cast %359 : vector<1x16xf32> to vector<1x1x16xf32>
    %361 = vector.broadcast %360 : vector<1x1x16xf32> to vector<8x2x16xf32>
    %362 = arith.mulf %352, %361 : vector<8x2x16xf32>
    %cst_107 = arith.constant dense<0.000000e+00> : vector<8x2xf32>
    %363 = vector.multi_reduction <add>, %362, %cst_107 [2] : vector<8x2x16xf32> to vector<8x2xf32>
    %364 = vector.shape_cast %363 : vector<8x2xf32> to vector<8x2x1xf32>
    %365 = arith.addf %358, %364 : vector<8x2x1xf32>
    %cst_108 = arith.constant 0.000000e+00 : f32
    %366 = vector.broadcast %cst_108 : f32 to vector<8x2x1xf32>
    %367 = arith.maximumf %365, %366 : vector<8x2x1xf32>
    %cst_109 = arith.constant dense<0xFF800000> : vector<2x1xf32>
    %368 = vector.multi_reduction <maximumf>, %367, %cst_109 [0] : vector<8x2x1xf32> to vector<2x1xf32>
    %369 = vector.shape_cast %368 : vector<2x1xf32> to vector<1x2x1xf32>
    %370 = vector.broadcast %369 : vector<1x2x1xf32> to vector<8x2x1xf32>
    %371 = arith.subf %367, %370 : vector<8x2x1xf32>
    %372 = math.exp %371 : vector<8x2x1xf32>
    %cst_110 = arith.constant dense<0.000000e+00> : vector<2x1xf32>
    %373 = vector.multi_reduction <add>, %372, %cst_110 [0] : vector<8x2x1xf32> to vector<2x1xf32>
    %374 = vector.shape_cast %373 : vector<2x1xf32> to vector<1x2x1xf32>
    %375 = vector.broadcast %374 : vector<1x2x1xf32> to vector<8x2x1xf32>
    %376 = arith.divf %372, %375 : vector<8x2x1xf32>
    %377 = vector.broadcast %376 : vector<8x2x1xf32> to vector<8x2x16xf32>
    %378 = arith.mulf %351, %377 : vector<8x2x16xf32>
    %cst_111 = arith.constant dense<0.000000e+00> : vector<2x16xf32>
    %379 = vector.multi_reduction <add>, %378, %cst_111 [0] : vector<8x2x16xf32> to vector<2x16xf32>
    %380 = vector.broadcast %376 : vector<8x2x1xf32> to vector<8x2x16xf32>
    %381 = arith.mulf %352, %380 : vector<8x2x16xf32>
    %cst_112 = arith.constant dense<0.000000e+00> : vector<2x16xf32>
    %382 = vector.multi_reduction <add>, %381, %cst_112 [0] : vector<8x2x16xf32> to vector<2x16xf32>
    %383 = tpu.concatenate %379, %382 in 1 : vector<2x16xf32>, vector<2x16xf32> -> vector<2x32xf32>
    %384 = arith.index_cast %arg0 : i32 to index
    %c0_113 = arith.constant 0 : index
    %c0_114 = arith.constant 0 : index
    %385 = vector.load %arg23[%384, %c0_113, %c0_114] : memref<3x2x32xf32, #tpu.memory_space<vmem>>, vector<1x2x32xf32>
    %386 = vector.shape_cast %385 : vector<1x2x32xf32> to vector<2x32xf32>
    %387 = vector.shape_cast %383 : vector<2x32xf32> to vector<1x2x32xf32>
    tpu.vector_store %arg23[%384, %c0_113, %c0_114], %387 {strides = array<i32>} : memref<3x2x32xf32, #tpu.memory_space<vmem>>, vector<1x2x32xf32>,
    %c2_i32_115 = arith.constant 2 : i32
    %388 = arith.cmpi eq, %arg0, %c2_i32_115 : i32
    %389 = arith.extui %388 : i1 to i32
    %c0_i32_116 = arith.constant 0 : i32
    %390 = arith.cmpi ne, %389, %c0_i32_116 : i32
    scf.if %390 {
      %c0_117 = arith.constant 0 : index
      %c0_118 = arith.constant 0 : index
      %391 = vector.load %arg9[%c0_117, %c0_118] : memref<32x96xf32, #tpu.memory_space<vmem>>, vector<32x96xf32>
      %c0_119 = arith.constant 0 : index
      %c0_120 = arith.constant 0 : index
      %392 = vector.load %arg10[%c0_119, %c0_120] : memref<1x96xf32, #tpu.memory_space<vmem>>, vector<1x96xf32>
      %c0_121 = arith.constant 0 : index
      %c0_122 = arith.constant 0 : index
      %393 = vector.load %arg8[%c0_121, %c0_122] : memref<1x96xf32, #tpu.memory_space<vmem>>, vector<1x96xf32>
      %c0_123 = arith.constant 0 : index
      %c0_124 = arith.constant 0 : index
      %394 = vector.load %arg6[%c0_123, %c0_124] : memref<32x96xf32, #tpu.memory_space<vmem>>, vector<32x96xf32>
      %c0_125 = arith.constant 0 : index
      %c0_126 = arith.constant 0 : index
      %395 = vector.load %arg7[%c0_125, %c0_126] : memref<32x96xf32, #tpu.memory_space<vmem>>, vector<32x96xf32>
      %cst_127 = arith.constant 0.000000e+00 : f32
      %396 = vector.broadcast %cst_127 : f32 to vector<2x32xf32>
      %c0_i32_128 = arith.constant 0 : i32
      %c2_i32_129 = arith.constant 2 : i32
      %397 = arith.subi %c2_i32_129, %c0_i32_128 : i32
      %398 = arith.index_cast %c0_i32_128 : i32 to index
      %c0_130 = arith.constant 0 : index
      %c0_131 = arith.constant 0 : index
      %399 = vector.load %arg23[%398, %c0_130, %c0_131] : memref<3x2x32xf32, #tpu.memory_space<vmem>>, vector<1x2x32xf32>
      %400 = vector.shape_cast %399 : vector<1x2x32xf32> to vector<2x32xf32>
      %cst_132 = arith.constant dense<0.000000e+00> : vector<2x96xf32>
      %401 = tpu.matmul %400, %394, %cst_132 {dimension_numbers = #tpu.dot_dimension_numbers<[1], [0], [0], [1], [0, 0, 1, 1], [], []>} : vector<2x32xf32>, vector<32x96xf32>, vector<2x96xf32> -> vector<2x96xf32>
      %402 = arith.index_cast %397 : i32 to index
      %c0_133 = arith.constant 0 : index
      %c0_134 = arith.constant 0 : index
      %403 = vector.load %arg23[%402, %c0_133, %c0_134] : memref<3x2x32xf32, #tpu.memory_space<vmem>>, vector<1x2x32xf32>
      %404 = vector.shape_cast %403 : vector<1x2x32xf32> to vector<2x32xf32>
      %cst_135 = arith.constant dense<0.000000e+00> : vector<2x96xf32>
      %405 = tpu.matmul %404, %395, %cst_135 {dimension_numbers = #tpu.dot_dimension_numbers<[1], [0], [0], [1], [0, 0, 1, 1], [], []>} : vector<2x32xf32>, vector<32x96xf32>, vector<2x96xf32> -> vector<2x96xf32>
      %406 = arith.addf %401, %405 : vector<2x96xf32>
      %407 = vector.broadcast %393 : vector<1x96xf32> to vector<2x96xf32>
      %408 = arith.addf %406, %407 : vector<2x96xf32>
      %cst_136 = arith.constant dense<0.000000e+00> : vector<2x96xf32>
      %409 = tpu.matmul %396, %391, %cst_136 {dimension_numbers = #tpu.dot_dimension_numbers<[1], [0], [0], [1], [0, 0, 1, 1], [], []>} : vector<2x32xf32>, vector<32x96xf32>, vector<2x96xf32> -> vector<2x96xf32>
      %410 = vector.broadcast %392 : vector<1x96xf32> to vector<2x96xf32>
      %411 = arith.addf %409, %410 : vector<2x96xf32>
      %412 = vector.extract_strided_slice %408 {offsets = [0, 0], sizes = [2, 32], strides = [1, 1]} : vector<2x96xf32> to vector<2x32xf32>
      %413 = vector.extract_strided_slice %411 {offsets = [0, 0], sizes = [2, 32], strides = [1, 1]} : vector<2x96xf32> to vector<2x32xf32>
      %414 = arith.addf %412, %413 : vector<2x32xf32>
      %415 = arith.negf %414 : vector<2x32xf32>
      %416 = math.exp %415 : vector<2x32xf32>
      %cst_137 = arith.constant 1.000000e+00 : f32
      %417 = vector.broadcast %cst_137 : f32 to vector<2x32xf32>
      %418 = arith.addf %417, %416 : vector<2x32xf32>
      %419 = arith.divf %417, %418 : vector<2x32xf32>
      %420 = vector.extract_strided_slice %408 {offsets = [0, 32], sizes = [2, 32], strides = [1, 1]} : vector<2x96xf32> to vector<2x32xf32>
      %421 = vector.extract_strided_slice %411 {offsets = [0, 32], sizes = [2, 32], strides = [1, 1]} : vector<2x96xf32> to vector<2x32xf32>
      %422 = arith.addf %420, %421 : vector<2x32xf32>
      %423 = arith.negf %422 : vector<2x32xf32>
      %424 = math.exp %423 : vector<2x32xf32>
      %cst_138 = arith.constant 1.000000e+00 : f32
      %425 = vector.broadcast %cst_138 : f32 to vector<2x32xf32>
      %426 = arith.addf %425, %424 : vector<2x32xf32>
      %427 = arith.divf %425, %426 : vector<2x32xf32>
      %428 = vector.extract_strided_slice %408 {offsets = [0, 64], sizes = [2, 32], strides = [1, 1]} : vector<2x96xf32> to vector<2x32xf32>
      %429 = vector.extract_strided_slice %411 {offsets = [0, 64], sizes = [2, 32], strides = [1, 1]} : vector<2x96xf32> to vector<2x32xf32>
      %430 = arith.mulf %419, %429 : vector<2x32xf32>
      %431 = arith.addf %428, %430 : vector<2x32xf32>
      %432 = math.tanh %431 : vector<2x32xf32>
      %cst_139 = arith.constant 1.000000e+00 : f32
      %433 = vector.broadcast %cst_139 : f32 to vector<2x32xf32>
      %434 = arith.subf %433, %427 : vector<2x32xf32>
      %435 = arith.mulf %434, %432 : vector<2x32xf32>
      %436 = arith.mulf %427, %396 : vector<2x32xf32>
      %437 = arith.addf %435, %436 : vector<2x32xf32>
      %438 = vector.extract_strided_slice %437 {offsets = [0, 0], sizes = [2, 16], strides = [1, 1]} : vector<2x32xf32> to vector<2x16xf32>
      %439 = arith.index_cast %c0_i32_128 : i32 to index
      %c0_140 = arith.constant 0 : index
      %c0_141 = arith.constant 0 : index
      %440 = vector.load %arg24[%439, %c0_140, %c0_141] : memref<3x2x16xf32, #tpu.memory_space<vmem>>, vector<1x2x16xf32>
      %441 = vector.shape_cast %440 : vector<1x2x16xf32> to vector<2x16xf32>
      %442 = vector.shape_cast %438 : vector<2x16xf32> to vector<1x2x16xf32>
      tpu.vector_store %arg24[%439, %c0_140, %c0_141], %442 {strides = array<i32>} : memref<3x2x16xf32, #tpu.memory_space<vmem>>, vector<1x2x16xf32>,
      %443 = vector.extract_strided_slice %437 {offsets = [0, 16], sizes = [2, 16], strides = [1, 1]} : vector<2x32xf32> to vector<2x16xf32>
      %444 = arith.index_cast %397 : i32 to index
      %c0_142 = arith.constant 0 : index
      %c0_143 = arith.constant 0 : index
      %445 = vector.load %arg25[%444, %c0_142, %c0_143] : memref<3x2x16xf32, #tpu.memory_space<vmem>>, vector<1x2x16xf32>
      %446 = vector.shape_cast %445 : vector<1x2x16xf32> to vector<2x16xf32>
      %447 = vector.shape_cast %443 : vector<2x16xf32> to vector<1x2x16xf32>
      tpu.vector_store %arg25[%444, %c0_142, %c0_143], %447 {strides = array<i32>} : memref<3x2x16xf32, #tpu.memory_space<vmem>>, vector<1x2x16xf32>,
      %c1_i32_144 = arith.constant 1 : i32
      %c2_i32_145 = arith.constant 2 : i32
      %448 = arith.subi %c2_i32_145, %c1_i32_144 : i32
      %449 = arith.index_cast %c1_i32_144 : i32 to index
      %c0_146 = arith.constant 0 : index
      %c0_147 = arith.constant 0 : index
      %450 = vector.load %arg23[%449, %c0_146, %c0_147] : memref<3x2x32xf32, #tpu.memory_space<vmem>>, vector<1x2x32xf32>
      %451 = vector.shape_cast %450 : vector<1x2x32xf32> to vector<2x32xf32>
      %cst_148 = arith.constant dense<0.000000e+00> : vector<2x96xf32>
      %452 = tpu.matmul %451, %394, %cst_148 {dimension_numbers = #tpu.dot_dimension_numbers<[1], [0], [0], [1], [0, 0, 1, 1], [], []>} : vector<2x32xf32>, vector<32x96xf32>, vector<2x96xf32> -> vector<2x96xf32>
      %453 = arith.index_cast %448 : i32 to index
      %c0_149 = arith.constant 0 : index
      %c0_150 = arith.constant 0 : index
      %454 = vector.load %arg23[%453, %c0_149, %c0_150] : memref<3x2x32xf32, #tpu.memory_space<vmem>>, vector<1x2x32xf32>
      %455 = vector.shape_cast %454 : vector<1x2x32xf32> to vector<2x32xf32>
      %cst_151 = arith.constant dense<0.000000e+00> : vector<2x96xf32>
      %456 = tpu.matmul %455, %395, %cst_151 {dimension_numbers = #tpu.dot_dimension_numbers<[1], [0], [0], [1], [0, 0, 1, 1], [], []>} : vector<2x32xf32>, vector<32x96xf32>, vector<2x96xf32> -> vector<2x96xf32>
      %457 = arith.addf %452, %456 : vector<2x96xf32>
      %458 = vector.broadcast %393 : vector<1x96xf32> to vector<2x96xf32>
      %459 = arith.addf %457, %458 : vector<2x96xf32>
      %cst_152 = arith.constant dense<0.000000e+00> : vector<2x96xf32>
      %460 = tpu.matmul %437, %391, %cst_152 {dimension_numbers = #tpu.dot_dimension_numbers<[1], [0], [0], [1], [0, 0, 1, 1], [], []>} : vector<2x32xf32>, vector<32x96xf32>, vector<2x96xf32> -> vector<2x96xf32>
      %461 = vector.broadcast %392 : vector<1x96xf32> to vector<2x96xf32>
      %462 = arith.addf %460, %461 : vector<2x96xf32>
      %463 = vector.extract_strided_slice %459 {offsets = [0, 0], sizes = [2, 32], strides = [1, 1]} : vector<2x96xf32> to vector<2x32xf32>
      %464 = vector.extract_strided_slice %462 {offsets = [0, 0], sizes = [2, 32], strides = [1, 1]} : vector<2x96xf32> to vector<2x32xf32>
      %465 = arith.addf %463, %464 : vector<2x32xf32>
      %466 = arith.negf %465 : vector<2x32xf32>
      %467 = math.exp %466 : vector<2x32xf32>
      %cst_153 = arith.constant 1.000000e+00 : f32
      %468 = vector.broadcast %cst_153 : f32 to vector<2x32xf32>
      %469 = arith.addf %468, %467 : vector<2x32xf32>
      %470 = arith.divf %468, %469 : vector<2x32xf32>
      %471 = vector.extract_strided_slice %459 {offsets = [0, 32], sizes = [2, 32], strides = [1, 1]} : vector<2x96xf32> to vector<2x32xf32>
      %472 = vector.extract_strided_slice %462 {offsets = [0, 32], sizes = [2, 32], strides = [1, 1]} : vector<2x96xf32> to vector<2x32xf32>
      %473 = arith.addf %471, %472 : vector<2x32xf32>
      %474 = arith.negf %473 : vector<2x32xf32>
      %475 = math.exp %474 : vector<2x32xf32>
      %cst_154 = arith.constant 1.000000e+00 : f32
      %476 = vector.broadcast %cst_154 : f32 to vector<2x32xf32>
      %477 = arith.addf %476, %475 : vector<2x32xf32>
      %478 = arith.divf %476, %477 : vector<2x32xf32>
      %479 = vector.extract_strided_slice %459 {offsets = [0, 64], sizes = [2, 32], strides = [1, 1]} : vector<2x96xf32> to vector<2x32xf32>
      %480 = vector.extract_strided_slice %462 {offsets = [0, 64], sizes = [2, 32], strides = [1, 1]} : vector<2x96xf32> to vector<2x32xf32>
      %481 = arith.mulf %470, %480 : vector<2x32xf32>
      %482 = arith.addf %479, %481 : vector<2x32xf32>
      %483 = math.tanh %482 : vector<2x32xf32>
      %cst_155 = arith.constant 1.000000e+00 : f32
      %484 = vector.broadcast %cst_155 : f32 to vector<2x32xf32>
      %485 = arith.subf %484, %478 : vector<2x32xf32>
      %486 = arith.mulf %485, %483 : vector<2x32xf32>
      %487 = arith.mulf %478, %437 : vector<2x32xf32>
      %488 = arith.addf %486, %487 : vector<2x32xf32>
      %489 = vector.extract_strided_slice %488 {offsets = [0, 0], sizes = [2, 16], strides = [1, 1]} : vector<2x32xf32> to vector<2x16xf32>
      %490 = arith.index_cast %c1_i32_144 : i32 to index
      %c0_156 = arith.constant 0 : index
      %c0_157 = arith.constant 0 : index
      %491 = vector.load %arg24[%490, %c0_156, %c0_157] : memref<3x2x16xf32, #tpu.memory_space<vmem>>, vector<1x2x16xf32>
      %492 = vector.shape_cast %491 : vector<1x2x16xf32> to vector<2x16xf32>
      %493 = vector.shape_cast %489 : vector<2x16xf32> to vector<1x2x16xf32>
      tpu.vector_store %arg24[%490, %c0_156, %c0_157], %493 {strides = array<i32>} : memref<3x2x16xf32, #tpu.memory_space<vmem>>, vector<1x2x16xf32>,
      %494 = vector.extract_strided_slice %488 {offsets = [0, 16], sizes = [2, 16], strides = [1, 1]} : vector<2x32xf32> to vector<2x16xf32>
      %495 = arith.index_cast %448 : i32 to index
      %c0_158 = arith.constant 0 : index
      %c0_159 = arith.constant 0 : index
      %496 = vector.load %arg25[%495, %c0_158, %c0_159] : memref<3x2x16xf32, #tpu.memory_space<vmem>>, vector<1x2x16xf32>
      %497 = vector.shape_cast %496 : vector<1x2x16xf32> to vector<2x16xf32>
      %498 = vector.shape_cast %494 : vector<2x16xf32> to vector<1x2x16xf32>
      tpu.vector_store %arg25[%495, %c0_158, %c0_159], %498 {strides = array<i32>} : memref<3x2x16xf32, #tpu.memory_space<vmem>>, vector<1x2x16xf32>,
      %c2_i32_160 = arith.constant 2 : i32
      %c2_i32_161 = arith.constant 2 : i32
      %499 = arith.subi %c2_i32_161, %c2_i32_160 : i32
      %500 = arith.index_cast %c2_i32_160 : i32 to index
      %c0_162 = arith.constant 0 : index
      %c0_163 = arith.constant 0 : index
      %501 = vector.load %arg23[%500, %c0_162, %c0_163] : memref<3x2x32xf32, #tpu.memory_space<vmem>>, vector<1x2x32xf32>
      %502 = vector.shape_cast %501 : vector<1x2x32xf32> to vector<2x32xf32>
      %cst_164 = arith.constant dense<0.000000e+00> : vector<2x96xf32>
      %503 = tpu.matmul %502, %394, %cst_164 {dimension_numbers = #tpu.dot_dimension_numbers<[1], [0], [0], [1], [0, 0, 1, 1], [], []>} : vector<2x32xf32>, vector<32x96xf32>, vector<2x96xf32> -> vector<2x96xf32>
      %504 = arith.index_cast %499 : i32 to index
      %c0_165 = arith.constant 0 : index
      %c0_166 = arith.constant 0 : index
      %505 = vector.load %arg23[%504, %c0_165, %c0_166] : memref<3x2x32xf32, #tpu.memory_space<vmem>>, vector<1x2x32xf32>
      %506 = vector.shape_cast %505 : vector<1x2x32xf32> to vector<2x32xf32>
      %cst_167 = arith.constant dense<0.000000e+00> : vector<2x96xf32>
      %507 = tpu.matmul %506, %395, %cst_167 {dimension_numbers = #tpu.dot_dimension_numbers<[1], [0], [0], [1], [0, 0, 1, 1], [], []>} : vector<2x32xf32>, vector<32x96xf32>, vector<2x96xf32> -> vector<2x96xf32>
      %508 = arith.addf %503, %507 : vector<2x96xf32>
      %509 = vector.broadcast %393 : vector<1x96xf32> to vector<2x96xf32>
      %510 = arith.addf %508, %509 : vector<2x96xf32>
      %cst_168 = arith.constant dense<0.000000e+00> : vector<2x96xf32>
      %511 = tpu.matmul %488, %391, %cst_168 {dimension_numbers = #tpu.dot_dimension_numbers<[1], [0], [0], [1], [0, 0, 1, 1], [], []>} : vector<2x32xf32>, vector<32x96xf32>, vector<2x96xf32> -> vector<2x96xf32>
      %512 = vector.broadcast %392 : vector<1x96xf32> to vector<2x96xf32>
      %513 = arith.addf %511, %512 : vector<2x96xf32>
      %514 = vector.extract_strided_slice %510 {offsets = [0, 0], sizes = [2, 32], strides = [1, 1]} : vector<2x96xf32> to vector<2x32xf32>
      %515 = vector.extract_strided_slice %513 {offsets = [0, 0], sizes = [2, 32], strides = [1, 1]} : vector<2x96xf32> to vector<2x32xf32>
      %516 = arith.addf %514, %515 : vector<2x32xf32>
      %517 = arith.negf %516 : vector<2x32xf32>
      %518 = math.exp %517 : vector<2x32xf32>
      %cst_169 = arith.constant 1.000000e+00 : f32
      %519 = vector.broadcast %cst_169 : f32 to vector<2x32xf32>
      %520 = arith.addf %519, %518 : vector<2x32xf32>
      %521 = arith.divf %519, %520 : vector<2x32xf32>
      %522 = vector.extract_strided_slice %510 {offsets = [0, 32], sizes = [2, 32], strides = [1, 1]} : vector<2x96xf32> to vector<2x32xf32>
      %523 = vector.extract_strided_slice %513 {offsets = [0, 32], sizes = [2, 32], strides = [1, 1]} : vector<2x96xf32> to vector<2x32xf32>
      %524 = arith.addf %522, %523 : vector<2x32xf32>
      %525 = arith.negf %524 : vector<2x32xf32>
      %526 = math.exp %525 : vector<2x32xf32>
      %cst_170 = arith.constant 1.000000e+00 : f32
      %527 = vector.broadcast %cst_170 : f32 to vector<2x32xf32>
      %528 = arith.addf %527, %526 : vector<2x32xf32>
      %529 = arith.divf %527, %528 : vector<2x32xf32>
      %530 = vector.extract_strided_slice %510 {offsets = [0, 64], sizes = [2, 32], strides = [1, 1]} : vector<2x96xf32> to vector<2x32xf32>
      %531 = vector.extract_strided_slice %513 {offsets = [0, 64], sizes = [2, 32], strides = [1, 1]} : vector<2x96xf32> to vector<2x32xf32>
      %532 = arith.mulf %521, %531 : vector<2x32xf32>
      %533 = arith.addf %530, %532 : vector<2x32xf32>
      %534 = math.tanh %533 : vector<2x32xf32>
      %cst_171 = arith.constant 1.000000e+00 : f32
      %535 = vector.broadcast %cst_171 : f32 to vector<2x32xf32>
      %536 = arith.subf %535, %529 : vector<2x32xf32>
      %537 = arith.mulf %536, %534 : vector<2x32xf32>
      %538 = arith.mulf %529, %488 : vector<2x32xf32>
      %539 = arith.addf %537, %538 : vector<2x32xf32>
      %540 = vector.extract_strided_slice %539 {offsets = [0, 0], sizes = [2, 16], strides = [1, 1]} : vector<2x32xf32> to vector<2x16xf32>
      %541 = arith.index_cast %c2_i32_160 : i32 to index
      %c0_172 = arith.constant 0 : index
      %c0_173 = arith.constant 0 : index
      %542 = vector.load %arg24[%541, %c0_172, %c0_173] : memref<3x2x16xf32, #tpu.memory_space<vmem>>, vector<1x2x16xf32>
      %543 = vector.shape_cast %542 : vector<1x2x16xf32> to vector<2x16xf32>
      %544 = vector.shape_cast %540 : vector<2x16xf32> to vector<1x2x16xf32>
      tpu.vector_store %arg24[%541, %c0_172, %c0_173], %544 {strides = array<i32>} : memref<3x2x16xf32, #tpu.memory_space<vmem>>, vector<1x2x16xf32>,
      %545 = vector.extract_strided_slice %539 {offsets = [0, 16], sizes = [2, 16], strides = [1, 1]} : vector<2x32xf32> to vector<2x16xf32>
      %546 = arith.index_cast %499 : i32 to index
      %c0_174 = arith.constant 0 : index
      %c0_175 = arith.constant 0 : index
      %547 = vector.load %arg25[%546, %c0_174, %c0_175] : memref<3x2x16xf32, #tpu.memory_space<vmem>>, vector<1x2x16xf32>
      %548 = vector.shape_cast %547 : vector<1x2x16xf32> to vector<2x16xf32>
      %549 = vector.shape_cast %545 : vector<2x16xf32> to vector<1x2x16xf32>
      tpu.vector_store %arg25[%546, %c0_174, %c0_175], %549 {strides = array<i32>} : memref<3x2x16xf32, #tpu.memory_space<vmem>>, vector<1x2x16xf32>,
      %c3_i32_176 = arith.constant 3 : i32
      %c0_177 = arith.constant 0 : index
      %c0_178 = arith.constant 0 : index
      %c0_179 = arith.constant 0 : index
      %550 = vector.load %arg24[%c0_177, %c0_178, %c0_179] : memref<3x2x16xf32, #tpu.memory_space<vmem>>, vector<3x2x16xf32>
      %c0_180 = arith.constant 0 : index
      %c0_181 = arith.constant 0 : index
      %c0_182 = arith.constant 0 : index
      %551 = vector.load %arg25[%c0_180, %c0_181, %c0_182] : memref<3x2x16xf32, #tpu.memory_space<vmem>>, vector<3x2x16xf32>
      %c0_183 = arith.constant 0 : index
      %c0_184 = arith.constant 0 : index
      %552 = vector.load %arg11[%c0_183, %c0_184] : memref<1x16xf32, #tpu.memory_space<vmem>>, vector<1x16xf32>
      %553 = vector.shape_cast %552 : vector<1x16xf32> to vector<1x1x16xf32>
      %554 = vector.broadcast %553 : vector<1x1x16xf32> to vector<3x2x16xf32>
      %555 = arith.mulf %550, %554 : vector<3x2x16xf32>
      %cst_185 = arith.constant dense<0.000000e+00> : vector<3x2xf32>
      %556 = vector.multi_reduction <add>, %555, %cst_185 [2] : vector<3x2x16xf32> to vector<3x2xf32>
      %557 = vector.shape_cast %556 : vector<3x2xf32> to vector<3x2x1xf32>
      %c0_186 = arith.constant 0 : index
      %c0_187 = arith.constant 0 : index
      %558 = vector.load %arg12[%c0_186, %c0_187] : memref<1x16xf32, #tpu.memory_space<vmem>>, vector<1x16xf32>
      %559 = vector.shape_cast %558 : vector<1x16xf32> to vector<1x1x16xf32>
      %560 = vector.broadcast %559 : vector<1x1x16xf32> to vector<3x2x16xf32>
      %561 = arith.mulf %551, %560 : vector<3x2x16xf32>
      %cst_188 = arith.constant dense<0.000000e+00> : vector<3x2xf32>
      %562 = vector.multi_reduction <add>, %561, %cst_188 [2] : vector<3x2x16xf32> to vector<3x2xf32>
      %563 = vector.shape_cast %562 : vector<3x2xf32> to vector<3x2x1xf32>
      %564 = arith.addf %557, %563 : vector<3x2x1xf32>
      %cst_189 = arith.constant 0.000000e+00 : f32
      %565 = vector.broadcast %cst_189 : f32 to vector<3x2x1xf32>
      %566 = arith.maximumf %564, %565 : vector<3x2x1xf32>
      %cst_190 = arith.constant dense<0xFF800000> : vector<2x1xf32>
      %567 = vector.multi_reduction <maximumf>, %566, %cst_190 [0] : vector<3x2x1xf32> to vector<2x1xf32>
      %568 = vector.shape_cast %567 : vector<2x1xf32> to vector<1x2x1xf32>
      %569 = vector.broadcast %568 : vector<1x2x1xf32> to vector<3x2x1xf32>
      %570 = arith.subf %566, %569 : vector<3x2x1xf32>
      %571 = math.exp %570 : vector<3x2x1xf32>
      %cst_191 = arith.constant dense<0.000000e+00> : vector<2x1xf32>
      %572 = vector.multi_reduction <add>, %571, %cst_191 [0] : vector<3x2x1xf32> to vector<2x1xf32>
      %573 = vector.shape_cast %572 : vector<2x1xf32> to vector<1x2x1xf32>
      %574 = vector.broadcast %573 : vector<1x2x1xf32> to vector<3x2x1xf32>
      %575 = arith.divf %571, %574 : vector<3x2x1xf32>
      %c0_192 = arith.constant 0 : index
      %c0_193 = arith.constant 0 : index
      %c0_194 = arith.constant 0 : index
      %576 = vector.load %arg18[%c0_192, %c0_193, %c0_194] : memref<3x2x1xf32, #tpu.memory_space<vmem>>, vector<3x2x1xf32>
      tpu.vector_store %arg18[%c0_192, %c0_193, %c0_194], %575 {strides = array<i32>} : memref<3x2x1xf32, #tpu.memory_space<vmem>>, vector<3x2x1xf32>,
      %577 = vector.broadcast %575 : vector<3x2x1xf32> to vector<3x2x16xf32>
      %578 = arith.mulf %550, %577 : vector<3x2x16xf32>
      %cst_195 = arith.constant dense<0.000000e+00> : vector<2x16xf32>
      %579 = vector.multi_reduction <add>, %578, %cst_195 [0] : vector<3x2x16xf32> to vector<2x16xf32>
      %580 = vector.broadcast %575 : vector<3x2x1xf32> to vector<3x2x16xf32>
      %581 = arith.mulf %551, %580 : vector<3x2x16xf32>
      %cst_196 = arith.constant dense<0.000000e+00> : vector<2x16xf32>
      %582 = vector.multi_reduction <add>, %581, %cst_196 [0] : vector<3x2x16xf32> to vector<2x16xf32>
      %583 = tpu.concatenate %579, %582 in 1 : vector<2x16xf32>, vector<2x16xf32> -> vector<2x32xf32>
      %c0_197 = arith.constant 0 : index
      %c0_198 = arith.constant 0 : index
      %584 = vector.load %arg19[%c0_197, %c0_198] : memref<2x32xf32, #tpu.memory_space<vmem>>, vector<2x32xf32>
      tpu.vector_store %arg19[%c0_197, %c0_198], %583 {strides = array<i32>} : memref<2x32xf32, #tpu.memory_space<vmem>>, vector<2x32xf32>,
      %c0_199 = arith.constant 0 : index
      %c0_200 = arith.constant 0 : index
      %585 = vector.load %arg13[%c0_199, %c0_200] : memref<32x32xf32, #tpu.memory_space<vmem>>, vector<32x32xf32>
      %cst_201 = arith.constant dense<0.000000e+00> : vector<2x32xf32>
      %586 = tpu.matmul %583, %585, %cst_201 {dimension_numbers = #tpu.dot_dimension_numbers<[1], [0], [0], [1], [0, 0, 1, 1], [], []>} : vector<2x32xf32>, vector<32x32xf32>, vector<2x32xf32> -> vector<2x32xf32>
      %c0_202 = arith.constant 0 : index
      %c0_203 = arith.constant 0 : index
      %587 = vector.load %arg14[%c0_202, %c0_203] : memref<1x32xf32, #tpu.memory_space<vmem>>, vector<1x32xf32>
      %588 = vector.broadcast %587 : vector<1x32xf32> to vector<2x32xf32>
      %589 = arith.addf %586, %588 : vector<2x32xf32>
      %cst_204 = arith.constant 0.000000e+00 : f32
      %590 = vector.broadcast %cst_204 : f32 to vector<2x32xf32>
      %591 = arith.cmpf ogt, %589, %590 : vector<2x32xf32>
      %cst_205 = arith.constant 0.00999999977 : f32
      %592 = vector.broadcast %cst_205 : f32 to vector<2x32xf32>
      %593 = arith.mulf %592, %589 : vector<2x32xf32>
      %594 = arith.select %591, %589, %593 : vector<2x32xi1>, vector<2x32xf32>
      %c0_206 = arith.constant 0 : index
      %c0_207 = arith.constant 0 : index
      %595 = vector.load %arg15[%c0_206, %c0_207] : memref<32x2xf32, #tpu.memory_space<vmem>>, vector<32x2xf32>
      %cst_208 = arith.constant dense<0.000000e+00> : vector<2x2xf32>
      %596 = tpu.matmul %594, %595, %cst_208 {dimension_numbers = #tpu.dot_dimension_numbers<[1], [0], [0], [1], [0, 0, 1, 1], [], []>} : vector<2x32xf32>, vector<32x2xf32>, vector<2x2xf32> -> vector<2x2xf32>
      %c0_209 = arith.constant 0 : index
      %c0_210 = arith.constant 0 : index
      %597 = vector.load %arg16[%c0_209, %c0_210] : memref<1x2xf32, #tpu.memory_space<vmem>>, vector<1x2xf32>
      %598 = vector.broadcast %597 : vector<1x2xf32> to vector<2x2xf32>
      %599 = arith.addf %596, %598 : vector<2x2xf32>
      %cst_211 = arith.constant dense<0xFF800000> : vector<2xf32>
      %600 = vector.multi_reduction <maximumf>, %599, %cst_211 [1] : vector<2x2xf32> to vector<2xf32>
      %601 = vector.shape_cast %600 : vector<2xf32> to vector<2x1xf32>
      %602 = vector.broadcast %601 : vector<2x1xf32> to vector<2x2xf32>
      %603 = arith.subf %599, %602 : vector<2x2xf32>
      %604 = math.exp %603 : vector<2x2xf32>
      %cst_212 = arith.constant dense<0.000000e+00> : vector<2xf32>
      %605 = vector.multi_reduction <add>, %604, %cst_212 [1] : vector<2x2xf32> to vector<2xf32>
      %606 = vector.shape_cast %605 : vector<2xf32> to vector<2x1xf32>
      %607 = vector.broadcast %606 : vector<2x1xf32> to vector<2x2xf32>
      %608 = arith.divf %604, %607 : vector<2x2xf32>
      %c0_213 = arith.constant 0 : index
      %c0_214 = arith.constant 0 : index
      %609 = vector.load %arg17[%c0_213, %c0_214] : memref<2x2xf32, #tpu.memory_space<vmem>>, vector<2x2xf32>
      tpu.vector_store %arg17[%c0_213, %c0_214], %608 {strides = array<i32>} : memref<2x2xf32, #tpu.memory_space<vmem>>, vector<2x2xf32>,
    } else {
    }
    return
  }
  func.func @transform_0(%arg0: i32) -> (i32, i32, i32) {
    %c0_i32 = arith.constant 0 : i32
    %c0_i32_0 = arith.constant 0 : i32
    %c0_i32_1 = arith.constant 0 : i32
    return %arg0, %c0_i32, %c0_i32_0 : i32, i32, i32
  }
  func.func @transform_1(%arg0: i32) -> (i32, i32) {
    %c0_i32 = arith.constant 0 : i32
    %c0_i32_0 = arith.constant 0 : i32
    %c0_i32_1 = arith.constant 0 : i32
    return %c0_i32, %c0_i32_0 : i32, i32
  }
  func.func @transform_2(%arg0: i32) -> (i32, i32) {
    %c0_i32 = arith.constant 0 : i32
    %c0_i32_0 = arith.constant 0 : i32
    %c0_i32_1 = arith.constant 0 : i32
    return %c0_i32, %c0_i32_0 : i32, i32
  }
  func.func @transform_3(%arg0: i32) -> (i32, i32) {
    %c0_i32 = arith.constant 0 : i32
    %c0_i32_0 = arith.constant 0 : i32
    %c0_i32_1 = arith.constant 0 : i32
    return %c0_i32, %c0_i32_0 : i32, i32
  }
  func.func @transform_4(%arg0: i32) -> (i32, i32) {
    %c0_i32 = arith.constant 0 : i32
    %c0_i32_0 = arith.constant 0 : i32
    %c0_i32_1 = arith.constant 0 : i32
    return %c0_i32, %c0_i32_0 : i32, i32
  }
  func.func @transform_5(%arg0: i32) -> (i32, i32) {
    %c0_i32 = arith.constant 0 : i32
    %c0_i32_0 = arith.constant 0 : i32
    %c0_i32_1 = arith.constant 0 : i32
    return %c0_i32, %c0_i32_0 : i32, i32
  }
  func.func @transform_6(%arg0: i32) -> (i32, i32) {
    %c0_i32 = arith.constant 0 : i32
    %c0_i32_0 = arith.constant 0 : i32
    %c0_i32_1 = arith.constant 0 : i32
    return %c0_i32, %c0_i32_0 : i32, i32
  }
  func.func @transform_7(%arg0: i32) -> (i32, i32) {
    %c0_i32 = arith.constant 0 : i32
    %c0_i32_0 = arith.constant 0 : i32
    %c0_i32_1 = arith.constant 0 : i32
    return %c0_i32, %c0_i32_0 : i32, i32
  }
  func.func @transform_8(%arg0: i32) -> (i32, i32) {
    %c0_i32 = arith.constant 0 : i32
    %c0_i32_0 = arith.constant 0 : i32
    %c0_i32_1 = arith.constant 0 : i32
    return %c0_i32, %c0_i32_0 : i32, i32
  }
  func.func @transform_9(%arg0: i32) -> (i32, i32) {
    %c0_i32 = arith.constant 0 : i32
    %c0_i32_0 = arith.constant 0 : i32
    %c0_i32_1 = arith.constant 0 : i32
    return %c0_i32, %c0_i32_0 : i32, i32
  }
  func.func @transform_10(%arg0: i32) -> (i32, i32) {
    %c0_i32 = arith.constant 0 : i32
    %c0_i32_0 = arith.constant 0 : i32
    %c0_i32_1 = arith.constant 0 : i32
    return %c0_i32, %c0_i32_0 : i32, i32
  }
  func.func @transform_11(%arg0: i32) -> (i32, i32) {
    %c0_i32 = arith.constant 0 : i32
    %c0_i32_0 = arith.constant 0 : i32
    %c0_i32_1 = arith.constant 0 : i32
    return %c0_i32, %c0_i32_0 : i32, i32
  }
  func.func @transform_12(%arg0: i32) -> (i32, i32) {
    %c0_i32 = arith.constant 0 : i32
    %c0_i32_0 = arith.constant 0 : i32
    %c0_i32_1 = arith.constant 0 : i32
    return %c0_i32, %c0_i32_0 : i32, i32
  }
  func.func @transform_13(%arg0: i32) -> (i32, i32) {
    %c0_i32 = arith.constant 0 : i32
    %c0_i32_0 = arith.constant 0 : i32
    %c0_i32_1 = arith.constant 0 : i32
    return %c0_i32, %c0_i32_0 : i32, i32
  }
  func.func @transform_14(%arg0: i32) -> (i32, i32) {
    %c0_i32 = arith.constant 0 : i32
    %c0_i32_0 = arith.constant 0 : i32
    %c0_i32_1 = arith.constant 0 : i32
    return %c0_i32, %c0_i32_0 : i32, i32
  }
  func.func @transform_15(%arg0: i32) -> (i32, i32) {
    %c0_i32 = arith.constant 0 : i32
    %c0_i32_0 = arith.constant 0 : i32
    %c0_i32_1 = arith.constant 0 : i32
    return %c0_i32, %c0_i32_0 : i32, i32
  }
  func.func @transform_16(%arg0: i32) -> (i32, i32) {
    %c0_i32 = arith.constant 0 : i32
    %c0_i32_0 = arith.constant 0 : i32
    %c0_i32_1 = arith.constant 0 : i32
    return %c0_i32, %c0_i32_0 : i32, i32
  }
  func.func @transform_17(%arg0: i32) -> (i32, i32, i32) {
    %c0_i32 = arith.constant 0 : i32
    %c0_i32_0 = arith.constant 0 : i32
    %c0_i32_1 = arith.constant 0 : i32
    %c0_i32_2 = arith.constant 0 : i32
    return %c0_i32, %c0_i32_0, %c0_i32_1 : i32, i32, i32
  }
  func.func @transform_18(%arg0: i32) -> (i32, i32) {
    %c0_i32 = arith.constant 0 : i32
    %c0_i32_0 = arith.constant 0 : i32
    %c0_i32_1 = arith.constant 0 : i32
    return %c0_i32, %c0_i32_0 : i32, i32
  }
}

</mosaic_0001>

<bundles_post_ra>
// kernel: tpu_custom_call.1
= control target key start
LH: loop header
LB: loop body
LE: loop exit
PB: predicated region body
PF: predicated region fallthrough
CT: control target
= control target key end

     0   :  { %s4702_s0 = inlined_call_operand.hbm [shape: f32[24,2,96], index: 0, kind: input, shape index: {}]   ;;  %s4703_s1 = inlined_call_operand.vmem [shape: f32[32,96], index: 1, kind: input, shape index: {}]   ;;  %s4704_s2 = inlined_call_operand.vmem [shape: f32[1,96], index: 2, kind: input, shape index: {}]   ;;  %s4705_s3 = inlined_call_operand.vmem [shape: f32[1,16], index: 3, kind: input, shape index: {}]   ;;  %s4706_s4 = inlined_call_operand.vmem [shape: f32[1,16], index: 4, kind: input, shape index: {}]   ;;  %s4707_s5 = inlined_call_operand.hbm [shape: f32[32,96], index: 5, kind: input, shape index: {}]   ;;  %s4708_s6 = inlined_call_operand.hbm [shape: f32[32,96], index: 6, kind: input, shape index: {}]   ;;  %s4709_s7 = inlined_call_operand.vmem [shape: f32[1,96], index: 7, kind: input, shape index: {}]   ;;  %s4710_s8 = inlined_call_operand.hbm [shape: f32[32,96], index: 8, kind: input, shape index: {}]   ;;  %s4711_s9 = inlined_call_operand.vmem [shape: f32[1,96], index: 9, kind: input, shape index: {}]   ;;  %s4712_s10 = inlined_call_operand.vmem [shape: f32[1,16], index: 10, kind: input, shape index: {}]   ;;  %s4713_s11 = inlined_call_operand.vmem [shape: f32[1,16], index: 11, kind: input, shape index: {}]   ;;  %s4714_s12 = inlined_call_operand.hbm [shape: f32[32,32], index: 12, kind: input, shape index: {}]   ;;  %s4715_s13 = inlined_call_operand.vmem [shape: f32[1,32], index: 13, kind: input, shape index: {}]   ;;  %s4716_s14 = inlined_call_operand.vmem [shape: f32[32,2], index: 14, kind: input, shape index: {}]   ;;  %s4717_s15 = inlined_call_operand.vmem [shape: f32[1,2], index: 15, kind: input, shape index: {}]   ;;  %s4718_s16 = inlined_call_operand.hbm [shape: f32[2,2], index: 16, kind: output, shape index: {0}]   ;;  %s4719_s17 = inlined_call_operand.vmem [shape: f32[3,2,1], index: 17, kind: output, shape index: {1}]   ;;  %s4720_s18 = inlined_call_operand.hbm [shape: f32[2,32], index: 18, kind: output, shape index: {2}]  }
   0x1   :  { %4726 = sst [smem:[#allocation25_spill]] %s4702_s0 }
   0x2   :  { %4727 = sst [smem:[#allocation26_spill]] %s4703_s1 }
   0x3   :  { %4728 = sst [smem:[#allocation27_spill]] %s4704_s2 }
   0x4   :  { %4729 = sst [smem:[#allocation28_spill]] %s4707_s5 }
   0x5   :  { %4730 = sst [smem:[#allocation29_spill]] %s4708_s6 }
   0x6   :  { %4731 = sst [smem:[#allocation30_spill]] %s4710_s8 }
   0x7   :  { %4732 = sst [smem:[#allocation31_spill]] %s4714_s12 }
   0x8   :  { %4733 = sst [smem:[#allocation32_spill]] %s4718_s16 }
   0x9   :  { %4734 = sst [smem:[#allocation33_spill]] %s4720_s18 }
   0xa   :  { %24 = vsyncpa [#allocation9], 0 }
   0xb   :  { %26 = vsyncpa [#allocation9 + $0x1], 0 }
   0xc   :  { %27 = vsyncpa [#allocation12], 0 }
   0xd   :  { %28 = vsyncpa [#allocation15], 0 }
   0xe   :  { %29 = vsyncpa [#allocation10], 0 }
   0xf   :  { %30 = vsyncpa [#allocation19], 0  ;;  %s3921_s27 = smov 0   ;;  %s3923_s28 = smov 0  }
  0x10   :  { %s3925_s29 = smov 0   ;;  %s3927_s30 = smov 0  }
  0x11 LB: > { %s3940_s0 = sadd.s32 4294967295, %s3799_s30   ;;  %p56_p0 = scmp.ne.s32.totalorder %s3791_s28, %s3787_s27  ;;  %s3799_s30 = sphi %s3927_s30, %s4758_s30   ;;  %s3795_s29 = sphi %s3925_s29, %s4757_s29   ;;  %s3791_s28 = sphi %s3923_s28, %s4756_s28   ;;  %s3787_s27 = sphi %s3921_s27, %s4755_s27  }
  0x12   : > { %p4723_p1 = scmp.eq.s32.totalorder %s3940_s0, 0  ;;  %p2987_p2 = scmp.ge.s32.totalorder %s3799_s30, 1 }
  0x13   : > { %p445_p3 = scmp.lt.s32.totalorder %s3799_s30, 4  ;;  %s3801_s20 = smov [#allocation11]  }
  0x14   : > { %p3949_p5 = por %p4723_p1, %p56_p0  ;;  %s469_s21 = sshll.u32 %s3801_s20, 4  ;;  %s470_s21 = int_to_ptr.vmem [resolvable:$true] %s469_s21 }
  0x15   : > { %p3953_p6 = pnand %p2987_p2, %p445_p3  ;;  %s3802_s2 = smov [#allocation14]  }
  0x16   : > { %s4735_s19 = scalar_select %p3949_p5, 1, 0 }
  0x17   : > { %s4736_s1 = scalar_select %p3953_p6, 1, 0 }
  0x18   : > { %p3387_p7 = pneg %p3953_p6  ;;  %s498_s23 = sshll.u32 %s3802_s2, 4  ;;  %s499_s23 = int_to_ptr.vmem [resolvable:$true] %s498_s23 }
  0x19   : > { %s3803_s24 = smov [#allocation13]   ;;  %s3580_s26 = scalar_lea.vmem %s470_s21, 512 }
  0x1a   : > { %p3961_p8 = pnand %p3387_p7, %p4723_p1  ;;  %s482_s25 = sshll.u32 %s3803_s24, 4  ;;  %s483_s25 = int_to_ptr.vmem [resolvable:$true] %s482_s25 }
  0x1b   : > { %p3581_p10 = scmp.ne.s32.totalorder %s470_s21, %s3580_s26  ;;  %p3588_p13 = scmp.lt.s32.totalorder %s470_s21, %s470_s21 }
  0x1c   : > { %p3571_p9 = pneg %p3961_p8  ;;  %p3589_p0 = scmp.lt.s32.totalorder %s3580_s26, %s3580_s26 }
  0x1e   : > { %p3583_p11 = pnand %p3581_p10, %p3571_p9  ;;  %p3590_p2 = por %p3589_p0, %p3588_p13 }
  0x20   : > { %p3584_p12 = pneg %p3583_p11 }
  0x22   : > { %p3591_p3 = pnand %p3590_p2, %p3584_p12 }
  0x24   : > { %3594 = shalt.err (!%p3591_p3)
}
  0x25   : > { %s3804_s27 = smov 128   ;;  %s3805_s20 = smov 8  }
  0x26   : > { %s4738_s5 = sld [smem:[#allocation28_spill]]  ;;  %s3606_s18 = scalar_lea.vmem %s499_s23, 512 }
  0x27   : > { %p3607_p7 = scmp.ne.s32.totalorder %s499_s23, %s3606_s18  ;;  %p3614_p12 = scmp.lt.s32.totalorder %s499_s23, %s499_s23 }
  0x28   : > { %p3615_p13 = scmp.lt.s32.totalorder %s3606_s18, %s3606_s18 }
  0x29   : > { %p3609_p10 = pnand %p3607_p7, %p3571_p9 }
  0x2a   : > { %p3616_p0 = por %p3615_p13, %p3614_p12 }
  0x2b   : > { %p3610_p11 = pneg %p3609_p10 }
  0x2c   : > { %3390 = dma.hbm_to_vmem [thread:$0]  (!%p3961_p8), %s4738_s5, 512, %s470_s21, [#allocation12], %s3804_s27, %s3804_s27, %s3805_s20  }
  0x2d   : > { %p3617_p2 = pnand %p3616_p0, %p3610_p11 }
  0x2f   : > { %3620 = shalt.err (!%p3617_p2)
}
  0x30   : > { %s4739_s8 = sld [smem:[#allocation30_spill]]  ;;  %s3632_s21 = scalar_lea.vmem %s483_s25, 512 }
  0x31   : > { %p3633_p3 = scmp.ne.s32.totalorder %s483_s25, %s3632_s21  ;;  %p3640_p12 = scmp.lt.s32.totalorder %s483_s25, %s483_s25 }
  0x32   : > { %p3641_p11 = scmp.lt.s32.totalorder %s3632_s21, %s3632_s21 }
  0x33   : > { %p3635_p7 = pnand %p3633_p3, %p3571_p9 }
  0x34   : > { %p3642_p13 = por %p3641_p11, %p3640_p12 }
  0x35   : > { %p3636_p10 = pneg %p3635_p7 }
  0x36   : > { %3396 = dma.hbm_to_vmem [thread:$0]  (!%p3961_p8), %s4739_s8, 512, %s499_s23, [#allocation15], %s3804_s27, %s3804_s27, %s3805_s20  }
  0x37   : > { %p3643_p0 = pnand %p3642_p13, %p3636_p10 }
  0x39   : > { %3646 = shalt.err (!%p3643_p0)
}
  0x3a   : > { %s4740_s6 = sld [smem:[#allocation29_spill]]  ;;  %s3806_s23 = smov [#allocation16]  }
  0x3b   : > { %s520_s2 = sshll.u32 %s3806_s23, 4  ;;  %s521_s2 = int_to_ptr.vmem [resolvable:$true] %s520_s2 }
  0x3c   : > { %s3658_s24 = scalar_lea.vmem %s521_s2, 512  ;;  %p3666_p10 = scmp.lt.s32.totalorder %s521_s2, %s521_s2 }
  0x3d   : > { %p3659_p2 = scmp.ne.s32.totalorder %s521_s2, %s3658_s24  ;;  %p3667_p12 = scmp.lt.s32.totalorder %s3658_s24, %s3658_s24 }
  0x3f   : > { %p3661_p3 = pnand %p3659_p2, %p3571_p9  ;;  %p3668_p11 = por %p3667_p12, %p3666_p10 }
  0x40   : > { %3393 = dma.hbm_to_vmem [thread:$0]  (!%p3961_p8), %s4740_s6, 512, %s483_s25, [#allocation12], %s3804_s27, %s3804_s27, %s3805_s20  }
  0x41   : > { %p3662_p7 = pneg %p3661_p3 }
  0x43   : > { %p3669_p13 = pnand %p3668_p11, %p3662_p7 }
  0x45   : > { %3672 = shalt.err (!%p3669_p13)
}
  0x46   : > { %s4741_s12 = sld [smem:[#allocation31_spill]]  ;;  %s4012_s21 = sadd.s32 1, %s3799_s30  }
  0x47   : > { %s43_s22 = sadd.s32 1, %s3795_s29  ;;  %s40_s16 = ssub.s32 %s3799_s30, %s4012_s21 }
  0x48   : > { %p50_p9 = scmp.ne.s32.totalorder %s3795_s29, %s3791_s28  ;;  %p41_p0 = scmp.eq.s32.totalorder %s40_s16, 0 }
  0x49   : > { %p51_p2 = scmp.eq.s32.totalorder %s3799_s30, 0  ;;  %p3408_p3 = scmp.lt.s32.totalorder %s3799_s30, 3 }
  0x4a   : > { %s543_s18 = sand.u32 1, %s3795_s29   ;;  %s3056_s25 = sshll.u32 %s3799_s30, 8 }
  0x4b   : > { %s4023_s23 = scalar_select %p41_p0, %s3795_s29, %s43_s22  }
  0x4c   : > { %3399 = dma.hbm_to_vmem [thread:$0]  (!%p3961_p8), %s4741_s12, 512, %s521_s2, [#allocation15], %s3804_s27, %s3804_s27, %s3805_s20  }
  0x4d   : > { %p52_p7 = por %p51_p2, %p50_p9  ;;  %s2993_s24 = sshll.u32 %s543_s18, 4 }
  0x4e   : > { %s4742_s6 = sld [smem:[#allocation25_spill]]  ;;  %s547_s27 = scalar_lea.vmem [#allocation8], %s2993_s24 }
  0x4f   : > { %s554_s20 = sshll.u32 %s547_s27, 4  ;;  %p4031_p8 = pnand %p3408_p3, %p52_p7  ;;  %s4035_s20 = int_to_ptr.vmem [resolvable:$true] %s554_s20 }
  0x50   : > { %s4037_s22 = scalar_lea.sflag [#allocation9], %s543_s18 }
  0x51   : > { %p3675_p12 = pneg %p4031_p8 }
  0x54   : > { %s4029_s8 = scalar_lea.hbm %s4742_s6, %s3056_s25  ;;  %s3678_s24 = scalar_lea.hbm %s4742_s6, 768 }
  0x55   : > { %s3673_s30 = scalar_lea.hbm %s4029_s8, 256  ;;  %p3679_p9 = scmp.lt.s32.totalorder %s4029_s8, %s4742_s6 }
  0x56   : > { %p3674_p10 = scmp.ne.s32.totalorder %s4029_s8, %s3673_s30  ;;  %p3680_p0 = scmp.lt.s32.totalorder %s3678_s24, %s3673_s30 }
  0x58   : > { %p3676_p11 = pnand %p3675_p12, %p3674_p10  ;;  %p3681_p2 = por %p3680_p0, %p3679_p9 }
  0x5a   : > { %p3677_p13 = pneg %p3676_p11 }
  0x5c   : > { %p3682_p3 = pnand %p3681_p2, %p3677_p13 }
  0x5e   : > { %3685 = shalt.err (!%p3682_p3)
}
  0x5f   : > { %s3686_s18 = scalar_lea.vmem %s4035_s20, 256  ;;  %s3807_s27 = smov [#allocation8]  }
  0x60   : > { %p3687_p7 = scmp.ne.s32.totalorder %s4035_s20, %s3686_s18  ;;  %s3691_s12 = sshll.u32 %s3807_s27, 4  ;;  %s3692_s12 = int_to_ptr.vmem [resolvable:$false] %s3691_s12 }
  0x61   : > { %s3693_s5 = scalar_lea.vmem %s3692_s12, 512  ;;  %p3694_p11 = scmp.lt.s32.totalorder %s4035_s20, %s3692_s12 }
  0x62   : > { %p3689_p4 = pnand %p3687_p7, %p3675_p12  ;;  %p3695_p1 = scmp.lt.s32.totalorder %s3693_s5, %s3686_s18 }
  0x64   : > { %p3690_p10 = pneg %p3689_p4  ;;  %p3696_p5 = por %p3695_p1, %p3694_p11 }
  0x66   : > { %p3697_p6 = pnand %p3696_p5, %p3690_p10 }
  0x68   : > { %3700 = shalt.err (!%p3697_p6)
}
  0x69   : > { %s3808_s30 = smov 32   ;;  %s3809_s16 = smov 2  }
  0x6a   : > { %3403 = dma.hbm_to_vmem [thread:$0]  (!%p4031_p8), %s4029_s8, 256, %s4035_s20, %s4037_s22, %s3808_s30, %s3808_s30, %s3809_s16  }
  0x6b   : > { %p4744_p12 = scmp.ne.s32.totalorder %s4736_s1, 0 }
  0x6c   : > { %s568_s24 = sand.u32 (!%p4744_p12), 1, %s3791_s28   ;;  %p4745_p1 = scmp.ne.s32.totalorder (!%p4744_p12), %s4735_s19, 0 }
  0x6d   : > { %566 = sbr.rel (%p4744_p12) target bundleno = 9023 (0x233f), region = 84  ;;  %s2997_s25 = sshll.u32 (!%p4744_p12), %s568_s24, 4 }
  0x6e   : > { %s569_s12 = scalar_lea.sflag (!%p4744_p12), [#allocation9], %s568_s24  ;;  %s4061_s26 = scalar_lea.vmem (!%p4744_p12), [#allocation8], %s2997_s25 }
  0x72   : > { %3766 = dma.done.wait (%p4745_p1), %s569_s12, 256  }
  0x73   : > { %3768 = vsyncadd (%p4745_p1), %s569_s12, 4294967040  ;;  %p4746_p4 = scmp.eq.s32.totalorder %s3940_s0, 0 }
  0x75   : > { %3770 = dma.done.wait (%p4746_p4), [#allocation12], 1024   ;;  %p4747_p5 = pmov %p4746_p4 }
  0x76   : > { %p4748_p6 = pmov %p4746_p4 }
  0x77   : > { %3772 = vsyncadd (%p4747_p5), [#allocation12], 4294966272 }
  0x78   : > { %3774 = dma.done.wait (%p4748_p6), [#allocation15], 1024   ;;  %p4749_p8 = pmov %p4746_p4 }
  0x79   : > { %p4750_p13 = scmp.ne.s32.totalorder %s3940_s0, 0 }
  0x7a   : > { %3776 = vsyncadd (%p4749_p8), [#allocation15], 4294966272 }
  0x7b   : > { %640 = sbr.rel (%p4750_p13) target bundleno = 130 (0x82), region = 108 }
  0x80   : > { %vm641_vm0 = vcmask 254976   ;;  %v3810_v0 = vmov 0.0  }
  0x81   : > { %642 = vst.msk [vmem:[#allocation2] sm:$0x3] %vm641_vm0, %v3810_v0 }
  0x82 PF: > { %s4751_s1 = sld [smem:[#allocation26_spill]]  ;;  %v3811_v2 = vmov 0.0   ;;  %vm3812_vm1 = vmmov 0   ;;  %vm655_vm2 = vcmask 261120   ;;  %s3813_s25 = smov 64   ;;  %vm763_vm3 = vcmask 123904  }
  0x83   : > { %3152 = vmatprep.subr.mxu0 %v3811_v2  ;;  %3160 = vmatprep.mubr.msk.f32.mxu0 %vm3812_vm1, %v3811_v2  ;;  %s4752_s24 = sld [smem:[#allocation27_spill]]  ;;  %v729_v11 = vld [vmem:[%s4061_s26] sm:$0x3]  ;;  %s3814_s12 = smov 96   ;;  %v3007_v32 = vld [vmem:[%s4061_s26 + $0x2] sm:$0x3] }
  0x84   : > { %3163 = vmatprep.subr.mxu1 %v3811_v2  ;;  %3171 = vmatprep.mubr.msk.f32.mxu1 %vm3812_vm1, %v3811_v2  ;;  %s3815_s8 = smov 32   ;;  %v3010_v52 = vld [vmem:[%s4061_s26 + $0x4] sm:$0x3]  ;;  %s3816_s19 = smov 80   ;;  %vm1546_vm4 = vcmask 254976   ;;  %vm1658_vm5 = vcmask 1041408  }
  0x85   : > { %s3817_s18 = smov 16   ;;  %s3029_s27 = sshll.u32 %s3940_s0, 1  ;;  %vm1772_vm6 = vcmask 130048  }
  0x86   : > { %s1775_s5 = scalar_lea.vmem [#allocation5], %s3029_s27  ;;  %p3030_p9 = scmp.ne.s32.totalorder %s3940_s0, 2 }
  0x88   : > { %v4080_v1 = vld [vmem:[%s4751_s1 + $0x18] sm:$0xff]  ;;  %v4086_v3 = vld [vmem:[%s4751_s1 + $0x10] sm:$0xff]  ;;  %v4096_v4 = vld [vmem:[%s4751_s1 + $0x8] sm:$0xff] }
  0x89   : > { %3153 = vmatpush3.msra.mxu0 %v4080_v1  ;;  %3164 = vmatpush3.msra.mxu1 %v4080_v1  ;;  %v4105_v5 = vld [vmem:[%s4751_s1] sm:$0xff] }
  0x8a   : > { %3154 = vmatprep.subr.mxu0 %v3811_v2  ;;  %3165 = vmatprep.subr.mxu1 %v3811_v2  ;;  %v648_v6 = vld [vmem:[#allocation2] sm:$0x3] }
  0x8b   : > { %3155 = vmatpush3.msra.mxu0 %v4086_v3  ;;  %3166 = vmatpush3.msra.mxu1 %v4086_v3  ;;  %v4133_v7 = vld [vmem:[%s4752_s24] ss:$0 sm:$0xff]  ;;  %s3820_s24 = smov (!%p3030_p9), 64  }
  0x8c   : > { %3156 = vmatprep.subr.mxu0 %v3811_v2  ;;  %3167 = vmatprep.subr.mxu1 %v3811_v2 }
  0x8d   : > { %3157 = vmatpush3.msra.mxu0 %v4096_v4  ;;  %3168 = vmatpush3.msra.mxu1 %v4096_v4 }
  0x8e   : > { %3158 = vmatprep.subr.mxu0 %v3811_v2  ;;  %3169 = vmatprep.subr.mxu1 %v3811_v2 }
  0x8f   : > { %3159 = vmatpush3.msra.mxu0 %v4105_v5  ;;  %3170 = vmatpush3.msra.mxu1 %v4105_v5 }
  0x90   : > { %3161 = vmatmul.mubr.msk.f32.vlgmr.msra.gmra.mxu0 %vm655_vm2, %v648_v6  ;;  %3174 = vmatprep.subr.mxu0 %v3811_v2 }
  0x91   : > { %3175 = vmatpush3.msra.mxu0 %v4080_v1  ;;  %3182 = vmatprep.mubr.msk.f32.mxu0 %vm3812_vm1, %v3811_v2 }
  0x92   : > { %3176 = vmatprep.subr.mxu0 %v3811_v2  ;;  %3185 = vmatprep.subr.mxu1 %v3811_v2 }
  0x93   : > { %3177 = vmatpush3.msra.mxu0 %v4086_v3 }
  0x94   : > { %3178 = vmatprep.subr.mxu0 %v3811_v2 }
  0x95   : > { %3179 = vmatpush3.msra.mxu0 %v4096_v4 }
  0x96   : > { %3180 = vmatprep.subr.mxu0 %v3811_v2 }
  0x97   : > { %3181 = vmatpush3.msra.mxu0 %v4105_v5 }
  0x98   : > { %3196 = vmatprep.subr.mxu0 %v3811_v2 }
 0x150   : > { %v725_v8 = vpop.f32.mrf.mxu0 }
 0x151   : > { %v726_v9 = vadd.f32 %v4133_v7, %v725_v8 }
 0x152   : > { %v3162_v10 = vpop.f32.mrf.mxu0 }
 0x153   : > { %738 = vrot.lane.b32.xlu0 %v726_v9, %s3813_s25  ;;  %v730_v12 = vadd.f32 %v729_v11, %v726_v9 }
 0x155   : > { %v3005_v13 = vmul.f32 -1.442695, %v730_v12 }
 0x157   : > { %3473 = vpow2.f32 %v3005_v13 }
 0x164   : > { %v3474_v14 = vpop.eup %3473 }
 0x165   : > { %v734_v15 = vadd.f32 1.0, %v3474_v14  ;;  %v3013_v14 = vld [vmem:[%s4061_s26 + $0x6] sm:$0x3] }
 0x167   : > { %3475 = vrcp.f32 %v734_v15 }
 0x174   : > { %v3476_v16 = vpop.eup %3475 }
 0x175   : > { %v748_v23 = vsub.f32 1.0, %v3476_v16 }
 0x1c5   : > { %v739_v17 = vpop.permute.xlu0 %738 }
 0x1c6   : > { %v741_v18 = vmul.f32 %v3476_v16, %v739_v17 }
 0x1c8   : > { %743 = vrot.lane.b32.xlu0 %v741_v18, %s3813_s25 }
 0x23a   : > { %v744_v19 = vpop.permute.xlu0 %743 }
 0x23b   : > { %v746_v20 = vadd.f32 %v744_v19, %v729_v11 }
 0x23d   : > { %3477 = vtanh.f32 %v746_v20 }
 0x24a   : > { %v3478_v21 = vpop.eup %3477 }
 0x24b   : > { %750 = vrot.lane.b32.xlu1 %v3478_v21, %s3814_s12 }
 0x24f   : > { %754 = vrot.lane.b32.xlu1 %v648_v6, %s3815_s8  ;;  %s3821_s8 = smov (!%p3030_p9), 96  }
 0x2bd   : > { %v751_v22 = vpop.permute.xlu1 %750 }
 0x2be   : > { %v753_v25 = vmul.f32 %v751_v22, %v748_v23 }
 0x2c1   : > { %v755_v24 = vpop.permute.xlu1 %754 }
 0x2c2   : > { %v757_v26 = vmul.f32 %v3476_v16, %v755_v24 }
 0x2c4   : > { %v4140_v27 = vadd.f32 %v757_v26, %v753_v25 }
 0x2c6   : > { %760 = vrot.lane.b32.xlu0 %v4140_v27, %s3814_s12 }
 0x338   : > { %v761_v28 = vpop.permute.xlu0 %760 }
 0x339   : > { %764 = vst.msk [vmem:[#allocation3] sm:$0x3] %vm763_vm3, %v761_v28  ;;  %3172 = vmatmul.mubr.msk.f32.vlgmr.msra.gmra.mxu1 %vm655_vm2, %v761_v28 }
 0x33a   : > { %3186 = vmatpush3.msra.mxu1 %v4080_v1  ;;  %3193 = vmatprep.mubr.msk.f32.mxu1 %vm3812_vm1, %v3811_v2 }
 0x33b   : > { %3187 = vmatprep.subr.mxu1 %v3811_v2 }
 0x33c   : > { %3188 = vmatpush3.msra.mxu1 %v4086_v3 }
 0x33d   : > { %3189 = vmatprep.subr.mxu1 %v3811_v2 }
 0x33e   : > { %3190 = vmatpush3.msra.mxu1 %v4096_v4 }
 0x33f   : > { %3191 = vmatprep.subr.mxu1 %v3811_v2 }
 0x340   : > { %3192 = vmatpush3.msra.mxu1 %v4105_v5 }
 0x341   : > { %3207 = vmatprep.subr.mxu1 %v3811_v2 }
 0x3f9   : > { %v838_v29 = vpop.f32.mrf.mxu1 }
 0x3fa   : > { %v839_v30 = vadd.f32 %v4133_v7, %v838_v29 }
 0x3fb   : > { %v3173_v31 = vpop.f32.mrf.mxu1 }
 0x3fc   : > { %852 = vrot.lane.b32.xlu1 %v839_v30, %s3813_s25  ;;  %v844_v33 = vadd.f32 %v3007_v32, %v839_v30 }
 0x3fe   : > { %v3008_v34 = vmul.f32 -1.442695, %v844_v33 }
 0x400   : > { %3479 = vpow2.f32 %v3008_v34 }
 0x40d   : > { %v3480_v35 = vpop.eup %3479 }
 0x40e   : > { %v848_v36 = vadd.f32 1.0, %v3480_v35  ;;  %v3016_v35 = vld [vmem:[%s4061_s26 + $0x8] sm:$0x3] }
 0x410   : > { %3481 = vrcp.f32 %v848_v36 }
 0x41d   : > { %v3482_v37 = vpop.eup %3481 }
 0x41e   : > { %v862_v43 = vsub.f32 1.0, %v3482_v37  ;;  %v868_v45 = vmul.f32 %v3482_v37, %v4140_v27 }
 0x46e   : > { %v853_v38 = vpop.permute.xlu1 %852 }
 0x46f   : > { %v855_v39 = vmul.f32 %v3482_v37, %v853_v38 }
 0x471   : > { %857 = vrot.lane.b32.xlu0 %v855_v39, %s3813_s25 }
 0x4e3   : > { %v858_v40 = vpop.permute.xlu0 %857 }
 0x4e4   : > { %v860_v41 = vadd.f32 %v3007_v32, %v858_v40 }
 0x4e6   : > { %3483 = vtanh.f32 %v860_v41 }
 0x4f3   : > { %v3484_v42 = vpop.eup %3483 }
 0x4f4   : > { %864 = vrot.lane.b32.xlu1 %v3484_v42, %s3814_s12 }
 0x566   : > { %v865_v44 = vpop.permute.xlu1 %864 }
 0x567   : > { %v867_v46 = vmul.f32 %v865_v44, %v862_v43 }
 0x569   : > { %v4162_v47 = vadd.f32 %v868_v45, %v867_v46 }
 0x56b   : > { %871 = vrot.lane.b32.xlu0 %v4162_v47, %s3814_s12 }
 0x5dd   : > { %v872_v48 = vpop.permute.xlu0 %871 }
 0x5de   : > { %875 = vst.msk [vmem:[#allocation3 + $0x2] sm:$0x3] %vm763_vm3, %v872_v48  ;;  %3183 = vmatmul.mubr.msk.f32.vlgmr.msra.gmra.mxu0 %vm655_vm2, %v872_v48 }
 0x5df   : > { %3197 = vmatpush3.msra.mxu0 %v4080_v1  ;;  %3204 = vmatprep.mubr.msk.f32.mxu0 %vm3812_vm1, %v3811_v2 }
 0x5e0   : > { %3198 = vmatprep.subr.mxu0 %v3811_v2 }
 0x5e1   : > { %3199 = vmatpush3.msra.mxu0 %v4086_v3 }
 0x5e2   : > { %3200 = vmatprep.subr.mxu0 %v3811_v2 }
 0x5e3   : > { %3201 = vmatpush3.msra.mxu0 %v4096_v4 }
 0x5e4   : > { %3202 = vmatprep.subr.mxu0 %v3811_v2 }
 0x5e5   : > { %3203 = vmatpush3.msra.mxu0 %v4105_v5 }
 0x5e6   : > { %3218 = vmatprep.subr.mxu0 %v3811_v2 }
 0x69e   : > { %v949_v49 = vpop.f32.mrf.mxu0 }
 0x69f   : > { %v950_v50 = vadd.f32 %v4133_v7, %v949_v49 }
 0x6a0   : > { %v3184_v51 = vpop.f32.mrf.mxu0 }
 0x6a1   : > { %963 = vrot.lane.b32.xlu1 %v950_v50, %s3813_s25  ;;  %v955_v53 = vadd.f32 %v3010_v52, %v950_v50 }
 0x6a3   : > { %v3011_v54 = vmul.f32 -1.442695, %v955_v53 }
 0x6a5   : > { %3485 = vpow2.f32 %v3011_v54 }
 0x6b2   : > { %v3486_v55 = vpop.eup %3485 }
 0x6b3   : > { %v959_v56 = vadd.f32 1.0, %v3486_v55 }
 0x6b5   : > { %3487 = vrcp.f32 %v959_v56 }
 0x6c2   : > { %v3488_v57 = vpop.eup %3487 }
 0x6c3   : > { %v973_v63 = vsub.f32 1.0, %v3488_v57  ;;  %v979_v6 = vmul.f32 %v3488_v57, %v4162_v47 }
 0x713   : > { %v964_v58 = vpop.permute.xlu1 %963 }
 0x714   : > { %v966_v59 = vmul.f32 %v3488_v57, %v964_v58 }
 0x716   : > { %968 = vrot.lane.b32.xlu0 %v966_v59, %s3813_s25 }
 0x788   : > { %v969_v60 = vpop.permute.xlu0 %968 }
 0x789   : > { %v971_v61 = vadd.f32 %v3010_v52, %v969_v60 }
 0x78b   : > { %3489 = vtanh.f32 %v971_v61 }
 0x798   : > { %v3490_v62 = vpop.eup %3489 }
 0x799   : > { %975 = vrot.lane.b32.xlu1 %v3490_v62, %s3814_s12 }
 0x80b   : > { %v976_v0 = vpop.permute.xlu1 %975 }
 0x80c   : > { %v978_v8 = vmul.f32 %v976_v0, %v973_v63 }
 0x80e   : > { %v4184_v9 = vadd.f32 %v979_v6, %v978_v8 }
 0x810   : > { %982 = vrot.lane.b32.xlu0 %v4184_v9, %s3814_s12 }
 0x882   : > { %v983_v10 = vpop.permute.xlu0 %982 }
 0x883   : > { %986 = vst.msk [vmem:[#allocation3 + $0x4] sm:$0x3] %vm763_vm3, %v983_v10  ;;  %3194 = vmatmul.mubr.msk.f32.vlgmr.msra.gmra.mxu1 %vm655_vm2, %v983_v10 }
 0x884   : > { %3208 = vmatpush3.msra.mxu1 %v4080_v1  ;;  %3215 = vmatprep.mubr.msk.f32.mxu1 %vm3812_vm1, %v3811_v2 }
 0x885   : > { %3209 = vmatprep.subr.mxu1 %v3811_v2 }
 0x886   : > { %3210 = vmatpush3.msra.mxu1 %v4086_v3 }
 0x887   : > { %3211 = vmatprep.subr.mxu1 %v3811_v2 }
 0x888   : > { %3212 = vmatpush3.msra.mxu1 %v4096_v4 }
 0x889   : > { %3213 = vmatprep.subr.mxu1 %v3811_v2 }
 0x88a   : > { %3214 = vmatpush3.msra.mxu1 %v4105_v5 }
 0x88b   : > { %3229 = vmatprep.subr.mxu1 %v3811_v2 }
 0x943   : > { %v1060_v11 = vpop.f32.mrf.mxu1 }
 0x944   : > { %v1061_v12 = vadd.f32 %v4133_v7, %v1060_v11 }
 0x945   : > { %v3195_v13 = vpop.f32.mrf.mxu1 }
 0x946   : > { %1074 = vrot.lane.b32.xlu1 %v1061_v12, %s3813_s25  ;;  %v1066_v15 = vadd.f32 %v3013_v14, %v1061_v12 }
 0x948   : > { %v3014_v16 = vmul.f32 -1.442695, %v1066_v15 }
 0x94a   : > { %3491 = vpow2.f32 %v3014_v16 }
 0x957   : > { %v3492_v17 = vpop.eup %3491 }
 0x958   : > { %v1070_v18 = vadd.f32 1.0, %v3492_v17 }
 0x95a   : > { %3493 = vrcp.f32 %v1070_v18 }
 0x967   : > { %v3494_v19 = vpop.eup %3493 }
 0x968   : > { %v1084_v25 = vsub.f32 1.0, %v3494_v19  ;;  %v1090_v28 = vmul.f32 %v3494_v19, %v4184_v9 }
 0x9b8   : > { %v1075_v20 = vpop.permute.xlu1 %1074 }
 0x9b9   : > { %v1077_v21 = vmul.f32 %v3494_v19, %v1075_v20 }
 0x9bb   : > { %1079 = vrot.lane.b32.xlu0 %v1077_v21, %s3813_s25 }
 0xa2d   : > { %v1080_v22 = vpop.permute.xlu0 %1079 }
 0xa2e   : > { %v1082_v23 = vadd.f32 %v3013_v14, %v1080_v22  ;;  %v3022_v14 = vld [vmem:[%s4061_s26 + $0xc] sm:$0x3] }
 0xa30   : > { %3495 = vtanh.f32 %v1082_v23 }
 0xa3d   : > { %v3496_v24 = vpop.eup %3495 }
 0xa3e   : > { %1086 = vrot.lane.b32.xlu1 %v3496_v24, %s3814_s12 }
 0xab0   : > { %v1087_v26 = vpop.permute.xlu1 %1086 }
 0xab1   : > { %v1089_v29 = vmul.f32 %v1087_v26, %v1084_v25 }
 0xab3   : > { %v4206_v30 = vadd.f32 %v1090_v28, %v1089_v29 }
 0xab5   : > { %1093 = vrot.lane.b32.xlu0 %v4206_v30, %s3814_s12 }
 0xb27   : > { %v1094_v31 = vpop.permute.xlu0 %1093 }
 0xb28   : > { %1097 = vst.msk [vmem:[#allocation3 + $0x6] sm:$0x3] %vm763_vm3, %v1094_v31  ;;  %3205 = vmatmul.mubr.msk.f32.vlgmr.msra.gmra.mxu0 %vm655_vm2, %v1094_v31 }
 0xb29   : > { %3219 = vmatpush3.msra.mxu0 %v4080_v1  ;;  %3226 = vmatprep.mubr.msk.f32.mxu0 %vm3812_vm1, %v3811_v2 }
 0xb2a   : > { %3220 = vmatprep.subr.mxu0 %v3811_v2 }
 0xb2b   : > { %3221 = vmatpush3.msra.mxu0 %v4086_v3 }
 0xb2c   : > { %3222 = vmatprep.subr.mxu0 %v3811_v2 }
 0xb2d   : > { %3223 = vmatpush3.msra.mxu0 %v4096_v4 }
 0xb2e   : > { %3224 = vmatprep.subr.mxu0 %v3811_v2 }
 0xb2f   : > { %3225 = vmatpush3.msra.mxu0 %v4105_v5 }
 0xbe8   : > { %v1171_v32 = vpop.f32.mrf.mxu0 }
 0xbe9   : > { %v1172_v33 = vadd.f32 %v4133_v7, %v1171_v32 }
 0xbea   : > { %v3206_v34 = vpop.f32.mrf.mxu0 }
 0xbeb   : > { %1185 = vrot.lane.b32.xlu1 %v1172_v33, %s3813_s25  ;;  %v1177_v36 = vadd.f32 %v3016_v35, %v1172_v33 }
 0xbed   : > { %v3017_v37 = vmul.f32 -1.442695, %v1177_v36  ;;  %v3025_v36 = vld [vmem:[%s4061_s26 + $0xe] sm:$0x3] }
 0xbef   : > { %3497 = vpow2.f32 %v3017_v37 }
 0xbfc   : > { %v3498_v38 = vpop.eup %3497 }
 0xbfd   : > { %v1181_v39 = vadd.f32 1.0, %v3498_v38 }
 0xbff   : > { %3499 = vrcp.f32 %v1181_v39 }
 0xc0c   : > { %v3500_v40 = vpop.eup %3499 }
 0xc0d   : > { %v1195_v46 = vsub.f32 1.0, %v3500_v40  ;;  %v1201_v49 = vmul.f32 %v3500_v40, %v4206_v30 }
 0xc5d   : > { %v1186_v41 = vpop.permute.xlu1 %1185 }
 0xc5e   : > { %v1188_v42 = vmul.f32 %v3500_v40, %v1186_v41 }
 0xc60   : > { %1190 = vrot.lane.b32.xlu0 %v1188_v42, %s3813_s25 }
 0xcd2   : > { %v1191_v43 = vpop.permute.xlu0 %1190 }
 0xcd3   : > { %v1193_v44 = vadd.f32 %v3016_v35, %v1191_v43 }
 0xcd5   : > { %3501 = vtanh.f32 %v1193_v44 }
 0xce2   : > { %v3502_v45 = vpop.eup %3501 }
 0xce3   : > { %1197 = vrot.lane.b32.xlu1 %v3502_v45, %s3814_s12 }
 0xd55   : > { %v1198_v48 = vpop.permute.xlu1 %1197 }
 0xd56   : > { %v1200_v50 = vmul.f32 %v1198_v48, %v1195_v46 }
 0xd58   : > { %v4227_v51 = vadd.f32 %v1201_v49, %v1200_v50 }
 0xd5a   : > { %1204 = vrot.lane.b32.xlu0 %v4227_v51, %s3814_s12 }
 0xdcc   : > { %v1205_v52 = vpop.permute.xlu0 %1204 }
 0xdcd   : > { %1208 = vst.msk [vmem:[#allocation3 + $0x8] sm:$0x3] %vm763_vm3, %v1205_v52  ;;  %3216 = vmatmul.mubr.msk.f32.vlgmr.msra.gmra.mxu1 %vm655_vm2, %v1205_v52 }
 0xdce   : > { %3230 = vmatpush3.msra.mxu1 %v4080_v1  ;;  %3237 = vmatprep.mubr.msk.f32.mxu1 %vm3812_vm1, %v3811_v2  ;;  %v3019_v1 = vld [vmem:[%s4061_s26 + $0xa] sm:$0x3] }
 0xdcf   : > { %3231 = vmatprep.subr.mxu1 %v3811_v2 }
 0xdd0   : > { %3232 = vmatpush3.msra.mxu1 %v4086_v3 }
 0xdd1   : > { %3233 = vmatprep.subr.mxu1 %v3811_v2 }
 0xdd2   : > { %3234 = vmatpush3.msra.mxu1 %v4096_v4 }
 0xdd3   : > { %3235 = vmatprep.subr.mxu1 %v3811_v2 }
 0xdd4   : > { %3236 = vmatpush3.msra.mxu1 %v4105_v5 }
 0xe8d   : > { %v1282_v53 = vpop.f32.mrf.mxu1 }
 0xe8e   : > { %v1283_v54 = vadd.f32 %v4133_v7, %v1282_v53 }
 0xe8f   : > { %v3217_v55 = vpop.f32.mrf.mxu1 }
 0xe90   : > { %1296 = vrot.lane.b32.xlu1 %v1283_v54, %s3813_s25  ;;  %v1288_v56 = vadd.f32 %v3019_v1, %v1283_v54 }
 0xe92   : > { %v3020_v57 = vmul.f32 -1.442695, %v1288_v56 }
 0xe94   : > { %3503 = vpow2.f32 %v3020_v57  ;;  %v4288_v57 = vld [vmem:[#allocation3 + $0x4] sm:$0x3] }
 0xea1   : > { %v3504_v58 = vpop.eup %3503 }
 0xea2   : > { %v1292_v3 = vadd.f32 1.0, %v3504_v58  ;;  %v4290_v58 = vld [vmem:[#allocation3] sm:$0x3] }
 0xea4   : > { %3505 = vrcp.f32 %v1292_v3 }
 0xeb1   : > { %v3506_v59 = vpop.eup %3505 }
 0xeb2   : > { %v1306_v62 = vsub.f32 1.0, %v3506_v59  ;;  %v1312_v0 = vmul.f32 %v3506_v59, %v4227_v51 }
 0xf02   : > { %v1297_v60 = vpop.permute.xlu1 %1296 }
 0xf03   : > { %v1299_v4 = vmul.f32 %v3506_v59, %v1297_v60 }
 0xf05   : > { %1301 = vrot.lane.b32.xlu0 %v1299_v4, %s3813_s25  ;;  %v4295_v4 = vld [vmem:[#allocation3 + $0x8] sm:$0x3] }
 0xf77   : > { %v1302_v2 = vpop.permute.xlu0 %1301 }
 0xf78   : > { %v1304_v5 = vadd.f32 %v3019_v1, %v1302_v2  ;;  %v4297_v2 = vld [vmem:[#allocation3 + $0x6] sm:$0x3] }
 0xf7a   : > { %3507 = vtanh.f32 %v1304_v5 }
 0xf87   : > { %v3508_v61 = vpop.eup %3507 }
 0xf88   : > { %1308 = vrot.lane.b32.xlu1 %v3508_v61, %s3814_s12 }
 0xffa   : > { %v1309_v63 = vpop.permute.xlu1 %1308 }
 0xffb   : > { %v1311_v6 = vmul.f32 %v1309_v63, %v1306_v62 }
 0xffd   : > { %v4248_v8 = vadd.f32 %v1312_v0, %v1311_v6 }
 0xfff   : > { %1315 = vrot.lane.b32.xlu0 %v4248_v8, %s3814_s12 }
0x1071   : > { %v1316_v10 = vpop.permute.xlu0 %1315 }
0x1072   : > { %1319 = vst.msk [vmem:[#allocation3 + $0xa] sm:$0x3] %vm763_vm3, %v1316_v10  ;;  %3227 = vmatmul.mubr.msk.f32.vlgmr.msra.gmra.mxu0 %vm655_vm2, %v1316_v10 }
0x1079   : > { %v4305_v6 = vld [vmem:[#allocation3 + $0xa] sm:$0x3] }
0x1132   : > { %v1393_v11 = vpop.f32.mrf.mxu0 }
0x1133   : > { %v1394_v12 = vadd.f32 %v4133_v7, %v1393_v11 }
0x1134   : > { %v3228_v13 = vpop.f32.mrf.mxu0 }
0x1135   : > { %1407 = vrot.lane.b32.xlu1 %v1394_v12, %s3813_s25  ;;  %v1399_v15 = vadd.f32 %v3022_v14, %v1394_v12 }
0x1137   : > { %v3023_v16 = vmul.f32 -1.442695, %v1399_v15  ;;  %v3028_v15 = vld [vmem:[%s4706_s4] ss:$0 sm:$0xff] }
0x1139   : > { %3509 = vpow2.f32 %v3023_v16 }
0x1146   : > { %v3510_v17 = vpop.eup %3509 }
0x1147   : > { %v1403_v18 = vadd.f32 1.0, %v3510_v17 }
0x1149   : > { %3511 = vrcp.f32 %v1403_v18 }
0x1156   : > { %v3512_v19 = vpop.eup %3511 }
0x1157   : > { %v1417_v25 = vsub.f32 1.0, %v3512_v19  ;;  %v1423_v28 = vmul.f32 %v3512_v19, %v4248_v8 }
0x11a7   : > { %v1408_v20 = vpop.permute.xlu1 %1407 }
0x11a8   : > { %v1410_v21 = vmul.f32 %v3512_v19, %v1408_v20 }
0x11aa   : > { %1412 = vrot.lane.b32.xlu0 %v1410_v21, %s3813_s25 }
0x121c   : > { %v1413_v22 = vpop.permute.xlu0 %1412 }
0x121d   : > { %v1415_v23 = vadd.f32 %v3022_v14, %v1413_v22 }
0x121f   : > { %3513 = vtanh.f32 %v1415_v23 }
0x122c   : > { %v3514_v24 = vpop.eup %3513 }
0x122d   : > { %1419 = vrot.lane.b32.xlu1 %v3514_v24, %s3814_s12 }
0x129f   : > { %v1420_v26 = vpop.permute.xlu1 %1419 }
0x12a0   : > { %v1422_v29 = vmul.f32 %v1420_v26, %v1417_v25 }
0x12a2   : > { %v1424_v31 = vadd.f32 %v1423_v28, %v1422_v29 }
0x12a4   : > { %1426 = vrot.lane.b32.xlu0 %v1424_v31, %s3814_s12 }
0x1316   : > { %v1427_v32 = vpop.permute.xlu0 %1426 }
0x1317   : > { %1430 = vst.msk [vmem:[#allocation3 + $0xc] sm:$0x3] %vm763_vm3, %v1427_v32  ;;  %3238 = vmatmul.mubr.msk.f32.vlgmr.msra.gmra.mxu1 %vm655_vm2, %v1427_v32 }
0x131e   : > { %v4303_v0 = vld [vmem:[#allocation3 + $0xc] sm:$0x3] }
0x13d7   : > { %v1504_v33 = vpop.f32.mrf.mxu1 }
0x13d8   : > { %v1505_v34 = vadd.f32 %v4133_v7, %v1504_v33 }
0x13d9   : > { %v3239_v35 = vpop.f32.mrf.mxu1 }
0x13da   : > { %1518 = vrot.lane.b32.xlu1 %v1505_v34, %s3813_s25  ;;  %v1510_v37 = vadd.f32 %v3025_v36, %v1505_v34 }
0x13dc   : > { %v3026_v38 = vmul.f32 -1.442695, %v1510_v37 }
0x13de   : > { %3515 = vpow2.f32 %v3026_v38 }
0x13eb   : > { %v3516_v39 = vpop.eup %3515 }
0x13ec   : > { %v1514_v40 = vadd.f32 1.0, %v3516_v39 }
0x13ee   : > { %3517 = vrcp.f32 %v1514_v40 }
0x13fb   : > { %v3518_v41 = vpop.eup %3517 }
0x144c   : > { %v1519_v42 = vpop.permute.xlu1 %1518 }
0x144d   : > { %v1521_v43 = vmul.f32 %v3518_v41, %v1519_v42 }
0x144f   : > { %1523 = vrot.lane.b32.xlu0 %v1521_v43, %s3813_s25 }
0x1453   : > { %765 = vrot.lane.b32.xlu0 %v4140_v27, %s3816_s19  ;;  %v1528_v27 = vsub.f32 1.0, %v3518_v41 }
0x1457   : > { %987 = vrot.lane.b32.xlu0 %v4184_v9, %s3816_s19 }
0x145b   : > { %1209 = vrot.lane.b32.xlu0 %v4227_v51, %s3816_s19  ;;  %v1534_v51 = vmul.f32 %v3518_v41, %v1424_v31 }
0x145f   : > { %1431 = vrot.lane.b32.xlu0 %v1424_v31, %s3816_s19 }
0x14c1   : > { %v1524_v7 = vpop.permute.xlu0 %1523 }
0x14c2   : > { %v1526_v44 = vadd.f32 %v3025_v36, %v1524_v7 }
0x14c4   : > { %3519 = vtanh.f32 %v1526_v44 }
0x14c5   : > { %v766_v45 = vpop.permute.xlu0 %765 }
0x14c6   : > { %769 = vst.msk [vmem:[#allocation4 + $0xe] sm:$0x3] %vm763_vm3, %v766_v45 }
0x14c9   : > { %v988_v46 = vpop.permute.xlu0 %987 }
0x14ca   : > { %991 = vst.msk [vmem:[#allocation4 + $0xa] sm:$0x3] %vm763_vm3, %v988_v46 }
0x14cd   : > { %v1210_v48 = vpop.permute.xlu0 %1209  ;;  %v4339_v35 = vld [vmem:[#allocation4 + $0xe] sm:$0x3] }
0x14ce   : > { %1213 = vst.msk [vmem:[#allocation4 + $0x6] sm:$0x3] %vm763_vm3, %v1210_v48  ;;  %v1617_v43 = vmul.f32 %v3028_v15, %v4339_v35 }
0x14d0   : > { %v1639_v44 = vsel %vm763_vm3, %v1617_v43, 0.0 }
0x14d1   : > { %v3520_v49 = vpop.eup %3519  ;;  %v1432_v50 = vpop.permute.xlu0 %1431  ;;  %v4330_v26 = vld [vmem:[#allocation4 + $0xa] sm:$0x3] }
0x14d2   : > { %1435 = vst.msk [vmem:[#allocation4 + $0x2] sm:$0x3] %vm763_vm3, %v1432_v50  ;;  %1530 = vrot.lane.b32.xlu1 %v3520_v49, %s3814_s12  ;;  %v1615_v31 = vmul.f32 %v3028_v15, %v4330_v26 }
0x14d4   : > { %v1633_v32 = vsel %vm763_vm3, %v1615_v31, 0.0 }
0x14d5   : > { %v4324_v21 = vld [vmem:[#allocation4 + $0x6] sm:$0x3] }
0x14d6   : > { %876 = vrot.lane.b32.xlu1 %v4162_v47, %s3816_s19  ;;  %v4282_v47 = vld [vmem:[#allocation3 + $0x2] sm:$0x3]  ;;  %v1613_v25 = vmul.f32 %v3028_v15, %v4324_v21 }
0x14d8   : > { %v1627_v29 = vsel %vm763_vm3, %v1613_v25, 0.0 }
0x14d9   : > { %v4313_v14 = vld [vmem:[#allocation4 + $0x2] sm:$0x3] }
0x14da   : > { %1098 = vrot.lane.b32.xlu1 %v4206_v30, %s3816_s19  ;;  %v3027_v30 = vld [vmem:[%s4705_s3] ss:$0 sm:$0xff]  ;;  %v1611_v19 = vmul.f32 %v3028_v15, %v4313_v14 }
0x14db   : > { %v1572_v56 = vmul.f32 %v3027_v30, %v4282_v47  ;;  %v1573_v59 = vmul.f32 %v3027_v30, %v4288_v57  ;;  %v1571_v60 = vmul.f32 %v3027_v30, %v4290_v58  ;;  %v1575_v61 = vmul.f32 %v3027_v30, %v4295_v4 }
0x14dc   : > { %v1574_v63 = vmul.f32 %v3027_v30, %v4297_v2  ;;  %v1577_v10 = vmul.f32 %v3027_v30, %v4303_v0  ;;  %v1576_v12 = vmul.f32 %v3027_v30, %v4305_v6  ;;  %v1621_v24 = vsel %vm763_vm3, %v1611_v19, 0.0 }
0x14dd   : > { %v1582_v3 = vsel %vm763_vm3, %v1572_v56, 0.0  ;;  %v1585_v5 = vsel %vm763_vm3, %v1573_v59, 0.0  ;;  %v1579_v62 = vsel %vm763_vm3, %v1571_v60, 0.0 }
0x14de   : > { %1320 = vrot.lane.b32.xlu1 %v4248_v8, %s3816_s19  ;;  %v1591_v8 = vsel %vm763_vm3, %v1575_v61, 0.0  ;;  %v1588_v11 = vsel %vm763_vm3, %v1574_v63, 0.0  ;;  %v1597_v16 = vsel %vm763_vm3, %v1577_v10, 0.0  ;;  %v1594_v18 = vsel %vm763_vm3, %v1576_v12, 0.0 }
0x1544   : > { %v1531_v9 = vpop.permute.xlu1 %1530 }
0x1545   : > { %v1533_v52 = vmul.f32 %v1531_v9, %v1528_v27 }
0x1547   : > { %v1535_v53 = vadd.f32 %v1534_v51, %v1533_v52 }
0x1548   : > { %v877_v54 = vpop.permute.xlu1 %876 }
0x1549   : > { %880 = vst.msk [vmem:[#allocation4 + $0xc] sm:$0x3] %vm763_vm3, %v877_v54  ;;  %1542 = vrot.lane.b32.xlu0 %v1535_v53, %s3816_s19  ;;  %1537 = vrot.lane.b32.xlu1 %v1535_v53, %s3814_s12  ;;  %s3822_s19 = smov (!%p3030_p9), 80  }
0x154c   : > { %v1099_v55 = vpop.permute.xlu1 %1098 }
0x154d   : > { %1102 = vst.msk [vmem:[#allocation4 + $0x8] sm:$0x3] %vm763_vm3, %v1099_v55 }
0x1550   : > { %v1321_v1 = vpop.permute.xlu1 %1320  ;;  %v4345_v38 = vld [vmem:[#allocation4 + $0xc] sm:$0x3] }
0x1551   : > { %1324 = vst.msk [vmem:[#allocation4 + $0x4] sm:$0x3] %vm763_vm3, %v1321_v1  ;;  %v1616_v7 = vmul.f32 %v3028_v15, %v4345_v38 }
0x1553   : > { %v1636_v45 = vsel %vm763_vm3, %v1616_v7, 0.0 }
0x1554   : > { %v4322_v20 = vld [vmem:[#allocation4 + $0x8] sm:$0x3] }
0x1555   : > { %v1614_v23 = vmul.f32 %v3028_v15, %v4322_v20 }
0x1557   : > { %v1630_v28 = vsel %vm763_vm3, %v1614_v23, 0.0 }
0x1558   : > { %v4311_v13 = vld [vmem:[#allocation4 + $0x4] sm:$0x3] }
0x1559   : > { %v1612_v17 = vmul.f32 %v3028_v15, %v4311_v13 }
0x155b   : > { %v1624_v22 = vsel %vm763_vm3, %v1612_v17, 0.0 }
0x1568   : > { %1583 = vadd.xlane.f32.xlu0 %v1582_v3 }
0x156c   : > { %1586 = vadd.xlane.f32.xlu0 %v1585_v5 }
0x156d   : > { %1580 = vadd.xlane.f32.xlu1 %v1579_v62 }
0x1570   : > { %1592 = vadd.xlane.f32.xlu0 %v1591_v8 }
0x1571   : > { %1589 = vadd.xlane.f32.xlu1 %v1588_v11 }
0x1574   : > { %1598 = vadd.xlane.f32.xlu0 %v1597_v16 }
0x1575   : > { %1595 = vadd.xlane.f32.xlu1 %v1594_v18 }
0x1578   : > { %1625 = vadd.xlane.f32.xlu0 %v1624_v22 }
0x1579   : > { %1622 = vadd.xlane.f32.xlu1 %v1621_v24 }
0x157c   : > { %1631 = vadd.xlane.f32.xlu0 %v1630_v28 }
0x157d   : > { %1628 = vadd.xlane.f32.xlu1 %v1627_v29 }
0x1581   : > { %1634 = vadd.xlane.f32.xlu1 %v1633_v32 }
0x15bb   : > { %v1538_v33 = vpop.permute.xlu1 %1537  ;;  %v1543_v34 = vpop.permute.xlu0 %1542 }
0x15bc   : > { %1541 = vst.msk [vmem:[#allocation3 + $0xe] sm:$0x3] %vm763_vm3, %v1538_v33  ;;  %1545 = vst.msk [vmem:[#allocation4] sm:$0x3] %vm763_vm3, %v1543_v34 }
0x15bd   : > { %1547 = vst.msk [vmem:[#allocation2] sm:$0x3] %vm1546_vm4, %v1538_v33 }
0x15c3   : > { %v4341_v36 = vld [vmem:[#allocation3 + $0xe] sm:$0x3]  ;;  %v4343_v37 = vld [vmem:[#allocation4] sm:$0x3] }
0x15c4   : > { %v1578_v39 = vmul.f32 %v3027_v30, %v4341_v36  ;;  %v1610_v40 = vmul.f32 %v3028_v15, %v4343_v37 }
0x15c6   : > { %v1600_v41 = vsel %vm763_vm3, %v1578_v39, 0.0  ;;  %v1618_v42 = vsel %vm763_vm3, %v1610_v40, 0.0 }
0x15c7   : > { %1601 = vadd.xlane.f32.xlu1 %v1600_v41  ;;  %1619 = vadd.xlane.f32.xlu0 %v1618_v42 }
0x15cb   : > { %1640 = vadd.xlane.f32.xlu1 %v1639_v44  ;;  %1637 = vadd.xlane.f32.xlu0 %v1636_v45 }
0x15f1   : > { %v1584_v46 = vpop.xlane.xlu0 %1583 }
0x15f5   : > { %v1587_v49 = vpop.xlane.xlu0 %1586 }
0x15f6   : > { %v1581_v48 = vpop.xlane.xlu1 %1580 }
0x15f9   : > { %v1593_v27 = vpop.xlane.xlu0 %1592 }
0x15fa   : > { %v1590_v50 = vpop.xlane.xlu1 %1589 }
0x15fd   : > { %v1599_v51 = vpop.xlane.xlu0 %1598 }
0x15fe   : > { %v1596_v9 = vpop.xlane.xlu1 %1595 }
0x1601   : > { %v1626_v53 = vpop.xlane.xlu0 %1625 }
0x1602   : > { %v1623_v52 = vpop.xlane.xlu1 %1622  ;;  %v1644_v3 = vadd.f32 %v1626_v53, %v1587_v49 }
0x1603   : > { %v1643_v59 = vadd.f32 %v1623_v52, %v1584_v46 }
0x1604   : > { %v1652_v11 = vmax.f32 %v1644_v3, 0.0 }
0x1605   : > { %v1632_v55 = vpop.xlane.xlu0 %1631  ;;  %v1651_v12 = vmax.f32 %v1643_v59, 0.0 }
0x1606   : > { %v1629_v54 = vpop.xlane.xlu1 %1628  ;;  %v1646_v30 = vadd.f32 %v1632_v55, %v1593_v27  ;;  %v1661_v29 = vsel %vm1658_vm5, %v1652_v11, -inf }
0x1607   : > { %v1645_v61 = vadd.f32 %v1629_v54, %v1590_v50  ;;  %v1660_v32 = vsel %vm1658_vm5, %v1651_v12, -inf }
0x1608   : > { %v1654_v63 = vmax.f32 %v1646_v30, 0.0 }
0x1609   : > { %v1653_v17 = vmax.f32 %v1645_v61, 0.0 }
0x160a   : > { %v1635_v1 = vpop.xlane.xlu1 %1634  ;;  %v1663_v23 = vsel %vm1658_vm5, %v1654_v63, -inf }
0x160b   : > { %v1647_v56 = vadd.f32 %v1635_v1, %v1596_v9  ;;  %v1662_v33 = vsel %vm1658_vm5, %v1653_v17, -inf }
0x160d   : > { %v1655_v8 = vmax.f32 %v1647_v56, 0.0 }
0x160f   : > { %v1665_v24 = vsel %vm1658_vm5, %v1655_v8, -inf }
0x1610   : > { %v1666_v40 = vmax.f32 %v1660_v32, %v1665_v24 }
0x1650   : > { %v1602_v60 = vpop.xlane.xlu1 %1601  ;;  %v1620_v5 = vpop.xlane.xlu0 %1619 }
0x1651   : > { %v1642_v62 = vadd.f32 %v1620_v5, %v1581_v48 }
0x1653   : > { %v1650_v10 = vmax.f32 %v1642_v62, 0.0 }
0x1654   : > { %v1641_v15 = vpop.xlane.xlu1 %1640  ;;  %v1638_v16 = vpop.xlane.xlu0 %1637 }
0x1655   : > { %v1659_v18 = vsel %vm1658_vm5, %v1650_v10, -inf  ;;  %v1649_v19 = vadd.f32 %v1641_v15, %v1602_v60  ;;  %v1648_v22 = vadd.f32 %v1638_v16, %v1599_v51 }
0x1656   : > { %v1664_v31 = vmax.f32 %v1659_v18, %v1663_v23 }
0x1657   : > { %v1657_v25 = vmax.f32 %v1649_v19, 0.0  ;;  %v1656_v28 = vmax.f32 %v1648_v22, 0.0 }
0x1658   : > { %v1671_v43 = vmax.f32 %v1664_v31, %v1666_v40 }
0x1659   : > { %v1669_v34 = vsel %vm1658_vm5, %v1657_v25, -inf  ;;  %v1667_v39 = vsel %vm1658_vm5, %v1656_v28, -inf }
0x165a   : > { %v1670_v41 = vmax.f32 %v1662_v33, %v1669_v34  ;;  %v1668_v42 = vmax.f32 %v1661_v29, %v1667_v39 }
0x165c   : > { %v1672_v7 = vmax.f32 %v1668_v42, %v1670_v41 }
0x165e   : > { %v1673_v44 = vmax.f32 %v1671_v43, %v1672_v7 }
0x1660   : > { %v1674_v45 = vsub.f32 %v1650_v10, %v1673_v44  ;;  %v1675_v46 = vsub.f32 %v1651_v12, %v1673_v44  ;;  %v1676_v48 = vsub.f32 %v1652_v11, %v1673_v44  ;;  %v1677_v49 = vsub.f32 %v1653_v17, %v1673_v44 }
0x1661   : > { %v1678_v50 = vsub.f32 %v1654_v63, %v1673_v44  ;;  %v1679_v52 = vsub.f32 %v1655_v8, %v1673_v44  ;;  %v1680_v54 = vsub.f32 %v1656_v28, %v1673_v44  ;;  %v1681_v1 = vsub.f32 %v1657_v25, %v1673_v44 }
0x1662   : > { %v1682_v27 = vmul.f32 1.442695, %v1674_v45  ;;  %v1684_v9 = vmul.f32 1.442695, %v1675_v46  ;;  %v1686_v51 = vmul.f32 1.442695, %v1676_v48 }
0x1663   : > { %v1688_v53 = vmul.f32 1.442695, %v1677_v49  ;;  %v1690_v55 = vmul.f32 1.442695, %v1678_v50  ;;  %v1692_v30 = vmul.f32 1.442695, %v1679_v52 }
0x1664   : > { %3521 = vpow2.f32 %v1682_v27  ;;  %v1694_v56 = vmul.f32 1.442695, %v1680_v54  ;;  %v1696_v3 = vmul.f32 1.442695, %v1681_v1 }
0x1665   : > { %3523 = vpow2.f32 %v1684_v9 }
0x1666   : > { %3525 = vpow2.f32 %v1686_v51 }
0x1667   : > { %3527 = vpow2.f32 %v1688_v53 }
0x1668   : > { %3529 = vpow2.f32 %v1690_v55 }
0x1669   : > { %3531 = vpow2.f32 %v1692_v30 }
0x166a   : > { %3533 = vpow2.f32 %v1694_v56 }
0x166b   : > { %3535 = vpow2.f32 %v1696_v3 }
0x1671   : > { %v3522_v59 = vpop.eup %3521 }
0x1672   : > { %v3524_v60 = vpop.eup %3523  ;;  %v1698_v5 = vsel %vm1658_vm5, %v3522_v59, 0.0 }
0x1673   : > { %v3526_v61 = vpop.eup %3525  ;;  %v1699_v62 = vsel %vm1658_vm5, %v3524_v60, 0.0 }
0x1674   : > { %v3528_v63 = vpop.eup %3527  ;;  %v1700_v8 = vadd.f32 %v1699_v62, %v1698_v5  ;;  %v1701_v10 = vsel %vm1658_vm5, %v3526_v61, 0.0 }
0x1675   : > { %v3530_v11 = vpop.eup %3529  ;;  %v1703_v15 = vsel %vm1658_vm5, %v3528_v63, 0.0 }
0x1676   : > { %v1702_v12 = vadd.f32 %v1701_v10, %v1700_v8  ;;  %v3532_v16 = vpop.eup %3531  ;;  %v1705_v18 = vsel %vm1658_vm5, %v3530_v11, 0.0 }
0x1677   : > { %v3534_v19 = vpop.eup %3533  ;;  %v1707_v23 = vsel %vm1658_vm5, %v3532_v16, 0.0 }
0x1678   : > { %v1704_v17 = vadd.f32 %v1703_v15, %v1702_v12  ;;  %v3536_v24 = vpop.eup %3535  ;;  %v1709_v28 = vsel %vm1658_vm5, %v3534_v19, 0.0 }
0x1679   : > { %v1711_v31 = vsel %vm1658_vm5, %v3536_v24, 0.0 }
0x167a   : > { %v1706_v22 = vadd.f32 %v1705_v18, %v1704_v17 }
0x167c   : > { %v1708_v25 = vadd.f32 %v1707_v23, %v1706_v22 }
0x167e   : > { %v1710_v29 = vadd.f32 %v1709_v28, %v1708_v25 }
0x1680   : > { %v1712_v32 = vadd.f32 %v1711_v31, %v1710_v29 }
0x1682   : > { %3537 = vrcp.f32 %v1712_v32 }
0x168f   : > { %v3538_v33 = vpop.eup %3537 }
0x1690   : > { %v1714_v34 = vmul.f32 %v3538_v33, %v3522_v59  ;;  %v1715_v39 = vmul.f32 %v3538_v33, %v3524_v60  ;;  %v1716_v40 = vmul.f32 %v3538_v33, %v3526_v61  ;;  %v1717_v41 = vmul.f32 %v3538_v33, %v3528_v63 }
0x1691   : > { %v1718_v42 = vmul.f32 %v3538_v33, %v3530_v11  ;;  %v1719_v45 = vmul.f32 %v3538_v33, %v3532_v16  ;;  %v1720_v50 = vmul.f32 %v3538_v33, %v3534_v19  ;;  %v1721_v53 = vmul.f32 %v3538_v33, %v3536_v24 }
0x1692   : > { %v1745_v43 = vmul.f32 %v1714_v34, %v4343_v37  ;;  %v1746_v7 = vmul.f32 %v1715_v39, %v4313_v14  ;;  %v1747_v44 = vmul.f32 %v1716_v40, %v4311_v13  ;;  %v1748_v46 = vmul.f32 %v1717_v41, %v4324_v21 }
0x1693   : > { %v1749_v9 = vmul.f32 %v1718_v42, %v4322_v20  ;;  %v1723_v52 = vmul.f32 %v1715_v39, %v4282_v47  ;;  %v1750_v14 = vmul.f32 %v1719_v45, %v4330_v26  ;;  %v1751_v21 = vmul.f32 %v1720_v50, %v4345_v38 }
0x1694   : > { %v1753_v48 = vsel %vm763_vm3, %v1745_v43, 0.0  ;;  %v1754_v49 = vsel %vm763_vm3, %v1746_v7, 0.0  ;;  %v1756_v51 = vsel %vm763_vm3, %v1747_v44, 0.0  ;;  %v1758_v13 = vsel %vm763_vm3, %v1748_v46, 0.0 }
0x1695   : > { %v1755_v27 = vadd.f32 %v1754_v49, %v1753_v48  ;;  %v1760_v55 = vsel %vm763_vm3, %v1749_v9, 0.0  ;;  %v1724_v1 = vmul.f32 %v1716_v40, %v4288_v57  ;;  %v1731_v30 = vsel %vm763_vm3, %v1723_v52, 0.0 }
0x1696   : > { %v1722_v20 = vmul.f32 %v1714_v34, %v4290_v58  ;;  %v1752_v47 = vmul.f32 %v1721_v53, %v4339_v35  ;;  %v1762_v3 = vsel %vm763_vm3, %v1750_v14, 0.0  ;;  %v1725_v26 = vmul.f32 %v1717_v41, %v4297_v2 }
0x1697   : > { %v1757_v37 = vadd.f32 %v1756_v51, %v1755_v27  ;;  %v1764_v5 = vsel %vm763_vm3, %v1751_v21, 0.0  ;;  %v1726_v61 = vmul.f32 %v1718_v42, %v4295_v4  ;;  %v1733_v57 = vsel %vm763_vm3, %v1724_v1, 0.0 }
0x1698   : > { %v1730_v59 = vsel %vm763_vm3, %v1722_v20, 0.0  ;;  %v1766_v58 = vsel %vm763_vm3, %v1752_v47, 0.0  ;;  %v1727_v35 = vmul.f32 %v1719_v45, %v4305_v6  ;;  %v1735_v8 = vsel %vm763_vm3, %v1725_v26, 0.0 }
0x1699   : > { %v1759_v54 = vadd.f32 %v1758_v13, %v1757_v37  ;;  %v1732_v38 = vadd.f32 %v1731_v30, %v1730_v59  ;;  %v1728_v11 = vmul.f32 %v1720_v50, %v4303_v0  ;;  %v1737_v12 = vsel %vm763_vm3, %v1726_v61, 0.0 }
0x169a   : > { %v1729_v15 = vmul.f32 %v1721_v53, %v4341_v36  ;;  %v1739_v16 = vsel %vm763_vm3, %v1727_v35, 0.0 }
0x169b   : > { %v1761_v56 = vadd.f32 %v1760_v55, %v1759_v54  ;;  %v1734_v63 = vadd.f32 %v1733_v57, %v1732_v38  ;;  %v1741_v18 = vsel %vm763_vm3, %v1728_v11, 0.0 }
0x169c   : > { %v1743_v19 = vsel %vm763_vm3, %v1729_v15, 0.0 }
0x169d   : > { %v1763_v60 = vadd.f32 %v1762_v3, %v1761_v56  ;;  %v1736_v10 = vadd.f32 %v1735_v8, %v1734_v63 }
0x169f   : > { %v1765_v62 = vadd.f32 %v1764_v5, %v1763_v60  ;;  %v1738_v4 = vadd.f32 %v1737_v12, %v1736_v10 }
0x16a1   : > { %v1767_v2 = vadd.f32 %v1766_v58, %v1765_v62  ;;  %v1740_v17 = vadd.f32 %v1739_v16, %v1738_v4 }
0x16a3   : > { %1769 = vrot.lane.b32.xlu0 %v1767_v2, %s3817_s18  ;;  %v1742_v6 = vadd.f32 %v1741_v18, %v1740_v17 }
0x16a5   : > { %v1744_v22 = vadd.f32 %v1743_v19, %v1742_v6 }
0x1713   : > { %1780 = sbr.rel (%p3030_p9) target bundleno = 8990 (0x231e), region = 112 }
0x1715   : > { %v1770_v23 = vpop.permute.xlu0 %1769 }
0x1716   : > { %v1773_v0 = vsel %vm1772_vm6, %v1744_v22, %v1770_v23 }
0x1717   : > { %1776 = vst.msk [vmem:[%s1775_s5] sm:$0x3] %vm1546_vm4, %v1773_v0 }
0x1718   : > { %v4407_v36 = vld [vmem:[#allocation13 + $0x18] sm:$0xff]  ;;  %v3818_v25 = vmov 0.0   ;;  %v4413_v28 = vld [vmem:[#allocation13 + $0x10] sm:$0xff]  ;;  %v4421_v31 = vld [vmem:[#allocation13 + $0x8] sm:$0xff]  ;;  %vm3819_vm7 = vmmov 0   ;;  %vm2651_vm8 = vcmask 1024  }
0x1719   : > { %v4409_v24 = vld [vmem:[#allocation11 + $0x18] sm:$0xff]  ;;  %3240 = vmatprep.subr.mxu0 %v3818_v25  ;;  %3251 = vmatprep.subr.mxu1 %v3818_v25  ;;  %v4415_v29 = vld [vmem:[#allocation11 + $0x10] sm:$0xff]  ;;  %v4423_v32 = vld [vmem:[#allocation11 + $0x8] sm:$0xff]  ;;  %vm2848_vm10 = vcmask 9216  }
0x171a   : > { %3241 = vmatpush3.msra.mxu0 %v4407_v36  ;;  %3252 = vmatpush3.msra.mxu1 %v4409_v24  ;;  %v4429_v33 = vld [vmem:[#allocation13] sm:$0xff]  ;;  %v4440_v41 = vld [vmem:[#allocation14 + $0x18] sm:$0xff]  ;;  %v4447_v42 = vld [vmem:[#allocation14 + $0x10] sm:$0xff] }
0x171b   : > { %3242 = vmatprep.subr.mxu0 %v3818_v25  ;;  %3253 = vmatprep.subr.mxu1 %v3818_v25  ;;  %v4433_v39 = vld [vmem:[#allocation11] sm:$0xff]  ;;  %v4452_v43 = vld [vmem:[#allocation14 + $0x8] sm:$0xff] }
0x171c   : > { %3243 = vmatpush3.msra.mxu0 %v4413_v28  ;;  %3254 = vmatpush3.msra.mxu1 %v4415_v29  ;;  %v4459_v7 = vld [vmem:[#allocation14] sm:$0xff]  ;;  %v4489_v50 = vld [vmem:[%s4711_s9] ss:$0 sm:$0xff] }
0x171d   : > { %3244 = vmatprep.subr.mxu0 %v3818_v25  ;;  %3255 = vmatprep.subr.mxu1 %v3818_v25  ;;  %v4496_v52 = vld [vmem:[%s4709_s7] ss:$0 sm:$0xff] }
0x171e   : > { %3245 = vmatpush3.msra.mxu0 %v4421_v31  ;;  %3256 = vmatpush3.msra.mxu1 %v4423_v32  ;;  %v1797_v34 = vld [vmem:[#allocation5 + $0x4] sm:$0x3]  ;;  %v1795_v40 = vld [vmem:[#allocation5] sm:$0x3]  ;;  %v2067_v56 = vld [vmem:[#allocation5 + $0x2] sm:$0x3] }
0x171f   : > { %3246 = vmatprep.subr.mxu0 %v3818_v25  ;;  %3248 = vmatprep.mubr.msk.f32.mxu0 %vm3819_vm7, %v3818_v25  ;;  %v2322_v22 = vld [vmem:[#allocation5] sm:$0x3]  ;;  %v2321_v23 = vld [vmem:[#allocation5 + $0x4] sm:$0x3] }
0x1720   : > { %3247 = vmatpush3.msra.mxu0 %v4429_v33  ;;  %3257 = vmatprep.subr.mxu1 %v3818_v25 }
0x1721   : > { %3249 = vmatmul.mubr.msk.f32.vlgmr.msra.gmra.mxu0 %vm655_vm2, %v1797_v34  ;;  %3258 = vmatpush3.msra.mxu1 %v4433_v39 }
0x1722   : > { %3259 = vmatprep.mubr.msk.f32.mxu1 %vm3819_vm7, %v3818_v25  ;;  %3262 = vmatprep.subr.mxu0 %v3818_v25 }
0x1723   : > { %3260 = vmatmul.mubr.msk.f32.vlgmr.msra.gmra.mxu1 %vm655_vm2, %v1795_v40  ;;  %3263 = vmatpush3.msra.mxu0 %v4440_v41 }
0x1724   : > { %3264 = vmatprep.subr.mxu0 %v3818_v25  ;;  %3270 = vmatprep.mubr.msk.f32.mxu0 %vm3819_vm7, %v3818_v25 }
0x1725   : > { %3265 = vmatpush3.msra.mxu0 %v4447_v42  ;;  %3273 = vmatprep.subr.mxu1 %v3818_v25 }
0x1726   : > { %3266 = vmatprep.subr.mxu0 %v3818_v25  ;;  %3274 = vmatpush3.msra.mxu1 %v4407_v36 }
0x1727   : > { %3267 = vmatpush3.msra.mxu0 %v4452_v43  ;;  %3275 = vmatprep.subr.mxu1 %v3818_v25 }
0x1728   : > { %3268 = vmatprep.subr.mxu0 %v3818_v25  ;;  %3276 = vmatpush3.msra.mxu1 %v4413_v28 }
0x1729   : > { %3269 = vmatpush3.msra.mxu0 %v4459_v7  ;;  %3277 = vmatprep.subr.mxu1 %v3818_v25 }
0x172a   : > { %3271 = vmatmul.mubr.f32.vlgmr.msra.gmra.mxu0 %v3818_v25  ;;  %3284 = vmatprep.subr.mxu0 %v3818_v25 }
0x172b   : > { %3285 = vmatpush3.msra.mxu0 %v4409_v24  ;;  %3278 = vmatpush3.msra.mxu1 %v4421_v31 }
0x172c   : > { %3286 = vmatprep.subr.mxu0 %v3818_v25  ;;  %3279 = vmatprep.subr.mxu1 %v3818_v25 }
0x172d   : > { %3287 = vmatpush3.msra.mxu0 %v4415_v29  ;;  %3280 = vmatpush3.msra.mxu1 %v4429_v33 }
0x172e   : > { %3288 = vmatprep.subr.mxu0 %v3818_v25  ;;  %3281 = vmatprep.mubr.msk.f32.mxu1 %vm3819_vm7, %v3818_v25 }
0x172f   : > { %3289 = vmatpush3.msra.mxu0 %v4423_v32  ;;  %3292 = vmatprep.mubr.msk.f32.mxu0 %vm3819_vm7, %v3818_v25 }
0x1730   : > { %3290 = vmatprep.subr.mxu0 %v3818_v25  ;;  %3295 = vmatprep.subr.mxu1 %v3818_v25 }
0x1731   : > { %3291 = vmatpush3.msra.mxu0 %v4433_v39  ;;  %3282 = vmatmul.mubr.msk.f32.vlgmr.msra.gmra.mxu1 %vm655_vm2, %v2067_v56 }
0x1732   : > { %3306 = vmatprep.subr.mxu0 %v3818_v25  ;;  %3293 = vmatmul.mubr.msk.f32.vlgmr.msra.gmra.mxu0 %vm655_vm2, %v2067_v56 }
0x1733   : > { %3296 = vmatpush3.msra.mxu1 %v4440_v41  ;;  %3303 = vmatprep.mubr.msk.f32.mxu1 %vm3819_vm7, %v3818_v25 }
0x1734   : > { %3297 = vmatprep.subr.mxu1 %v3818_v25  ;;  %3307 = vmatpush3.msra.mxu0 %v4407_v36 }
0x1735   : > { %3298 = vmatpush3.msra.mxu1 %v4447_v42  ;;  %3308 = vmatprep.subr.mxu0 %v3818_v25 }
0x1736   : > { %3299 = vmatprep.subr.mxu1 %v3818_v25  ;;  %3309 = vmatpush3.msra.mxu0 %v4413_v28 }
0x1737   : > { %3300 = vmatpush3.msra.mxu1 %v4452_v43  ;;  %3310 = vmatprep.subr.mxu0 %v3818_v25 }
0x1738   : > { %3301 = vmatprep.subr.mxu1 %v3818_v25  ;;  %3311 = vmatpush3.msra.mxu0 %v4421_v31 }
0x1739   : > { %3302 = vmatpush3.msra.mxu1 %v4459_v7  ;;  %3312 = vmatprep.subr.mxu0 %v3818_v25 }
0x173a   : > { %3317 = vmatprep.subr.mxu1 %v3818_v25  ;;  %3313 = vmatpush3.msra.mxu0 %v4429_v33 }
0x173b   : > { %3314 = vmatprep.mubr.msk.f32.mxu0 %vm3819_vm7, %v3818_v25  ;;  %3328 = vmatprep.subr.mxu0 %v3818_v25 }
0x173c   : > { %3315 = vmatmul.mubr.msk.f32.vlgmr.msra.gmra.mxu0 %vm655_vm2, %v2322_v22 }
0x173d   : > { %3329 = vmatpush3.msra.mxu0 %v4440_v41  ;;  %3336 = vmatprep.mubr.msk.f32.mxu0 %vm3819_vm7, %v3818_v25 }
0x173e   : > { %3330 = vmatprep.subr.mxu0 %v3818_v25 }
0x173f   : > { %3331 = vmatpush3.msra.mxu0 %v4447_v42 }
0x1740   : > { %3332 = vmatprep.subr.mxu0 %v3818_v25 }
0x1741   : > { %3333 = vmatpush3.msra.mxu0 %v4452_v43 }
0x1742   : > { %3334 = vmatprep.subr.mxu0 %v3818_v25 }
0x1743   : > { %3335 = vmatpush3.msra.mxu0 %v4459_v7 }
0x1744   : > { %3350 = vmatprep.subr.mxu0 %v3818_v25 }
0x17e1   : > { %v1867_v44 = vpop.f32.mrf.mxu0 }
0x17e3   : > { %v1940_v45 = vpop.f32.mrf.mxu1  ;;  %v3250_v46 = vpop.f32.mrf.mxu0 }
0x17e4   : > { %v1941_v48 = vadd.f32 %v1940_v45, %v1867_v44 }
0x17e5   : > { %v3261_v49 = vpop.f32.mrf.mxu1 }
0x17e6   : > { %v1950_v37 = vadd.f32 %v4496_v52, %v1941_v48 }
0x17ea   : > { %v2026_v27 = vpop.f32.mrf.mxu0 }
0x17eb   : > { %v2027_v9 = vadd.f32 %v4489_v50, %v2026_v27 }
0x17ec   : > { %v3272_v51 = vpop.f32.mrf.mxu0 }
0x17ed   : > { %2038 = vrot.lane.b32.xlu0 %v2027_v9, %s3820_s24  ;;  %v2030_v53 = vadd.f32 %v2027_v9, %v1950_v37 }
0x17ef   : > { %v3035_v14 = vmul.f32 -1.442695, %v2030_v53 }
0x17f1   : > { %3539 = vpow2.f32 %v3035_v14  ;;  %v2137_v5 = vpop.f32.mrf.mxu1 }
0x17f2   : > { %v2207_v61 = vpop.f32.mrf.mxu0 }
0x17f3   : > { %v2208_v57 = vadd.f32 %v2207_v61, %v2137_v5  ;;  %v3283_v62 = vpop.f32.mrf.mxu1 }
0x17f4   : > { %v3294_v63 = vpop.f32.mrf.mxu0 }
0x17f5   : > { %v2211_v10 = vadd.f32 %v4496_v52, %v2208_v57 }
0x17fe   : > { %v3540_v13 = vpop.eup %3539 }
0x17ff   : > { %v2034_v21 = vadd.f32 1.0, %v3540_v13 }
0x1801   : > { %3541 = vrcp.f32 %v2034_v21 }
0x180e   : > { %v3542_v54 = vpop.eup %3541 }
0x180f   : > { %v2048_v3 = vsub.f32 1.0, %v3542_v54  ;;  %v2054_v59 = vmul.f32 0.0, %v3542_v54 }
0x185f   : > { %v2039_v55 = vpop.permute.xlu0 %2038 }
0x1860   : > { %v2041_v1 = vmul.f32 %v3542_v54, %v2039_v55  ;;  %v3045_v55 = vld [vmem:[%s4713_s11] ss:$0 sm:$0xff] }
0x1862   : > { %2043 = vrot.lane.b32.xlu0 %v2041_v1, %s3820_s24 }
0x18d4   : > { %v2044_v30 = vpop.permute.xlu0 %2043 }
0x18d5   : > { %v2046_v20 = vadd.f32 %v2044_v30, %v1950_v37 }
0x18d7   : > { %3543 = vtanh.f32 %v2046_v20 }
0x18e4   : > { %v3544_v47 = vpop.eup %3543 }
0x18e5   : > { %2050 = vrot.lane.b32.xlu1 %v3544_v47, %s3821_s8 }
0x1957   : > { %v2051_v26 = vpop.permute.xlu1 %2050 }
0x1958   : > { %v2053_v60 = vmul.f32 %v2051_v26, %v2048_v3 }
0x195a   : > { %v4523_v38 = vadd.f32 %v2054_v59, %v2053_v60 }
0x195c   : > { %2057 = vrot.lane.b32.xlu1 %v4523_v38, %s3821_s8 }
0x19ce   : > { %v2058_v58 = vpop.permute.xlu1 %2057 }
0x19cf   : > { %2060 = vst.msk [vmem:[#allocation6] sm:$0x3] %vm763_vm3, %v2058_v58  ;;  %3304 = vmatmul.mubr.msk.f32.vlgmr.msra.gmra.mxu1 %vm655_vm2, %v2058_v58 }
0x19d0   : > { %3318 = vmatpush3.msra.mxu1 %v4409_v24  ;;  %3325 = vmatprep.mubr.msk.f32.mxu1 %vm3819_vm7, %v3818_v25 }
0x19d1   : > { %3319 = vmatprep.subr.mxu1 %v3818_v25 }
0x19d2   : > { %3320 = vmatpush3.msra.mxu1 %v4415_v29 }
0x19d3   : > { %3321 = vmatprep.subr.mxu1 %v3818_v25 }
0x19d4   : > { %3322 = vmatpush3.msra.mxu1 %v4423_v32  ;;  %v2392_v32 = vpop.f32.mrf.mxu0 }
0x19d5   : > { %3323 = vmatprep.subr.mxu1 %v3818_v25 }
0x19d6   : > { %3324 = vmatpush3.msra.mxu1 %v4433_v39  ;;  %v3316_v39 = vpop.f32.mrf.mxu0 }
0x19d7   : > { %3339 = vmatprep.subr.mxu1 %v3818_v25  ;;  %3326 = vmatmul.mubr.msk.f32.vlgmr.msra.gmra.mxu1 %vm655_vm2, %v2321_v23 }
0x19d8   : > { %3347 = vmatprep.mubr.msk.f32.mxu1 %vm3819_vm7, %v3818_v25 }
0x1a8f   : > { %v2280_v35 = vpop.f32.mrf.mxu1 }
0x1a90   : > { %v2281_v8 = vadd.f32 %v4489_v50, %v2280_v35 }
0x1a91   : > { %v3305_v2 = vpop.f32.mrf.mxu1 }
0x1a92   : > { %2292 = vrot.lane.b32.xlu0 %v2281_v8, %s3820_s24  ;;  %v2284_v11 = vadd.f32 %v2281_v8, %v2211_v10 }
0x1a94   : > { %v3039_v12 = vmul.f32 -1.442695, %v2284_v11 }
0x1a96   : > { %3545 = vpow2.f32 %v3039_v12 }
0x1a97   : > { %v2465_v33 = vpop.f32.mrf.mxu1 }
0x1a98   : > { %v2466_v34 = vadd.f32 %v2465_v33, %v2392_v32 }
0x1a99   : > { %v3327_v40 = vpop.f32.mrf.mxu1 }
0x1a9a   : > { %v2469_v44 = vadd.f32 %v4496_v52, %v2466_v34  ;;  %v3044_v52 = vld [vmem:[%s4712_s10] ss:$0 sm:$0xff] }
0x1aa3   : > { %v3546_v4 = vpop.eup %3545 }
0x1aa4   : > { %v2288_v15 = vadd.f32 1.0, %v3546_v4 }
0x1aa6   : > { %3547 = vrcp.f32 %v2288_v15  ;;  %v2680_v15 = vld [vmem:[#allocation16 + $0x18] sm:$0xff] }
0x1aa7   : > { %3340 = vmatpush3.msra.mxu1 %v2680_v15 }
0x1aa8   : > { %3341 = vmatprep.subr.mxu1 %v3818_v25 }
0x1ab3   : > { %v3548_v16 = vpop.eup %3547 }
0x1ab4   : > { %v2302_v36 = vsub.f32 1.0, %v3548_v16  ;;  %v2308_v28 = vmul.f32 %v3548_v16, %v4523_v38 }
0x1b04   : > { %v2293_v17 = vpop.permute.xlu0 %2292 }
0x1b05   : > { %v2295_v18 = vmul.f32 %v3548_v16, %v2293_v17  ;;  %v2679_v16 = vld [vmem:[#allocation16 + $0x10] sm:$0xff]  ;;  %v2678_v17 = vld [vmem:[#allocation16 + $0x8] sm:$0xff] }
0x1b06   : > { %3342 = vmatpush3.msra.mxu1 %v2679_v16 }
0x1b07   : > { %2297 = vrot.lane.b32.xlu1 %v2295_v18, %s3820_s24  ;;  %3343 = vmatprep.subr.mxu1 %v3818_v25 }
0x1b08   : > { %3344 = vmatpush3.msra.mxu1 %v2678_v17 }
0x1b09   : > { %3345 = vmatprep.subr.mxu1 %v3818_v25 }
0x1b79   : > { %v2298_v6 = vpop.permute.xlu1 %2297 }
0x1b7a   : > { %v2300_v19 = vadd.f32 %v2298_v6, %v2211_v10 }
0x1b7c   : > { %3549 = vtanh.f32 %v2300_v19 }
0x1b89   : > { %v3550_v0 = vpop.eup %3549 }
0x1b8a   : > { %2304 = vrot.lane.b32.xlu0 %v3550_v0, %s3821_s8 }
0x1bfc   : > { %v2305_v24 = vpop.permute.xlu0 %2304 }
0x1bfd   : > { %v2307_v29 = vmul.f32 %v2305_v24, %v2302_v36 }
0x1bff   : > { %v2309_v31 = vadd.f32 %v2308_v28, %v2307_v29 }
0x1c01   : > { %2311 = vrot.lane.b32.xlu1 %v2309_v31, %s3821_s8 }
0x1c73   : > { %v2312_v41 = vpop.permute.xlu1 %2311 }
0x1c74   : > { %2315 = vst.msk [vmem:[#allocation6 + $0x2] sm:$0x3] %vm763_vm3, %v2312_v41  ;;  %3337 = vmatmul.mubr.msk.f32.vlgmr.msra.gmra.mxu0 %vm655_vm2, %v2312_v41 }
0x1c75   : > { %3358 = vmatprep.mubr.msk.f32.mxu0 %vm3819_vm7, %v3818_v25 }
0x1c7b   : > { %v4594_v57 = vld [vmem:[#allocation6 + $0x2] sm:$0x3] }
0x1c7c   : > { %v2592_v62 = vmul.f32 %v3044_v52, %v4594_v57 }
0x1c7e   : > { %v2597_v63 = vsel %vm763_vm3, %v2592_v62, 0.0 }
0x1d34   : > { %v2538_v42 = vpop.f32.mrf.mxu0 }
0x1d35   : > { %v2539_v43 = vadd.f32 %v4489_v50, %v2538_v42  ;;  %v4571_v50 = vld [vmem:[#allocation6] sm:$0x3] }
0x1d36   : > { %v3338_v7 = vpop.f32.mrf.mxu0  ;;  %v2591_v37 = vmul.f32 %v3044_v52, %v4571_v50 }
0x1d37   : > { %2550 = vrot.lane.b32.xlu0 %v2539_v43, %s3820_s24  ;;  %v2542_v45 = vadd.f32 %v2539_v43, %v2469_v44 }
0x1d38   : > { %v2594_v53 = vsel %vm763_vm3, %v2591_v37, 0.0 }
0x1d39   : > { %v3043_v46 = vmul.f32 -1.442695, %v2542_v45 }
0x1d3b   : > { %3551 = vpow2.f32 %v3043_v46 }
0x1d48   : > { %v3552_v48 = vpop.eup %3551 }
0x1d49   : > { %v2546_v49 = vadd.f32 1.0, %v3552_v48 }
0x1d4b   : > { %3553 = vrcp.f32 %v2546_v49 }
0x1d58   : > { %v3554_v27 = vpop.eup %3553 }
0x1d59   : > { %v2560_v59 = vsub.f32 1.0, %v3554_v27 }
0x1da9   : > { %v2551_v9 = vpop.permute.xlu0 %2550 }
0x1daa   : > { %v2553_v51 = vmul.f32 %v3554_v27, %v2551_v9 }
0x1dac   : > { %2555 = vrot.lane.b32.xlu1 %v2553_v51, %s3820_s24 }
0x1db0   : > { %2316 = vrot.lane.b32.xlu1 %v2309_v31, %s3822_s19 }
0x1db4   : > { %2061 = vrot.lane.b32.xlu1 %v4523_v38, %s3822_s19  ;;  %v2566_v38 = vmul.f32 %v3554_v27, %v2309_v31 }
0x1dd8   : > { %2595 = vadd.xlane.f32.xlu1 %v2594_v53 }
0x1e1e   : > { %v2556_v14 = vpop.permute.xlu1 %2555 }
0x1e1f   : > { %v2558_v13 = vadd.f32 %v2556_v14, %v2469_v44  ;;  %v2677_v14 = vld [vmem:[#allocation16] sm:$0xff] }
0x1e20   : > { %3346 = vmatpush3.msra.mxu1 %v2677_v14 }
0x1e21   : > { %3555 = vtanh.f32 %v2558_v13  ;;  %v2767_v13 = vld [vmem:[%s4716_s14 + $0x18] sm:$0xff] }
0x1e22   : > { %v2317_v21 = vpop.permute.xlu1 %2316  ;;  %3351 = vmatpush3.msra.mxu0 %v2767_v13 }
0x1e23   : > { %2320 = vst.msk [vmem:[#allocation7 + $0x2] sm:$0x3] %vm763_vm3, %v2317_v21  ;;  %3352 = vmatprep.subr.mxu0 %v3818_v25 }
0x1e26   : > { %v2062_v54 = vpop.permute.xlu1 %2061 }
0x1e27   : > { %2065 = vst.msk [vmem:[#allocation7 + $0x4] sm:$0x3] %vm763_vm3, %v2062_v54 }
0x1e2a   : > { %v4583_v1 = vld [vmem:[#allocation7 + $0x2] sm:$0x3] }
0x1e2b   : > { %v2611_v30 = vmul.f32 %v3045_v55, %v4583_v1 }
0x1e2d   : > { %v2616_v20 = vsel %vm763_vm3, %v2611_v30, 0.0 }
0x1e2e   : > { %v3556_v56 = vpop.eup %3555  ;;  %2617 = vadd.xlane.f32.xlu1 %v2616_v20  ;;  %v4587_v47 = vld [vmem:[#allocation7 + $0x4] sm:$0x3] }
0x1e2f   : > { %2562 = vrot.lane.b32.xlu0 %v3556_v56, %s3821_s8  ;;  %v2612_v3 = vmul.f32 %v3045_v55, %v4587_v47 }
0x1e31   : > { %v2619_v26 = vsel %vm763_vm3, %v2612_v3, 0.0 }
0x1e32   : > { %2620 = vadd.xlane.f32.xlu1 %v2619_v26 }
0x1e61   : > { %v2596_v18 = vpop.xlane.xlu1 %2595 }
0x1ea1   : > { %v2563_v60 = vpop.permute.xlu0 %2562 }
0x1ea2   : > { %v2565_v5 = vmul.f32 %v2563_v60, %v2560_v59 }
0x1ea4   : > { %v2567_v61 = vadd.f32 %v2566_v38, %v2565_v5 }
0x1ea6   : > { %2574 = vrot.lane.b32.xlu0 %v2567_v61, %s3822_s19 }
0x1eaa   : > { %2569 = vrot.lane.b32.xlu0 %v2567_v61, %s3821_s8  ;;  %s3823_s8 = smov 16  }
0x1eb7   : > { %v2618_v19 = vpop.xlane.xlu1 %2617 }
0x1ebb   : > { %v2621_v28 = vpop.xlane.xlu1 %2620 }
0x1ec9   : > { %2598 = vadd.xlane.f32.xlu0 %v2597_v63 }
0x1f18   : > { %v2575_v58 = vpop.permute.xlu0 %2574 }
0x1f19   : > { %2577 = vst.msk [vmem:[#allocation7] sm:$0x3] %vm763_vm3, %v2575_v58 }
0x1f1c   : > { %v2570_v35 = vpop.permute.xlu0 %2569 }
0x1f1d   : > { %2573 = vst.msk [vmem:[#allocation6 + $0x4] sm:$0x3] %vm763_vm3, %v2570_v35 }
0x1f20   : > { %v4600_v8 = vld [vmem:[#allocation7] sm:$0x3] }
0x1f21   : > { %v2610_v2 = vmul.f32 %v3045_v55, %v4600_v8 }
0x1f23   : > { %v2613_v10 = vsel %vm763_vm3, %v2610_v2, 0.0  ;;  %v2766_v2 = vld [vmem:[%s4716_s14 + $0x10] sm:$0xff] }
0x1f24   : > { %2614 = vadd.xlane.f32.xlu0 %v2613_v10  ;;  %v4604_v11 = vld [vmem:[#allocation6 + $0x4] sm:$0x3]  ;;  %3353 = vmatpush3.msra.mxu0 %v2766_v2 }
0x1f25   : > { %v2593_v12 = vmul.f32 %v3044_v52, %v4604_v11  ;;  %3354 = vmatprep.subr.mxu0 %v3818_v25  ;;  %v2765_v10 = vld [vmem:[%s4716_s14 + $0x8] sm:$0xff] }
0x1f26   : > { %3355 = vmatpush3.msra.mxu0 %v2765_v10 }
0x1f27   : > { %v2600_v4 = vsel %vm763_vm3, %v2593_v12, 0.0  ;;  %3356 = vmatprep.subr.mxu0 %v3818_v25  ;;  %v3046_v12 = vld [vmem:[%s4715_s13] ss:$0 sm:$0xff] }
0x1f28   : > { %2601 = vadd.xlane.f32.xlu0 %v2600_v4 }
0x1f52   : > { %v2599_v6 = vpop.xlane.xlu0 %2598 }
0x1f53   : > { %v2623_v22 = vadd.f32 %v2618_v19, %v2599_v6  ;;  %v3048_v6 = vld [vmem:[%s4717_s15] ss:$0 sm:$0xff] }
0x1f55   : > { %v2626_v36 = vmax.f32 %v2623_v22, 0.0 }
0x1f57   : > { %v2629_v33 = vsel %vm1658_vm5, %v2626_v36, -inf }
0x1fad   : > { %v2615_v23 = vpop.xlane.xlu0 %2614 }
0x1fae   : > { %v2622_v0 = vadd.f32 %v2615_v23, %v2596_v18 }
0x1fb0   : > { %v2625_v24 = vmax.f32 %v2622_v0, 0.0 }
0x1fb1   : > { %v2602_v29 = vpop.xlane.xlu0 %2601 }
0x1fb2   : > { %v2628_v31 = vsel %vm1658_vm5, %v2625_v24, -inf  ;;  %v2624_v32 = vadd.f32 %v2621_v28, %v2602_v29 }
0x1fb3   : > { %v2631_v39 = vmax.f32 %v2628_v31, %v2629_v33 }
0x1fb4   : > { %v2627_v34 = vmax.f32 %v2624_v32, 0.0 }
0x1fb6   : > { %v2630_v40 = vsel %vm1658_vm5, %v2627_v34, -inf }
0x1fb7   : > { %v2632_v41 = vmax.f32 %v2631_v39, %v2630_v40 }
0x1fb9   : > { %v2633_v42 = vsub.f32 %v2625_v24, %v2632_v41  ;;  %v2634_v43 = vsub.f32 %v2626_v36, %v2632_v41  ;;  %v2635_v7 = vsub.f32 %v2627_v34, %v2632_v41 }
0x1fbb   : > { %v2636_v44 = vmul.f32 1.442695, %v2633_v42  ;;  %v2638_v45 = vmul.f32 1.442695, %v2634_v43  ;;  %v2640_v46 = vmul.f32 1.442695, %v2635_v7 }
0x1fbd   : > { %3557 = vpow2.f32 %v2636_v44 }
0x1fbe   : > { %3559 = vpow2.f32 %v2638_v45 }
0x1fbf   : > { %3561 = vpow2.f32 %v2640_v46 }
0x1fca   : > { %v3558_v48 = vpop.eup %3557 }
0x1fcb   : > { %v3560_v49 = vpop.eup %3559  ;;  %v2642_v27 = vsel %vm1658_vm5, %v3558_v48, 0.0 }
0x1fcc   : > { %v3562_v9 = vpop.eup %3561  ;;  %v2643_v51 = vsel %vm1658_vm5, %v3560_v49, 0.0 }
0x1fcd   : > { %v2644_v52 = vadd.f32 %v2643_v51, %v2642_v27  ;;  %v2645_v37 = vsel %vm1658_vm5, %v3562_v9, 0.0 }
0x1fcf   : > { %v2646_v53 = vadd.f32 %v2645_v37, %v2644_v52 }
0x1fd1   : > { %3563 = vrcp.f32 %v2646_v53 }
0x1fde   : > { %v3564_v21 = vpop.eup %3563 }
0x1fdf   : > { %v2648_v54 = vmul.f32 %v3564_v21, %v3558_v48  ;;  %v2649_v55 = vmul.f32 %v3564_v21, %v3560_v49  ;;  %v2650_v30 = vmul.f32 %v3564_v21, %v3562_v9 }
0x1fe1   : > { %2653 = vst.msk [vmem:[%s4719_s17 + $0x2] sm:$0x3] %vm2651_vm8, %v2649_v55  ;;  %2654 = vst.msk [vmem:[%s4719_s17 + $0x4] sm:$0x3] %vm2651_vm8, %v2650_v30  ;;  %v2663_v20 = vmul.f32 %v2648_v54, %v4600_v8  ;;  %v2664_v56 = vmul.f32 %v2649_v55, %v4583_v1  ;;  %v2665_v3 = vmul.f32 %v2650_v30, %v4587_v47 }
0x1fe2   : > { %2652 = vst.msk [vmem:[%s4719_s17] sm:$0x3] %vm2651_vm8, %v2648_v54  ;;  %v2656_v26 = vmul.f32 %v2649_v55, %v4594_v57  ;;  %v2657_v59 = vmul.f32 %v2650_v30, %v4604_v11  ;;  %v2655_v60 = vmul.f32 %v2648_v54, %v4571_v50  ;;  %v2764_v11 = vld [vmem:[%s4716_s14] sm:$0xff] }
0x1fe3   : > { %v2666_v38 = vsel %vm763_vm3, %v2663_v20, 0.0  ;;  %v2667_v5 = vsel %vm763_vm3, %v2664_v56, 0.0  ;;  %v2669_v47 = vsel %vm763_vm3, %v2665_v3, 0.0  ;;  %3357 = vmatpush3.msra.mxu0 %v2764_v11 }
0x1fe4   : > { %v2659_v61 = vsel %vm763_vm3, %v2656_v26, 0.0  ;;  %v2668_v62 = vadd.f32 %v2667_v5, %v2666_v38  ;;  %v2658_v1 = vsel %vm763_vm3, %v2655_v60, 0.0  ;;  %v2661_v35 = vsel %vm763_vm3, %v2657_v59, 0.0 }
0x1fe5   : > { %v2660_v63 = vadd.f32 %v2659_v61, %v2658_v1 }
0x1fe6   : > { %v2670_v58 = vadd.f32 %v2669_v47, %v2668_v62 }
0x1fe7   : > { %v2662_v57 = vadd.f32 %v2661_v35, %v2660_v63 }
0x1fe8   : > { %2672 = vrot.lane.b32.xlu0 %v2670_v58, %s3823_s8 }
0x205a   : > { %v2673_v8 = vpop.permute.xlu0 %2672 }
0x205b   : > { %v2675_v50 = vsel %vm1772_vm6, %v2662_v57, %v2673_v8 }
0x205c   : > { %2676 = vst.msk [vmem:[#allocation18] sm:$0x3] %vm1546_vm4, %v2675_v50  ;;  %3348 = vmatmul.mubr.msk.f32.vlgmr.msra.gmra.mxu1 %vm655_vm2, %v2675_v50 }
0x211c   : > { %v2757_v4 = vpop.f32.mrf.mxu1 }
0x211d   : > { %v2758_v15 = vadd.f32 %v3046_v12, %v2757_v4 }
0x211e   : > { %v3349_v16 = vpop.f32.mrf.mxu1 }
0x211f   : > { %vm2761_vm9 = vcmp.gt.f32.partialorder %v2758_v15, 0.0  ;;  %v2762_v17 = vmul.f32 0.01, %v2758_v15 }
0x2121   : > { %v2763_v18 = vsel %vm2761_vm9, %v2758_v15, %v2762_v17 }
0x2122   : > { %3359 = vmatmul.mubr.msk.f32.vlgmr.msra.gmra.mxu0 %vm655_vm2, %v2763_v18 }
0x21e2   : > { %v2844_v19 = vpop.f32.mrf.mxu0 }
0x21e3   : > { %v2845_v25 = vadd.f32 %v3048_v6, %v2844_v19 }
0x21e4   : > { %v3360_v22 = vpop.f32.mrf.mxu0 }
0x21e5   : > { %v2849_v23 = vsel %vm2848_vm10, %v2845_v25, -inf }
0x21e6   : > { %2850 = vmax.xlane.f32.xlu1 %v2849_v23 }
0x226f   : > { %v2851_v0 = vpop.xlane.xlu1 %2850 }
0x2270   : > { %v2852_v36 = vsub.f32 %v2845_v25, %v2851_v0 }
0x2272   : > { %v2853_v24 = vmul.f32 1.442695, %v2852_v36 }
0x2274   : > { %3565 = vpow2.f32 %v2853_v24 }
0x2281   : > { %v3566_v28 = vpop.eup %3565 }
0x2282   : > { %v2855_v29 = vsel %vm2848_vm10, %v3566_v28, 0.0 }
0x2283   : > { %2856 = vadd.xlane.f32.xlu1 %v2855_v29 }
0x230c   : > { %v2857_v31 = vpop.xlane.xlu1 %2856 }
0x230d   : > { %3567 = vrcp.f32 %v2857_v31 }
0x231a   : > { %v3568_v32 = vpop.eup %3567 }
0x231b   : > { %v2859_v33 = vmul.f32 %v3568_v32, %v3566_v28 }
0x231d   : > { %2860 = vst.msk [vmem:[#allocation17] sm:$0x3] %vm2848_vm10, %v2859_v33 }
0x231e PF: > { %p3413_p0 = scmp.eq.s32.totalorder %s3940_s0, 2  ;;  %s3824_s24 = smov [#allocation17]  }
0x231f   : > { %s2868_s25 = sshll.u32 %s3824_s24, 4  ;;  %s3825_s12 = smov [#allocation18]   ;;  %s2869_s25 = int_to_ptr.vmem [resolvable:$true] %s2868_s25 }
0x2320   : > { %s2882_s8 = sshll.u32 %s3825_s12, 4  ;;  %s3701_s19 = scalar_lea.vmem %s2869_s25, 32  ;;  %s2883_s8 = int_to_ptr.vmem [resolvable:$true] %s2882_s8 }
0x2321   : > { %p3702_p2 = scmp.ne.s32.totalorder %s2869_s25, %s3701_s19  ;;  %p3708_p10 = scmp.lt.s32.totalorder %s2869_s25, %s2869_s25 }
0x2322   : > { %p3709_p11 = scmp.lt.s32.totalorder %s3701_s19, %s3701_s19 }
0x2323   : > { %p3703_p3 = pnand %p3702_p2, %p3413_p0 }
0x2324   : > { %p3710_p12 = por %p3709_p11, %p3708_p10 }
0x2325   : > { %p3704_p7 = pneg %p3703_p3 }
0x2327   : > { %p3711_p1 = pnand %p3710_p12, %p3704_p7 }
0x2329   : > { %3714 = shalt.err (!%p3711_p1)
}
0x232a   : > { %s4753_s2 = sld [smem:[#allocation32_spill]]  ;;  %s3725_s22 = scalar_lea.vmem %s2883_s8, 32 }
0x232b   : > { %p3726_p4 = scmp.ne.s32.totalorder %s2883_s8, %s3725_s22  ;;  %p3732_p8 = scmp.lt.s32.totalorder %s2883_s8, %s2883_s8 }
0x232c   : > { %p3733_p13 = scmp.lt.s32.totalorder %s3725_s22, %s3725_s22 }
0x232d   : > { %p3727_p5 = pnand %p3726_p4, %p3413_p0 }
0x232e   : > { %p3734_p9 = por %p3733_p13, %p3732_p8 }
0x232f   : > { %p3728_p6 = pneg %p3727_p5 }
0x2330   : > { %3380 = dma.vmem_to_hbm [thread:$0]  (%p3413_p0), %s2869_s25, 32, %s4753_s2, [#allocation10]  }
0x2331   : > { %p3735_p2 = pnand %p3734_p9, %p3728_p6 }
0x2333   : > { %3738 = shalt.err (!%p3735_p2)
}
0x2334   : > { %s4754_s5 = sld [smem:[#allocation33_spill]] }
0x233a   : > { %3382 = dma.vmem_to_hbm [thread:$0]  (%p3413_p0), %s2883_s8, 32, %s4754_s5, [#allocation19]  }
0x233b   : > { %3778 = dma.done.wait (%p3413_p0), [#allocation10], 32  }
0x233c   : > { %3780 = vsyncadd (%p3413_p0), [#allocation10], 4294967264 }
0x233d   : > { %3782 = dma.done.wait (%p3413_p0), [#allocation19], 32  }
0x233e   : > { %3784 = vsyncadd (%p3413_p0), [#allocation19], 4294967264 }
0x233f PF: > { %p33_p3 = scmp.ge.s32.totalorder %s4012_s21, 5   ;;  %s4755_s27 = smov %s3791_s28 }
0x2340   : > { %s4756_s28 = smov %s3795_s29  ;;  %s4757_s29 = smov %s4023_s23 }
0x2341   : > { %s4758_s30 = smov %s4012_s21  ;;  %35 = sbr.rel (!%p33_p3) target bundleno = 17 (0x11), region = 189 }
0x2346   :  { %2902 = vsyncpa [#allocation9], 1 }
0x2347   :  { %2904 = vsyncpa [#allocation9 + $0x1], 1 }
0x2348   :  { %2905 = vsyncpa [#allocation12], 1 }
0x2349   :  { %2906 = vsyncpa [#allocation15], 1 }
0x234a   :  { %2907 = vsyncpa [#allocation10], 1 }
0x234b   :  { %2909 = vsyncpa [#allocation10 + $0x1], 1 }
0x234c   :  { %2910 = vsyncpa [#allocation19], 1 }

</bundles_post_ra>
